<compile_context>
chip_gen: v7x
topology: tpu7x:2x2x1
jax: 0.10.0
libtpu: 0.0.40
codegen_flags: <defaults>
</compile_context>

<pallas_src>
import functools
import math

import jax
import jax.numpy as jnp
from jax import lax
from jax.experimental import pallas as pl
from jax.experimental.pallas import tpu as pltpu

H_PAD = 128     # lane-padded hidden width
C_PAD = 128     # lane-padded output-head width
EK_PAD = 8      # edge_attr contraction dim padded 7 -> 8

_VMEM = pl.BlockSpec(memory_space=pltpu.MemorySpace.VMEM)

# TODO(synk): mol=True path (AtomEncoder / BondEncoder lookup tables) not implemented.
# TODO(synk): all-layer fusion into one pallas_call (h resident across layers) left out
#             for robustness; per-layer HBM traffic is only O((N+E)*H).


def _round_up(x, m):
    return ((x + m - 1) // m) * m


# -----------------------------------------------------------------------------
# Kernel A: node linear  hx = h @ W + b   (tiled over node tiles, bf16 MXU inputs)
# -----------------------------------------------------------------------------
def _linear_kernel(h_ref, w_ref, b_ref, out_ref):
    out_ref[...] = jnp.dot(h_ref[...].astype(jnp.bfloat16),
                           w_ref[...].astype(jnp.bfloat16),
                           preferred_element_type=jnp.float32) + b_ref[...]


def node_linear(h, w, b, tn):
    n_pad = h.shape[0]
    return pl.pallas_call(
        _linear_kernel,
        out_shape=jax.ShapeDtypeStruct((n_pad, H_PAD), jnp.float32),
        grid=(n_pad // tn,),
        in_specs=[pl.BlockSpec((tn, H_PAD), lambda i: (i, 0)),
                  pl.BlockSpec((H_PAD, H_PAD), lambda i: (0, 0)),
                  pl.BlockSpec((1, H_PAD), lambda i: (0, 0))],
        out_specs=pl.BlockSpec((tn, H_PAD), lambda i: (i, 0)),
        compiler_params=pltpu.CompilerParams(dimension_semantics=("parallel",)),
    )(h, w, b)


# -----------------------------------------------------------------------------
# Kernel B: per-edge messages  msg[e] = norm[e] * relu(hx[row[e]] + edge_emb[e])
#   grid = (edge tiles,)  — each edge is processed exactly once.
#   Gather hx[row] is a per-tile one-hot MXU matmul (small graphs) or a per-row
#   dynamic-copy fallback loop (large graphs).
# -----------------------------------------------------------------------------
def _edge_msg_kernel(use_onehot, te, n_pad,
                     row_smem_ref,                                 # scalar prefetch [E_pad]
                     hx_ref, ea_ref, we_ref, be_ref, rowc_ref, nrmc_ref,
                     msg_ref,
                     xj_ref):
    k = pl.program_id(0)

    # edge embedding for this tile                                 [te, H]
    eemb = jnp.dot(ea_ref[...].astype(jnp.bfloat16),
                   we_ref[...].astype(jnp.bfloat16),
                   preferred_element_type=jnp.float32) + be_ref[...]

    if use_onehot:
        # gather x_j = hx[row] as an on-the-fly one-hot MXU matmul  [te, H]
        eq = rowc_ref[...] == lax.broadcasted_iota(jnp.int32, (te, n_pad), 1)
        gmat = eq.astype(jnp.float32).astype(jnp.bfloat16)          # [te, n_pad]
        xj = jnp.dot(gmat, hx_ref[...].astype(jnp.bfloat16),
                     preferred_element_type=jnp.float32)
    else:
        # fallback: per-row dynamic copies from the VMEM-resident hx
        e_base = k * te

        @pl.loop(0, te)
        def _(e):
            r = row_smem_ref[e_base + e]
            xj_ref[pl.ds(e, 1), :] = hx_ref[pl.ds(r, 1), :]

        xj = xj_ref[...]

    # norm folded into the message so the scatter matrix stays a pure 0/1 one-hot
    msg_ref[...] = (jnp.maximum(xj + eemb, 0.0) * nrmc_ref[...]).astype(jnp.bfloat16)


def edge_messages(row_idx, hx, edge_attr_p, w_edge, b_edge, row_col, norm_col,
                  *, te, use_onehot):
    e_pad = edge_attr_p.shape[0]
    n_pad = hx.shape[0]
    kern = functools.partial(_edge_msg_kernel, use_onehot, te, n_pad)
    return pl.pallas_call(
        kern,
        out_shape=jax.ShapeDtypeStruct((e_pad, H_PAD), jnp.bfloat16),
        grid_spec=pltpu.PrefetchScalarGridSpec(
            num_scalar_prefetch=1,
            grid=(e_pad // te,),
            in_specs=[
                pl.BlockSpec((n_pad, H_PAD), lambda k, r: (0, 0)),   # hx (VMEM resident)
                pl.BlockSpec((te, EK_PAD), lambda k, r: (k, 0)),     # edge_attr tile
                pl.BlockSpec((EK_PAD, H_PAD), lambda k, r: (0, 0)),  # w_edge
                pl.BlockSpec((1, H_PAD), lambda k, r: (0, 0)),       # b_edge
                pl.BlockSpec((te, 1), lambda k, r: (k, 0)),          # row ids (column)
                pl.BlockSpec((te, 1), lambda k, r: (k, 0)),          # edge norm (column)
            ],
            out_specs=pl.BlockSpec((te, H_PAD), lambda k, r: (k, 0)),
            scratch_shapes=[pltpu.VMEM((te, H_PAD), jnp.float32)],   # xj (fallback path)
        ),
        compiler_params=pltpu.CompilerParams(
            dimension_semantics=("parallel",)),
    )(row_idx, hx, edge_attr_p, w_edge, b_edge, row_col, norm_col)


# -----------------------------------------------------------------------------
# Kernel C: scatter-add + epilogue
#   grid = (node tiles [parallel], edge tiles [arbitrary/reduction])
#   per edge tile: on-the-fly [tn, te] one-hot from col ids, MXU matmul with the
#   precomputed message tile, accumulated into a VMEM f32 scratch.
#   epilogue (last edge tile): + relu(hx + root)/deg, eval-BN, optional ReLU.
# -----------------------------------------------------------------------------
def _scatter_kernel(apply_relu, tn, te,
                    col_ref, msg_ref, hx_ref, root_ref, invdeg_ref,
                    bns_ref, bnt_ref,
                    out_ref,
                    acc_ref):
    i = pl.program_id(0)          # node tile
    k = pl.program_id(1)          # edge tile (reduction axis)

    @pl.when(k == 0)
    def _():
        acc_ref[...] = jnp.zeros_like(acc_ref)

    # per-tile scatter matrix: scat[n, e] = (col[e] == node n)       [tn, te]
    node_ids = i * tn + lax.broadcasted_iota(jnp.int32, (tn, te), 0)
    eq = col_ref[...] == node_ids
    scat = eq.astype(jnp.float32).astype(jnp.bfloat16)

    acc_ref[...] += jnp.dot(scat, msg_ref[...], preferred_element_type=jnp.float32)

    # epilogue: root term + eval-mode BatchNorm (+ ReLU), once per node tile
    @pl.when(k == pl.num_programs(1) - 1)
    def _():
        conv = acc_ref[...] + jnp.maximum(hx_ref[...] + root_ref[...], 0.0) * invdeg_ref[...]
        y = conv * bns_ref[...] + bnt_ref[...]
        if apply_relu:
            y = jnp.maximum(y, 0.0)
        out_ref[...] = y


def gcn_scatter(col2d, msg, hx, root, inv_deg, bn_scale, bn_shift,
                *, tn, te, apply_relu):
    n_pad = hx.shape[0]
    e_pad = msg.shape[0]
    kern = functools.partial(_scatter_kernel, apply_relu, tn, te)
    return pl.pallas_call(
        kern,
        out_shape=jax.ShapeDtypeStruct((n_pad, H_PAD), jnp.float32),
        grid=(n_pad // tn, e_pad // te),
        in_specs=[
            pl.BlockSpec((1, te), lambda i, k: (0, k)),              # col ids tile
            pl.BlockSpec((te, H_PAD), lambda i, k: (k, 0)),          # message tile (bf16)
            pl.BlockSpec((tn, H_PAD), lambda i, k: (i, 0)),          # hx node tile
            pl.BlockSpec((1, H_PAD), lambda i, k: (0, 0)),           # root emb
            pl.BlockSpec((tn, 1), lambda i, k: (i, 0)),              # 1 / deg
            pl.BlockSpec((1, H_PAD), lambda i, k: (0, 0)),           # bn scale
            pl.BlockSpec((1, H_PAD), lambda i, k: (0, 0)),           # bn shift
        ],
        out_specs=pl.BlockSpec((tn, H_PAD), lambda i, k: (i, 0)),
        scratch_shapes=[pltpu.VMEM((tn, H_PAD), jnp.float32)],       # accumulator
        compiler_params=pltpu.CompilerParams(
            dimension_semantics=("parallel", "arbitrary")),
    )(col2d, msg, hx, root, inv_deg, bn_scale, bn_shift)


# -----------------------------------------------------------------------------
# Kernel D: global mean pool + output linear (lane-dense padded head)
# -----------------------------------------------------------------------------
def _pool_out_kernel(h_ref, pool_ref, w_ref, b_ref, out_ref):
    pooled = jnp.dot(pool_ref[...], h_ref[...], preferred_element_type=jnp.float32)
    out_ref[...] = jnp.dot(pooled, w_ref[...],
                           preferred_element_type=jnp.float32) + b_ref[...]


def pool_and_out(h, pool_mat, w_out, b_out):
    g_pad = pool_mat.shape[0]
    return pl.pallas_call(
        _pool_out_kernel,
        out_shape=jax.ShapeDtypeStruct((g_pad, C_PAD), jnp.float32),
        in_specs=[_VMEM] * 4,
        out_specs=_VMEM,
    )(h, pool_mat, w_out, b_out)


# -----------------------------------------------------------------------------
# Parameter init (matches the PyTorch module, mol=False)
# -----------------------------------------------------------------------------
def init_linear(key, din, dout):
    k1, k2 = jax.random.split(key)
    bound = 1.0 / math.sqrt(din)
    w = jax.random.uniform(k1, (din, dout), jnp.float32, -bound, bound)
    b = jax.random.uniform(k2, (1, dout), jnp.float32, -bound, bound)
    return w, b


def init_egnn_params(key, hidden, out_channels, num_layers, edge_dim=7):
    params = {}
    key, k = jax.random.split(key)
    params["node_emb"] = jax.random.normal(k, (1, hidden), jnp.float32)  # Embedding(1, H)
    layers = []
    for _ in range(num_layers):
        key, k1, k2, k3 = jax.random.split(key, 4)
        w_lin, b_lin = init_linear(k1, hidden, hidden)
        w_edge, b_edge = init_linear(k2, edge_dim, hidden)
        root = jax.random.normal(k3, (1, hidden), jnp.float32)           # Embedding(1, H)
        layers.append(dict(w_lin=w_lin, b_lin=b_lin,
                           w_edge=w_edge, b_edge=b_edge, root=root))
    params["layers"] = layers
    key, k = jax.random.split(key)
    params["w_out"], params["b_out"] = init_linear(k, hidden, out_channels)
    return params


def _pad2(x, shape):
    out = jnp.zeros(shape, x.dtype)
    return out.at[:x.shape[0], :x.shape[1]].set(x)


# -----------------------------------------------------------------------------
# Forward pass (glue: padding, degree/norm bookkeeping, per-layer kernel calls)
# -----------------------------------------------------------------------------
@functools.partial(jax.jit, static_argnames=("num_graphs",))
def egnn_forward(params, x_idx, edge_index, edge_attr, batch, num_graphs):
    N = x_idx.shape[0]
    E = edge_index.shape[1]
    C = params["w_out"].shape[1]
    row, col = edge_index[0], edge_index[1]

    # tile sizes / padded sizes ((8,128)-aligned, lane-dense)
    tn = 128 if N >= 128 else _round_up(max(N, 8), 8)
    n_pad = _round_up(N, tn)
    te = 128
    e_pad = _round_up(E, te)
    # one-hot MXU gather only while hx comfortably fits VMEM-resident
    use_onehot_gather = n_pad <= 4096

    # node_encoder: Embedding(1, H) -> every node gets the same (padded) row.
    emb_pad = _pad2(params["node_emb"], (1, H_PAD))
    h = jnp.broadcast_to(emb_pad, (n_pad, H_PAD))     # padded rows never reach real outputs

    # degree / norm bookkeeping (cheap O(E) index glue, kept in plain JAX)
    deg = jnp.zeros((N,), jnp.float32).at[row].add(1.0) + 1.0
    dis = deg ** -0.5
    norm = dis[row] * dis[col]                                           # [E]
    inv_deg = jnp.ones((n_pad, 1), jnp.float32).at[:N, 0].set(1.0 / deg)

    row_p = jnp.zeros((e_pad,), jnp.int32).at[:E].set(row.astype(jnp.int32))
    row_col = jnp.zeros((e_pad, 1), jnp.int32).at[:E, 0].set(row.astype(jnp.int32))
    col2d = jnp.zeros((1, e_pad), jnp.int32).at[0, :E].set(col.astype(jnp.int32))
    norm_col = jnp.zeros((e_pad, 1), jnp.float32).at[:E, 0].set(norm)    # 0 => padded edge

    ea_p = jnp.zeros((e_pad, EK_PAD), jnp.float32).at[:E, :edge_attr.shape[1]].set(edge_attr)

    # eval-mode BatchNorm folded to scale/shift
    bn_scale = jnp.full((1, H_PAD), 1.0 / math.sqrt(1.0 + 1e-5), jnp.float32)
    bn_shift = jnp.zeros((1, H_PAD), jnp.float32)

    num_layers = len(params["layers"])
    for li, lp in enumerate(params["layers"]):
        w_lin = _pad2(lp["w_lin"], (H_PAD, H_PAD))
        b_lin = _pad2(lp["b_lin"], (1, H_PAD))
        w_edge = _pad2(lp["w_edge"], (EK_PAD, H_PAD))
        b_edge = _pad2(lp["b_edge"], (1, H_PAD))
        root = _pad2(lp["root"], (1, H_PAD))

        hx = node_linear(h, w_lin, b_lin, tn)
        msg = edge_messages(row_p, hx, ea_p, w_edge, b_edge, row_col, norm_col,
                            te=te, use_onehot=use_onehot_gather)
        h = gcn_scatter(col2d, msg, hx, root, inv_deg, bn_scale, bn_shift,
                        tn=tn, te=te, apply_relu=(li != num_layers - 1))
        # dropout: eval mode => identity

    # global mean pool + output head (padded to 128 lanes, sliced back afterwards)
    g_pad = _round_up(num_graphs, 8)
    onehot = (jnp.arange(num_graphs)[:, None] == batch[None, :]).astype(jnp.float32)
    counts = jnp.maximum(onehot.sum(axis=1, keepdims=True), 1.0)
    pool_mat = jnp.zeros((g_pad, n_pad), jnp.float32).at[:num_graphs, :N].set(onehot / counts)
    w_out = _pad2(params["w_out"], (H_PAD, C_PAD))
    b_out = _pad2(params["b_out"], (1, C_PAD))

    out_full = pool_and_out(h, pool_mat, w_out, b_out)
    return out_full[:num_graphs, :C]


# -----------------------------------------------------------------------------
# Pure-JAX reference (f32, unpadded) for correctness check
# -----------------------------------------------------------------------------
def egnn_reference(params, x_idx, edge_index, edge_attr, batch, num_graphs):
    N = x_idx.shape[0]
    row, col = edge_index[0], edge_index[1]
    h = params["node_emb"][x_idx]
    deg = jnp.zeros((N,), jnp.float32).at[row].add(1.0) + 1.0
    dis = deg ** -0.5
    norm = dis[row] * dis[col]
    bn_scale = 1.0 / math.sqrt(1.0 + 1e-5)
    num_layers = len(params["layers"])
    for i, lp in enumerate(params["layers"]):
        hx = h @ lp["w_lin"] + lp["b_lin"]
        eemb = edge_attr @ lp["w_edge"] + lp["b_edge"]
        msg = norm[:, None] * jax.nn.relu(hx[row] + eemb)
        agg = jax.ops.segment_sum(msg, col, num_segments=N)
        conv = agg + jax.nn.relu(hx + lp["root"]) / deg[:, None]
        h = conv * bn_scale
        if i != num_layers - 1:
            h = jax.nn.relu(h)
    sums = jax.ops.segment_sum(h, batch, num_segments=num_graphs)
    cnts = jax.ops.segment_sum(jnp.ones_like(batch, jnp.float32), batch,
                               num_segments=num_graphs)
    pooled = sums / cnts[:, None]
    return pooled @ params["w_out"] + params["b_out"]


# -----------------------------------------------------------------------------
if __name__ == "__main__":
    key = jax.random.PRNGKey(0)

    N, E, H, C = 200, 320, 32, 8          # nodes, edges, hidden, out_channels
    NUM_LAYERS, NUM_GRAPHS, EDGE_DIM = 3, 4, 7

    key, kp, ke, ka = jax.random.split(key, 4)
    params = init_egnn_params(kp, H, C, NUM_LAYERS, EDGE_DIM)

    # inputs: node indices (Embedding(1, H) -> all zeros), edge_index, edge_attr, batch
    x_idx = jnp.zeros((N,), jnp.int32)
    edge_index = jax.random.randint(ke, (2, E), 0, N, dtype=jnp.int32)
    edge_attr = jax.random.normal(ka, (E, EDGE_DIM), jnp.float32)
    batch = jnp.repeat(jnp.arange(NUM_GRAPHS, dtype=jnp.int32), N // NUM_GRAPHS)

    out = egnn_forward(params, x_idx, edge_index, edge_attr, batch, NUM_GRAPHS)
    out = jax.block_until_ready(out)

    ref = egnn_reference(params, x_idx, edge_index, edge_attr, batch, NUM_GRAPHS)
    max_err = float(jnp.max(jnp.abs(out - ref)))
    if not jnp.allclose(out, ref, atol=2e-2, rtol=2e-2):
        raise RuntimeError(f"mismatch: max abs err = {max_err}")

    print("KERNEL_OK")
</pallas_src>

<mosaic_0001>
module attributes {stable_mosaic.version = 11 : i64} {
  func.func private @main(%arg0: i32) attributes {dimension_semantics = [#tpu.dimension_semantics<core_parallel>], iteration_bounds = array<i64: 2>, tpu.core_type = #tpu.core_type<sc_scalar_subcore>, window_params = []} {
    return
  }
}

module attributes {stable_mosaic.version = 11 : i64} {
  func.func private @main(%arg0: i32) attributes {dimension_semantics = [#tpu.dimension_semantics<core_parallel>], iteration_bounds = array<i64: 2>, tpu.core_type = #tpu.core_type<sc_scalar_subcore>, window_params = []} {
    return
  }
}

module attributes {stable_mosaic.version = 11 : i64} {
  func.func @_linear_kernel(%arg0: i32, %arg1: memref<128x128xf32, #tpu.memory_space<vmem>>, %arg2: memref<128x128xf32, #tpu.memory_space<vmem>>, %arg3: memref<1x128xf32, #tpu.memory_space<vmem>>, %arg4: memref<128x128xf32, #tpu.memory_space<vmem>>) attributes {dimension_semantics = [#tpu.dimension_semantics<parallel>], iteration_bounds = array<i64: 2>, scalar_prefetch = 0 : i64, scratch_operands = 0 : i64, tpu.core_type = #tpu.core_type<tc>, window_params = [{transform_indices = @transform_0, window_bounds = array<i64: 128, 128>}, {pipeline_mode = #tpu.pipeline_mode<synchronous>, transform_indices = @transform_1, window_bounds = array<i64: 128, 128>}, {pipeline_mode = #tpu.pipeline_mode<synchronous>, transform_indices = @transform_2, window_bounds = array<i64: 1, 128>}, {transform_indices = @transform_3, window_bounds = array<i64: 128, 128>}]} {
    %c0 = arith.constant 0 : index
    %c0_0 = arith.constant 0 : index
    %0 = vector.load %arg1[%c0, %c0_0] : memref<128x128xf32, #tpu.memory_space<vmem>>, vector<128x128xf32>
    %1 = arith.truncf %0 : vector<128x128xf32> to vector<128x128xbf16>
    %c0_1 = arith.constant 0 : index
    %c0_2 = arith.constant 0 : index
    %2 = vector.load %arg2[%c0_1, %c0_2] : memref<128x128xf32, #tpu.memory_space<vmem>>, vector<128x128xf32>
    %3 = arith.truncf %2 : vector<128x128xf32> to vector<128x128xbf16>
    %cst = arith.constant dense<0.000000e+00> : vector<128x128xf32>
    %4 = tpu.matmul %1, %3, %cst {dimension_numbers = #tpu.dot_dimension_numbers<[1], [0], [0], [1], [0, 0, 1, 1], [], []>} : vector<128x128xbf16>, vector<128x128xbf16>, vector<128x128xf32> -> vector<128x128xf32>
    %c0_3 = arith.constant 0 : index
    %c0_4 = arith.constant 0 : index
    %5 = vector.load %arg3[%c0_3, %c0_4] : memref<1x128xf32, #tpu.memory_space<vmem>>, vector<1x128xf32>
    %6 = vector.broadcast %5 : vector<1x128xf32> to vector<128x128xf32>
    %7 = arith.addf %4, %6 : vector<128x128xf32>
    %c0_5 = arith.constant 0 : index
    %c0_6 = arith.constant 0 : index
    %8 = vector.load %arg4[%c0_5, %c0_6] : memref<128x128xf32, #tpu.memory_space<vmem>>, vector<128x128xf32>
    tpu.vector_store %arg4[%c0_5, %c0_6], %7 {strides = array<i32>} : memref<128x128xf32, #tpu.memory_space<vmem>>, vector<128x128xf32>,
    return
  }
  func.func @transform_0(%arg0: i32) -> (i32, i32) {
    %c0_i32 = arith.constant 0 : i32
    %c0_i32_0 = arith.constant 0 : i32
    return %arg0, %c0_i32 : i32, i32
  }
  func.func @transform_1(%arg0: i32) -> (i32, i32) {
    %c0_i32 = arith.constant 0 : i32
    %c0_i32_0 = arith.constant 0 : i32
    %c0_i32_1 = arith.constant 0 : i32
    return %c0_i32, %c0_i32_0 : i32, i32
  }
  func.func @transform_2(%arg0: i32) -> (i32, i32) {
    %c0_i32 = arith.constant 0 : i32
    %c0_i32_0 = arith.constant 0 : i32
    %c0_i32_1 = arith.constant 0 : i32
    return %c0_i32, %c0_i32_0 : i32, i32
  }
  func.func @transform_3(%arg0: i32) -> (i32, i32) {
    %c0_i32 = arith.constant 0 : i32
    %c0_i32_0 = arith.constant 0 : i32
    return %arg0, %c0_i32 : i32, i32
  }
}

module attributes {stable_mosaic.version = 11 : i64} {
  func.func @_edge_msg_kernel(%arg0: i32, %arg1: memref<384xi32, #tpu.memory_space<smem>>, %arg2: memref<256x128xf32, #tpu.memory_space<vmem>>, %arg3: memref<128x8xf32, #tpu.memory_space<vmem>>, %arg4: memref<8x128xf32, #tpu.memory_space<vmem>>, %arg5: memref<1x128xf32, #tpu.memory_space<vmem>>, %arg6: memref<128x1xi32, #tpu.memory_space<vmem>>, %arg7: memref<128x1xf32, #tpu.memory_space<vmem>>, %arg8: memref<128x128xbf16, #tpu.memory_space<vmem>>, %arg9: memref<128x128xf32, #tpu.memory_space<vmem>>) attributes {dimension_semantics = [#tpu.dimension_semantics<parallel>], iteration_bounds = array<i64: 3>, scalar_prefetch = 1 : i64, scratch_operands = 1 : i64, tpu.core_type = #tpu.core_type<tc>, window_params = [{pipeline_mode = #tpu.pipeline_mode<synchronous>, transform_indices = @transform_0, window_bounds = array<i64: 256, 128>}, {transform_indices = @transform_1, window_bounds = array<i64: 128, 8>}, {pipeline_mode = #tpu.pipeline_mode<synchronous>, transform_indices = @transform_2, window_bounds = array<i64: 8, 128>}, {pipeline_mode = #tpu.pipeline_mode<synchronous>, transform_indices = @transform_3, window_bounds = array<i64: 1, 128>}, {transform_indices = @transform_4, window_bounds = array<i64: 128, 1>}, {transform_indices = @transform_5, window_bounds = array<i64: 128, 1>}, {transform_indices = @transform_6, window_bounds = array<i64: 128, 128>}]} {
    %c0 = arith.constant 0 : index
    %c0_0 = arith.constant 0 : index
    %0 = vector.load %arg3[%c0, %c0_0] : memref<128x8xf32, #tpu.memory_space<vmem>>, vector<128x8xf32>
    %1 = arith.truncf %0 : vector<128x8xf32> to vector<128x8xbf16>
    %c0_1 = arith.constant 0 : index
    %c0_2 = arith.constant 0 : index
    %2 = vector.load %arg4[%c0_1, %c0_2] : memref<8x128xf32, #tpu.memory_space<vmem>>, vector<8x128xf32>
    %3 = arith.truncf %2 : vector<8x128xf32> to vector<8x128xbf16>
    %cst = arith.constant dense<0.000000e+00> : vector<128x128xf32>
    %4 = tpu.matmul %1, %3, %cst {dimension_numbers = #tpu.dot_dimension_numbers<[1], [0], [0], [1], [0, 0, 1, 1], [], []>} : vector<128x8xbf16>, vector<8x128xbf16>, vector<128x128xf32> -> vector<128x128xf32>
    %c0_3 = arith.constant 0 : index
    %c0_4 = arith.constant 0 : index
    %5 = vector.load %arg5[%c0_3, %c0_4] : memref<1x128xf32, #tpu.memory_space<vmem>>, vector<1x128xf32>
    %6 = vector.broadcast %5 : vector<1x128xf32> to vector<128x128xf32>
    %7 = arith.addf %4, %6 : vector<128x128xf32>
    %c0_5 = arith.constant 0 : index
    %c0_6 = arith.constant 0 : index
    %8 = vector.load %arg6[%c0_5, %c0_6] : memref<128x1xi32, #tpu.memory_space<vmem>>, vector<128x1xi32>
    %9 = tpu.iota {dimensions = array<i32: 1>} : vector<128x256xi32>
    %10 = vector.broadcast %8 : vector<128x1xi32> to vector<128x256xi32>
    %11 = arith.cmpi eq, %10, %9 : vector<128x256xi32>
    %12 = arith.extui %11 : vector<128x256xi1> to vector<128x256xi32>
    %13 = arith.sitofp %12 : vector<128x256xi32> to vector<128x256xf32>
    %14 = arith.truncf %13 : vector<128x256xf32> to vector<128x256xbf16>
    %c0_7 = arith.constant 0 : index
    %c0_8 = arith.constant 0 : index
    %15 = vector.load %arg2[%c0_7, %c0_8] : memref<256x128xf32, #tpu.memory_space<vmem>>, vector<256x128xf32>
    %16 = arith.truncf %15 : vector<256x128xf32> to vector<256x128xbf16>
    %cst_9 = arith.constant dense<0.000000e+00> : vector<128x128xf32>
    %17 = tpu.matmul %14, %16, %cst_9 {dimension_numbers = #tpu.dot_dimension_numbers<[1], [0], [0], [1], [0, 0, 1, 1], [], []>} : vector<128x256xbf16>, vector<256x128xbf16>, vector<128x128xf32> -> vector<128x128xf32>
    %18 = arith.addf %17, %7 : vector<128x128xf32>
    %cst_10 = arith.constant 0.000000e+00 : f32
    %19 = vector.broadcast %cst_10 : f32 to vector<128x128xf32>
    %20 = arith.maximumf %18, %19 : vector<128x128xf32>
    %c0_11 = arith.constant 0 : index
    %c0_12 = arith.constant 0 : index
    %21 = vector.load %arg7[%c0_11, %c0_12] : memref<128x1xf32, #tpu.memory_space<vmem>>, vector<128x1xf32>
    %22 = vector.broadcast %21 : vector<128x1xf32> to vector<128x128xf32>
    %23 = arith.mulf %20, %22 : vector<128x128xf32>
    %24 = arith.truncf %23 : vector<128x128xf32> to vector<128x128xbf16>
    %c0_13 = arith.constant 0 : index
    %c0_14 = arith.constant 0 : index
    %25 = vector.load %arg8[%c0_13, %c0_14] : memref<128x128xbf16, #tpu.memory_space<vmem>>, vector<128x128xbf16>
    tpu.vector_store %arg8[%c0_13, %c0_14], %24 {strides = array<i32>} : memref<128x128xbf16, #tpu.memory_space<vmem>>, vector<128x128xbf16>,
    return
  }
  func.func @transform_0(%arg0: i32, %arg1: memref<384xi32, #tpu.memory_space<smem>>) -> (i32, i32) {
    %c0_i32 = arith.constant 0 : i32
    %c0_i32_0 = arith.constant 0 : i32
    %c0_i32_1 = arith.constant 0 : i32
    return %c0_i32, %c0_i32_0 : i32, i32
  }
  func.func @transform_1(%arg0: i32, %arg1: memref<384xi32, #tpu.memory_space<smem>>) -> (i32, i32) {
    %c0_i32 = arith.constant 0 : i32
    %c0_i32_0 = arith.constant 0 : i32
    return %arg0, %c0_i32 : i32, i32
  }
  func.func @transform_2(%arg0: i32, %arg1: memref<384xi32, #tpu.memory_space<smem>>) -> (i32, i32) {
    %c0_i32 = arith.constant 0 : i32
    %c0_i32_0 = arith.constant 0 : i32
    %c0_i32_1 = arith.constant 0 : i32
    return %c0_i32, %c0_i32_0 : i32, i32
  }
  func.func @transform_3(%arg0: i32, %arg1: memref<384xi32, #tpu.memory_space<smem>>) -> (i32, i32) {
    %c0_i32 = arith.constant 0 : i32
    %c0_i32_0 = arith.constant 0 : i32
    %c0_i32_1 = arith.constant 0 : i32
    return %c0_i32, %c0_i32_0 : i32, i32
  }
  func.func @transform_4(%arg0: i32, %arg1: memref<384xi32, #tpu.memory_space<smem>>) -> (i32, i32) {
    %c0_i32 = arith.constant 0 : i32
    %c0_i32_0 = arith.constant 0 : i32
    return %arg0, %c0_i32 : i32, i32
  }
  func.func @transform_5(%arg0: i32, %arg1: memref<384xi32, #tpu.memory_space<smem>>) -> (i32, i32) {
    %c0_i32 = arith.constant 0 : i32
    %c0_i32_0 = arith.constant 0 : i32
    return %arg0, %c0_i32 : i32, i32
  }
  func.func @transform_6(%arg0: i32, %arg1: memref<384xi32, #tpu.memory_space<smem>>) -> (i32, i32) {
    %c0_i32 = arith.constant 0 : i32
    %c0_i32_0 = arith.constant 0 : i32
    return %arg0, %c0_i32 : i32, i32
  }
}

module attributes {stable_mosaic.version = 11 : i64} {
  func.func @_scatter_kernel(%arg0: i32, %arg1: i32, %arg2: memref<1x128xi32, #tpu.memory_space<vmem>>, %arg3: memref<128x128xbf16, #tpu.memory_space<vmem>>, %arg4: memref<128x128xf32, #tpu.memory_space<vmem>>, %arg5: memref<1x128xf32, #tpu.memory_space<vmem>>, %arg6: memref<128x1xf32, #tpu.memory_space<vmem>>, %arg7: memref<1x128xf32, #tpu.memory_space<vmem>>, %arg8: memref<1x128xf32, #tpu.memory_space<vmem>>, %arg9: memref<128x128xf32, #tpu.memory_space<vmem>>, %arg10: memref<128x128xf32, #tpu.memory_space<vmem>>) attributes {dimension_semantics = [#tpu.dimension_semantics<parallel>, #tpu.dimension_semantics<arbitrary>], iteration_bounds = array<i64: 2, 3>, scalar_prefetch = 0 : i64, scratch_operands = 1 : i64, tpu.core_type = #tpu.core_type<tc>, window_params = [{transform_indices = @transform_0, window_bounds = array<i64: 1, 128>}, {transform_indices = @transform_1, window_bounds = array<i64: 128, 128>}, {transform_indices = @transform_2, window_bounds = array<i64: 128, 128>}, {pipeline_mode = #tpu.pipeline_mode<synchronous>, transform_indices = @transform_3, window_bounds = array<i64: 1, 128>}, {transform_indices = @transform_4, window_bounds = array<i64: 128, 1>}, {pipeline_mode = #tpu.pipeline_mode<synchronous>, transform_indices = @transform_5, window_bounds = array<i64: 1, 128>}, {pipeline_mode = #tpu.pipeline_mode<synchronous>, transform_indices = @transform_6, window_bounds = array<i64: 1, 128>}, {transform_indices = @transform_7, window_bounds = array<i64: 128, 128>}]} {
    %c0_i32 = arith.constant 0 : i32
    %0 = arith.cmpi eq, %arg1, %c0_i32 : i32
    %1 = arith.extui %0 : i1 to i32
    %c0_i32_0 = arith.constant 0 : i32
    %2 = arith.cmpi ne, %1, %c0_i32_0 : i32
    scf.if %2 {
      %cst_9 = arith.constant 0.000000e+00 : f32
      %21 = vector.broadcast %cst_9 : f32 to vector<128x128xf32>
      %c0_10 = arith.constant 0 : index
      %c0_11 = arith.constant 0 : index
      %22 = vector.load %arg10[%c0_10, %c0_11] : memref<128x128xf32, #tpu.memory_space<vmem>>, vector<128x128xf32>
      tpu.vector_store %arg10[%c0_10, %c0_11], %21 {strides = array<i32>} : memref<128x128xf32, #tpu.memory_space<vmem>>, vector<128x128xf32>,
    } else {
    }
    %c128_i32 = arith.constant 128 : i32
    %3 = arith.muli %arg0, %c128_i32 : i32
    %4 = tpu.iota {dimensions = array<i32: 0>} : vector<128x128xi32>
    %5 = vector.broadcast %3 : i32 to vector<128x128xi32>
    %6 = arith.addi %5, %4 : vector<128x128xi32>
    %c0 = arith.constant 0 : index
    %c0_1 = arith.constant 0 : index
    %7 = vector.load %arg2[%c0, %c0_1] : memref<1x128xi32, #tpu.memory_space<vmem>>, vector<1x128xi32>
    %8 = vector.broadcast %7 : vector<1x128xi32> to vector<128x128xi32>
    %9 = arith.cmpi eq, %8, %6 : vector<128x128xi32>
    %10 = arith.extui %9 : vector<128x128xi1> to vector<128x128xi32>
    %11 = arith.sitofp %10 : vector<128x128xi32> to vector<128x128xf32>
    %12 = arith.truncf %11 : vector<128x128xf32> to vector<128x128xbf16>
    %c0_2 = arith.constant 0 : index
    %c0_3 = arith.constant 0 : index
    %13 = vector.load %arg10[%c0_2, %c0_3] : memref<128x128xf32, #tpu.memory_space<vmem>>, vector<128x128xf32>
    %c0_4 = arith.constant 0 : index
    %c0_5 = arith.constant 0 : index
    %14 = vector.load %arg3[%c0_4, %c0_5] : memref<128x128xbf16, #tpu.memory_space<vmem>>, vector<128x128xbf16>
    %cst = arith.constant dense<0.000000e+00> : vector<128x128xf32>
    %15 = tpu.matmul %12, %14, %cst {dimension_numbers = #tpu.dot_dimension_numbers<[1], [0], [0], [1], [0, 0, 1, 1], [], []>} : vector<128x128xbf16>, vector<128x128xbf16>, vector<128x128xf32> -> vector<128x128xf32>
    %16 = arith.addf %13, %15 : vector<128x128xf32>
    %c0_6 = arith.constant 0 : index
    %c0_7 = arith.constant 0 : index
    %17 = vector.load %arg10[%c0_6, %c0_7] : memref<128x128xf32, #tpu.memory_space<vmem>>, vector<128x128xf32>
    tpu.vector_store %arg10[%c0_6, %c0_7], %16 {strides = array<i32>} : memref<128x128xf32, #tpu.memory_space<vmem>>, vector<128x128xf32>,
    %c2_i32 = arith.constant 2 : i32
    %18 = arith.cmpi eq, %arg1, %c2_i32 : i32
    %19 = arith.extui %18 : i1 to i32
    %c0_i32_8 = arith.constant 0 : i32
    %20 = arith.cmpi ne, %19, %c0_i32_8 : i32
    scf.if %20 {
      %c0_9 = arith.constant 0 : index
      %c0_10 = arith.constant 0 : index
      %21 = vector.load %arg10[%c0_9, %c0_10] : memref<128x128xf32, #tpu.memory_space<vmem>>, vector<128x128xf32>
      %c0_11 = arith.constant 0 : index
      %c0_12 = arith.constant 0 : index
      %22 = vector.load %arg4[%c0_11, %c0_12] : memref<128x128xf32, #tpu.memory_space<vmem>>, vector<128x128xf32>
      %c0_13 = arith.constant 0 : index
      %c0_14 = arith.constant 0 : index
      %23 = vector.load %arg5[%c0_13, %c0_14] : memref<1x128xf32, #tpu.memory_space<vmem>>, vector<1x128xf32>
      %24 = vector.broadcast %23 : vector<1x128xf32> to vector<128x128xf32>
      %25 = arith.addf %22, %24 : vector<128x128xf32>
      %cst_15 = arith.constant 0.000000e+00 : f32
      %26 = vector.broadcast %cst_15 : f32 to vector<128x128xf32>
      %27 = arith.maximumf %25, %26 : vector<128x128xf32>
      %c0_16 = arith.constant 0 : index
      %c0_17 = arith.constant 0 : index
      %28 = vector.load %arg6[%c0_16, %c0_17] : memref<128x1xf32, #tpu.memory_space<vmem>>, vector<128x1xf32>
      %29 = vector.broadcast %28 : vector<128x1xf32> to vector<128x128xf32>
      %30 = arith.mulf %27, %29 : vector<128x128xf32>
      %31 = arith.addf %21, %30 : vector<128x128xf32>
      %c0_18 = arith.constant 0 : index
      %c0_19 = arith.constant 0 : index
      %32 = vector.load %arg7[%c0_18, %c0_19] : memref<1x128xf32, #tpu.memory_space<vmem>>, vector<1x128xf32>
      %33 = vector.broadcast %32 : vector<1x128xf32> to vector<128x128xf32>
      %34 = arith.mulf %31, %33 : vector<128x128xf32>
      %c0_20 = arith.constant 0 : index
      %c0_21 = arith.constant 0 : index
      %35 = vector.load %arg8[%c0_20, %c0_21] : memref<1x128xf32, #tpu.memory_space<vmem>>, vector<1x128xf32>
      %36 = vector.broadcast %35 : vector<1x128xf32> to vector<128x128xf32>
      %37 = arith.addf %34, %36 : vector<128x128xf32>
      %cst_22 = arith.constant 0.000000e+00 : f32
      %38 = vector.broadcast %cst_22 : f32 to vector<128x128xf32>
      %39 = arith.maximumf %37, %38 : vector<128x128xf32>
      %c0_23 = arith.constant 0 : index
      %c0_24 = arith.constant 0 : index
      %40 = vector.load %arg9[%c0_23, %c0_24] : memref<128x128xf32, #tpu.memory_space<vmem>>, vector<128x128xf32>
      tpu.vector_store %arg9[%c0_23, %c0_24], %39 {strides = array<i32>} : memref<128x128xf32, #tpu.memory_space<vmem>>, vector<128x128xf32>,
    } else {
    }
    return
  }
  func.func @transform_0(%arg0: i32, %arg1: i32) -> (i32, i32) {
    %c0_i32 = arith.constant 0 : i32
    %c0_i32_0 = arith.constant 0 : i32
    return %c0_i32, %arg1 : i32, i32
  }
  func.func @transform_1(%arg0: i32, %arg1: i32) -> (i32, i32) {
    %c0_i32 = arith.constant 0 : i32
    %c0_i32_0 = arith.constant 0 : i32
    return %arg1, %c0_i32 : i32, i32
  }
  func.func @transform_2(%arg0: i32, %arg1: i32) -> (i32, i32) {
    %c0_i32 = arith.constant 0 : i32
    %c0_i32_0 = arith.constant 0 : i32
    return %arg0, %c0_i32 : i32, i32
  }
  func.func @transform_3(%arg0: i32, %arg1: i32) -> (i32, i32) {
    %c0_i32 = arith.constant 0 : i32
    %c0_i32_0 = arith.constant 0 : i32
    %c0_i32_1 = arith.constant 0 : i32
    return %c0_i32, %c0_i32_0 : i32, i32
  }
  func.func @transform_4(%arg0: i32, %arg1: i32) -> (i32, i32) {
    %c0_i32 = arith.constant 0 : i32
    %c0_i32_0 = arith.constant 0 : i32
    return %arg0, %c0_i32 : i32, i32
  }
  func.func @transform_5(%arg0: i32, %arg1: i32) -> (i32, i32) {
    %c0_i32 = arith.constant 0 : i32
    %c0_i32_0 = arith.constant 0 : i32
    %c0_i32_1 = arith.constant 0 : i32
    return %c0_i32, %c0_i32_0 : i32, i32
  }
  func.func @transform_6(%arg0: i32, %arg1: i32) -> (i32, i32) {
    %c0_i32 = arith.constant 0 : i32
    %c0_i32_0 = arith.constant 0 : i32
    %c0_i32_1 = arith.constant 0 : i32
    return %c0_i32, %c0_i32_0 : i32, i32
  }
  func.func @transform_7(%arg0: i32, %arg1: i32) -> (i32, i32) {
    %c0_i32 = arith.constant 0 : i32
    %c0_i32_0 = arith.constant 0 : i32
    return %arg0, %c0_i32 : i32, i32
  }
}

module attributes {stable_mosaic.version = 11 : i64} {
  func.func @_scatter_kernel(%arg0: i32, %arg1: i32, %arg2: memref<1x128xi32, #tpu.memory_space<vmem>>, %arg3: memref<128x128xbf16, #tpu.memory_space<vmem>>, %arg4: memref<128x128xf32, #tpu.memory_space<vmem>>, %arg5: memref<1x128xf32, #tpu.memory_space<vmem>>, %arg6: memref<128x1xf32, #tpu.memory_space<vmem>>, %arg7: memref<1x128xf32, #tpu.memory_space<vmem>>, %arg8: memref<1x128xf32, #tpu.memory_space<vmem>>, %arg9: memref<128x128xf32, #tpu.memory_space<vmem>>, %arg10: memref<128x128xf32, #tpu.memory_space<vmem>>) attributes {dimension_semantics = [#tpu.dimension_semantics<parallel>, #tpu.dimension_semantics<arbitrary>], iteration_bounds = array<i64: 2, 3>, scalar_prefetch = 0 : i64, scratch_operands = 1 : i64, tpu.core_type = #tpu.core_type<tc>, window_params = [{transform_indices = @transform_0, window_bounds = array<i64: 1, 128>}, {transform_indices = @transform_1, window_bounds = array<i64: 128, 128>}, {transform_indices = @transform_2, window_bounds = array<i64: 128, 128>}, {pipeline_mode = #tpu.pipeline_mode<synchronous>, transform_indices = @transform_3, window_bounds = array<i64: 1, 128>}, {transform_indices = @transform_4, window_bounds = array<i64: 128, 1>}, {pipeline_mode = #tpu.pipeline_mode<synchronous>, transform_indices = @transform_5, window_bounds = array<i64: 1, 128>}, {pipeline_mode = #tpu.pipeline_mode<synchronous>, transform_indices = @transform_6, window_bounds = array<i64: 1, 128>}, {transform_indices = @transform_7, window_bounds = array<i64: 128, 128>}]} {
    %c0_i32 = arith.constant 0 : i32
    %0 = arith.cmpi eq, %arg1, %c0_i32 : i32
    %1 = arith.extui %0 : i1 to i32
    %c0_i32_0 = arith.constant 0 : i32
    %2 = arith.cmpi ne, %1, %c0_i32_0 : i32
    scf.if %2 {
      %cst_9 = arith.constant 0.000000e+00 : f32
      %21 = vector.broadcast %cst_9 : f32 to vector<128x128xf32>
      %c0_10 = arith.constant 0 : index
      %c0_11 = arith.constant 0 : index
      %22 = vector.load %arg10[%c0_10, %c0_11] : memref<128x128xf32, #tpu.memory_space<vmem>>, vector<128x128xf32>
      tpu.vector_store %arg10[%c0_10, %c0_11], %21 {strides = array<i32>} : memref<128x128xf32, #tpu.memory_space<vmem>>, vector<128x128xf32>,
    } else {
    }
    %c128_i32 = arith.constant 128 : i32
    %3 = arith.muli %arg0, %c128_i32 : i32
    %4 = tpu.iota {dimensions = array<i32: 0>} : vector<128x128xi32>
    %5 = vector.broadcast %3 : i32 to vector<128x128xi32>
    %6 = arith.addi %5, %4 : vector<128x128xi32>
    %c0 = arith.constant 0 : index
    %c0_1 = arith.constant 0 : index
    %7 = vector.load %arg2[%c0, %c0_1] : memref<1x128xi32, #tpu.memory_space<vmem>>, vector<1x128xi32>
    %8 = vector.broadcast %7 : vector<1x128xi32> to vector<128x128xi32>
    %9 = arith.cmpi eq, %8, %6 : vector<128x128xi32>
    %10 = arith.extui %9 : vector<128x128xi1> to vector<128x128xi32>
    %11 = arith.sitofp %10 : vector<128x128xi32> to vector<128x128xf32>
    %12 = arith.truncf %11 : vector<128x128xf32> to vector<128x128xbf16>
    %c0_2 = arith.constant 0 : index
    %c0_3 = arith.constant 0 : index
    %13 = vector.load %arg10[%c0_2, %c0_3] : memref<128x128xf32, #tpu.memory_space<vmem>>, vector<128x128xf32>
    %c0_4 = arith.constant 0 : index
    %c0_5 = arith.constant 0 : index
    %14 = vector.load %arg3[%c0_4, %c0_5] : memref<128x128xbf16, #tpu.memory_space<vmem>>, vector<128x128xbf16>
    %cst = arith.constant dense<0.000000e+00> : vector<128x128xf32>
    %15 = tpu.matmul %12, %14, %cst {dimension_numbers = #tpu.dot_dimension_numbers<[1], [0], [0], [1], [0, 0, 1, 1], [], []>} : vector<128x128xbf16>, vector<128x128xbf16>, vector<128x128xf32> -> vector<128x128xf32>
    %16 = arith.addf %13, %15 : vector<128x128xf32>
    %c0_6 = arith.constant 0 : index
    %c0_7 = arith.constant 0 : index
    %17 = vector.load %arg10[%c0_6, %c0_7] : memref<128x128xf32, #tpu.memory_space<vmem>>, vector<128x128xf32>
    tpu.vector_store %arg10[%c0_6, %c0_7], %16 {strides = array<i32>} : memref<128x128xf32, #tpu.memory_space<vmem>>, vector<128x128xf32>,
    %c2_i32 = arith.constant 2 : i32
    %18 = arith.cmpi eq, %arg1, %c2_i32 : i32
    %19 = arith.extui %18 : i1 to i32
    %c0_i32_8 = arith.constant 0 : i32
    %20 = arith.cmpi ne, %19, %c0_i32_8 : i32
    scf.if %20 {
      %c0_9 = arith.constant 0 : index
      %c0_10 = arith.constant 0 : index
      %21 = vector.load %arg10[%c0_9, %c0_10] : memref<128x128xf32, #tpu.memory_space<vmem>>, vector<128x128xf32>
      %c0_11 = arith.constant 0 : index
      %c0_12 = arith.constant 0 : index
      %22 = vector.load %arg4[%c0_11, %c0_12] : memref<128x128xf32, #tpu.memory_space<vmem>>, vector<128x128xf32>
      %c0_13 = arith.constant 0 : index
      %c0_14 = arith.constant 0 : index
      %23 = vector.load %arg5[%c0_13, %c0_14] : memref<1x128xf32, #tpu.memory_space<vmem>>, vector<1x128xf32>
      %24 = vector.broadcast %23 : vector<1x128xf32> to vector<128x128xf32>
      %25 = arith.addf %22, %24 : vector<128x128xf32>
      %cst_15 = arith.constant 0.000000e+00 : f32
      %26 = vector.broadcast %cst_15 : f32 to vector<128x128xf32>
      %27 = arith.maximumf %25, %26 : vector<128x128xf32>
      %c0_16 = arith.constant 0 : index
      %c0_17 = arith.constant 0 : index
      %28 = vector.load %arg6[%c0_16, %c0_17] : memref<128x1xf32, #tpu.memory_space<vmem>>, vector<128x1xf32>
      %29 = vector.broadcast %28 : vector<128x1xf32> to vector<128x128xf32>
      %30 = arith.mulf %27, %29 : vector<128x128xf32>
      %31 = arith.addf %21, %30 : vector<128x128xf32>
      %c0_18 = arith.constant 0 : index
      %c0_19 = arith.constant 0 : index
      %32 = vector.load %arg7[%c0_18, %c0_19] : memref<1x128xf32, #tpu.memory_space<vmem>>, vector<1x128xf32>
      %33 = vector.broadcast %32 : vector<1x128xf32> to vector<128x128xf32>
      %34 = arith.mulf %31, %33 : vector<128x128xf32>
      %c0_20 = arith.constant 0 : index
      %c0_21 = arith.constant 0 : index
      %35 = vector.load %arg8[%c0_20, %c0_21] : memref<1x128xf32, #tpu.memory_space<vmem>>, vector<1x128xf32>
      %36 = vector.broadcast %35 : vector<1x128xf32> to vector<128x128xf32>
      %37 = arith.addf %34, %36 : vector<128x128xf32>
      %c0_22 = arith.constant 0 : index
      %c0_23 = arith.constant 0 : index
      %38 = vector.load %arg9[%c0_22, %c0_23] : memref<128x128xf32, #tpu.memory_space<vmem>>, vector<128x128xf32>
      tpu.vector_store %arg9[%c0_22, %c0_23], %37 {strides = array<i32>} : memref<128x128xf32, #tpu.memory_space<vmem>>, vector<128x128xf32>,
    } else {
    }
    return
  }
  func.func @transform_0(%arg0: i32, %arg1: i32) -> (i32, i32) {
    %c0_i32 = arith.constant 0 : i32
    %c0_i32_0 = arith.constant 0 : i32
    return %c0_i32, %arg1 : i32, i32
  }
  func.func @transform_1(%arg0: i32, %arg1: i32) -> (i32, i32) {
    %c0_i32 = arith.constant 0 : i32
    %c0_i32_0 = arith.constant 0 : i32
    return %arg1, %c0_i32 : i32, i32
  }
  func.func @transform_2(%arg0: i32, %arg1: i32) -> (i32, i32) {
    %c0_i32 = arith.constant 0 : i32
    %c0_i32_0 = arith.constant 0 : i32
    return %arg0, %c0_i32 : i32, i32
  }
  func.func @transform_3(%arg0: i32, %arg1: i32) -> (i32, i32) {
    %c0_i32 = arith.constant 0 : i32
    %c0_i32_0 = arith.constant 0 : i32
    %c0_i32_1 = arith.constant 0 : i32
    return %c0_i32, %c0_i32_0 : i32, i32
  }
  func.func @transform_4(%arg0: i32, %arg1: i32) -> (i32, i32) {
    %c0_i32 = arith.constant 0 : i32
    %c0_i32_0 = arith.constant 0 : i32
    return %arg0, %c0_i32 : i32, i32
  }
  func.func @transform_5(%arg0: i32, %arg1: i32) -> (i32, i32) {
    %c0_i32 = arith.constant 0 : i32
    %c0_i32_0 = arith.constant 0 : i32
    %c0_i32_1 = arith.constant 0 : i32
    return %c0_i32, %c0_i32_0 : i32, i32
  }
  func.func @transform_6(%arg0: i32, %arg1: i32) -> (i32, i32) {
    %c0_i32 = arith.constant 0 : i32
    %c0_i32_0 = arith.constant 0 : i32
    %c0_i32_1 = arith.constant 0 : i32
    return %c0_i32, %c0_i32_0 : i32, i32
  }
  func.func @transform_7(%arg0: i32, %arg1: i32) -> (i32, i32) {
    %c0_i32 = arith.constant 0 : i32
    %c0_i32_0 = arith.constant 0 : i32
    return %arg0, %c0_i32 : i32, i32
  }
}

module attributes {stable_mosaic.version = 11 : i64} {
  func.func @_pool_out_kernel(%arg0: memref<256x128xf32, #tpu.memory_space<vmem>>, %arg1: memref<8x256xf32, #tpu.memory_space<vmem>>, %arg2: memref<128x128xf32, #tpu.memory_space<vmem>>, %arg3: memref<1x128xf32, #tpu.memory_space<vmem>>, %arg4: memref<8x128xf32, #tpu.memory_space<vmem>>) attributes {dimension_semantics = [], scalar_prefetch = 0 : i64, scratch_operands = 0 : i64, tpu.core_type = #tpu.core_type<tc>} {
    %c0 = arith.constant 0 : index
    %c0_0 = arith.constant 0 : index
    %0 = vector.load %arg1[%c0, %c0_0] : memref<8x256xf32, #tpu.memory_space<vmem>>, vector<8x256xf32>
    %c0_1 = arith.constant 0 : index
    %c0_2 = arith.constant 0 : index
    %1 = vector.load %arg0[%c0_1, %c0_2] : memref<256x128xf32, #tpu.memory_space<vmem>>, vector<256x128xf32>
    %cst = arith.constant dense<0.000000e+00> : vector<8x128xf32>
    %2 = tpu.matmul %0, %1, %cst {dimension_numbers = #tpu.dot_dimension_numbers<[1], [0], [0], [1], [0, 0, 1, 1], [], []>} : vector<8x256xf32>, vector<256x128xf32>, vector<8x128xf32> -> vector<8x128xf32>
    %c0_3 = arith.constant 0 : index
    %c0_4 = arith.constant 0 : index
    %3 = vector.load %arg2[%c0_3, %c0_4] : memref<128x128xf32, #tpu.memory_space<vmem>>, vector<128x128xf32>
    %cst_5 = arith.constant dense<0.000000e+00> : vector<8x128xf32>
    %4 = tpu.matmul %2, %3, %cst_5 {dimension_numbers = #tpu.dot_dimension_numbers<[1], [0], [0], [1], [0, 0, 1, 1], [], []>} : vector<8x128xf32>, vector<128x128xf32>, vector<8x128xf32> -> vector<8x128xf32>
    %c0_6 = arith.constant 0 : index
    %c0_7 = arith.constant 0 : index
    %5 = vector.load %arg3[%c0_6, %c0_7] : memref<1x128xf32, #tpu.memory_space<vmem>>, vector<1x128xf32>
    %6 = vector.broadcast %5 : vector<1x128xf32> to vector<8x128xf32>
    %7 = arith.addf %4, %6 : vector<8x128xf32>
    %c0_8 = arith.constant 0 : index
    %c0_9 = arith.constant 0 : index
    %8 = vector.load %arg4[%c0_8, %c0_9] : memref<8x128xf32, #tpu.memory_space<vmem>>, vector<8x128xf32>
    tpu.vector_store %arg4[%c0_8, %c0_9], %7 {strides = array<i32>} : memref<8x128xf32, #tpu.memory_space<vmem>>, vector<8x128xf32>,
    return
  }
}

</mosaic_0001>

<bundles_post_ra>
// kernel: mul.6
= control target key start
LH: loop header
LB: loop body
LE: loop exit
PB: predicated region body
PF: predicated region fallthrough
CT: control target
= control target key end

     0   :  { %s34_s0 = inlined_call_operand.vmem [shape: f32[320], index: 0, kind: input, shape index: {}]   ;;  %s35_s1 = inlined_call_operand.vmem [shape: f32[320], index: 1, kind: input, shape index: {}]   ;;  %s36_s2 = inlined_call_operand.vmem [shape: f32[320], index: 2, kind: output, shape index: {}]  }
   0x1   :  { %v3_v0 = vld [vmem:[%s34_s0] sm:$0x7] }
   0x2   :  { %v4_v1 = vld [vmem:[%s35_s1] sm:$0x7] }
   0x3   :  { %v7_v2 = vmul.f32 %v4_v1, %v3_v0 }
   0x5   :  { %9 = vst [vmem:[%s36_s2] sm:$0xf] %v7_v2 }

// kernel: egnn_forward.10
= control target key start
LH: loop header
LB: loop body
LE: loop exit
PB: predicated region body
PF: predicated region fallthrough
CT: control target
= control target key end

     0   :  { %s511_s12 = smov 0   ;;  %s622_s0 = inlined_call_operand.vmem [shape: f32[256,128], index: 0, kind: input, shape index: {}]   ;;  %s623_s1 = inlined_call_operand.vmem [shape: f32[128,128], index: 1, kind: input, shape index: {}]   ;;  %s624_s2 = inlined_call_operand.vmem [shape: f32[1,128], index: 2, kind: input, shape index: {}]   ;;  %s625_s3 = inlined_call_operand.vmem [shape: f32[256,128], index: 3, kind: output, shape index: {}]  }
   0x1 LB: > { %s399_s13 = sadd.s32 4294967295, %s489_s12   ;;  %p403_p0 = scmp.ge.s32.totalorder %s489_s12, 1  ;;  %s489_s12 = sphi %s511_s12, %s13_s12  }
   0x2   : > { %p138_p1 = scmp.lt.s32.totalorder %s489_s12, 3 }
   0x4   : > { %p139_p2 = pnand %p403_p0, %p138_p1 }
   0x5   : > { %v199_v0 = vld [vmem:[%s623_s1] sm:$0xff] (!%p139_p2)  ;;  %v200_v1 = vld [vmem:[%s623_s1 + $0x8] sm:$0xff] (!%p139_p2)  ;;  %v201_v2 = vld [vmem:[%s623_s1 + $0x10] sm:$0xff] (!%p139_p2)  ;;  %s404_s20 = sshll.u32 (!%p139_p2), %s399_s13, 4 }
   0x6   : > { %142 = sbr.rel (%p139_p2) target bundleno = 266 (0x10a), region = 32  ;;  %v215_v3 = vpack.c.bf16 (!%p139_p2), %v200_v1, %v199_v0  ;;  %v202_v4 = vld [vmem:[%s623_s1 + $0x18] sm:$0xff] (!%p139_p2)  ;;  %p163_p3 = scmp.lt.s32.totalorder (!%p139_p2), %s404_s20, 31  ;;  %v203_v6 = vld [vmem:[%s623_s1 + $0x20] sm:$0xff] (!%p139_p2)  ;;  %v204_v7 = vld [vmem:[%s623_s1 + $0x28] sm:$0xff] (!%p139_p2) }
   0x7   : > { %v216_v5 = vpack.c.bf16 (!%p139_p2), %v202_v4, %v201_v2  ;;  %v217_v8 = vpack.c.bf16 (!%p139_p2), %v204_v7, %v203_v6  ;;  %v205_v9 = vld [vmem:[%s623_s1 + $0x30] sm:$0xff] (!%p139_p2)  ;;  %v206_v10 = vld [vmem:[%s623_s1 + $0x38] sm:$0xff] (!%p139_p2)  ;;  %v207_v18 = vld [vmem:[%s623_s1 + $0x40] sm:$0xff] (!%p139_p2) }
   0x8   : > { %427 = vmatprep.subr.bf16.mxu0 (!%p139_p2), %v215_v3  ;;  %459 = vmatprep.subr.bf16.mxu1 (!%p139_p2), %v215_v3  ;;  %v218_v16 = vpack.c.bf16 (!%p139_p2), %v206_v10, %v205_v9  ;;  %v208_v19 = vld [vmem:[%s623_s1 + $0x48] sm:$0xff] (!%p139_p2)  ;;  %v209_v21 = vld [vmem:[%s623_s1 + $0x50] sm:$0xff] (!%p139_p2)  ;;  %v210_v22 = vld [vmem:[%s623_s1 + $0x58] sm:$0xff] (!%p139_p2) }
   0x9   : > { %428 = vmatpush3.bf16.msra.mxu0 (!%p139_p2), %v215_v3  ;;  %467 = vmatpush3.bf16.msra.mxu1 (!%p139_p2), %v215_v3  ;;  %v219_v20 = vpack.c.bf16 (!%p139_p2), %v208_v19, %v207_v18  ;;  %v220_v23 = vpack.c.bf16 (!%p139_p2), %v210_v22, %v209_v21  ;;  %v211_v24 = vld [vmem:[%s623_s1 + $0x60] sm:$0xff] (!%p139_p2)  ;;  %v212_v25 = vld [vmem:[%s623_s1 + $0x68] sm:$0xff] (!%p139_p2)  ;;  %v213_v27 = vld [vmem:[%s623_s1 + $0x70] sm:$0xff] (!%p139_p2) }
   0xa   : > { %429 = vmatprep.subr.bf16.mxu0 (!%p139_p2), %v216_v5  ;;  %460 = vmatprep.subr.bf16.mxu1 (!%p139_p2), %v216_v5  ;;  %v221_v26 = vpack.c.bf16 (!%p139_p2), %v212_v25, %v211_v24  ;;  %v214_v28 = vld [vmem:[%s623_s1 + $0x78] sm:$0xff] (!%p139_p2)  ;;  %v408_v48 = vld [vmem:[%s624_s2] ss:$0 sm:$0xff] (!%p139_p2) }
   0xb   : > { %v222_v29 = vpack.c.bf16 (!%p139_p2), %v214_v28, %v213_v27 }
   0xd   : > { %s627_s20 = smov (!%p163_p3, %s404_s20), 31  ;;  %430 = vmatpush3.bf16.msra.mxu0 %v216_v5  ;;  %468 = vmatpush3.bf16.msra.mxu1 %v216_v5 }
   0xe   : > { %s405_s27 = sshll.u32 %s627_s20, 3  ;;  %431 = vmatprep.subr.bf16.mxu0 %v217_v8  ;;  %461 = vmatprep.subr.bf16.mxu1 %v217_v8 }
   0xf   : > { %s551_s7 = scalar_lea.vmem %s622_s0, %s405_s27  ;;  %s601_s4 = scalar_lea.vmem %s625_s3, %s405_s27 }
  0x10   : > { %v175_v11 = vld [vmem:[%s551_s7] sm:$0xff]  ;;  %v176_v12 = vld [vmem:[%s551_s7 + $0x8] sm:$0xff]  ;;  %v177_v30 = vld [vmem:[%s551_s7 + $0x10] sm:$0xff] }
  0x11   : > { %v183_v13 = vld [vmem:[%s551_s7 + $0x40] sm:$0xff]  ;;  %v191_v14 = vpack.c.bf16 %v176_v12, %v175_v11  ;;  %v184_v15 = vld [vmem:[%s551_s7 + $0x48] sm:$0xff]  ;;  %432 = vmatpush3.bf16.msra.mxu0 %v217_v8  ;;  %469 = vmatpush3.bf16.msra.mxu1 %v217_v8  ;;  %v178_v31 = vld [vmem:[%s551_s7 + $0x18] sm:$0xff] }
  0x12   : > { %v195_v17 = vpack.c.bf16 %v184_v15, %v183_v13  ;;  %433 = vmatprep.subr.bf16.mxu0 %v218_v16  ;;  %462 = vmatprep.subr.bf16.mxu1 %v218_v16  ;;  %v185_v32 = vld [vmem:[%s551_s7 + $0x50] sm:$0xff]  ;;  %v186_v33 = vld [vmem:[%s551_s7 + $0x58] sm:$0xff]  ;;  %v179_v34 = vld [vmem:[%s551_s7 + $0x20] sm:$0xff]  ;;  %v192_v38 = vpack.c.bf16 %v178_v31, %v177_v30 }
  0x13   : > { %443 = vmatprep.mubr.bf16.mxu0 %v191_v14  ;;  %v180_v35 = vld [vmem:[%s551_s7 + $0x28] sm:$0xff]  ;;  %v187_v36 = vld [vmem:[%s551_s7 + $0x60] sm:$0xff]  ;;  %v196_v39 = vpack.c.bf16 %v186_v33, %v185_v32  ;;  %v181_v42 = vld [vmem:[%s551_s7 + $0x30] sm:$0xff] }
  0x14   : > { %451 = vmatprep.mubr.bf16.mxu1 %v195_v17  ;;  %v188_v37 = vld [vmem:[%s551_s7 + $0x68] sm:$0xff]  ;;  %v193_v40 = vpack.c.bf16 %v180_v35, %v179_v34  ;;  %v182_v43 = vld [vmem:[%s551_s7 + $0x38] sm:$0xff]  ;;  %v189_v44 = vld [vmem:[%s551_s7 + $0x70] sm:$0xff] }
  0x15   : > { %434 = vmatpush3.bf16.msra.mxu0 %v218_v16  ;;  %470 = vmatpush3.bf16.msra.mxu1 %v218_v16  ;;  %v197_v41 = vpack.c.bf16 %v188_v37, %v187_v36  ;;  %v190_v45 = vld [vmem:[%s551_s7 + $0x78] sm:$0xff]  ;;  %v194_v46 = vpack.c.bf16 %v182_v43, %v181_v42 }
  0x16   : > { %435 = vmatprep.subr.bf16.mxu0 %v219_v20  ;;  %463 = vmatprep.subr.bf16.mxu1 %v219_v20  ;;  %v198_v47 = vpack.c.bf16 %v190_v45, %v189_v44 }
  0x19   : > { %436 = vmatpush3.bf16.msra.mxu0 %v219_v20  ;;  %471 = vmatpush3.bf16.msra.mxu1 %v219_v20 }
  0x1a   : > { %437 = vmatprep.subr.bf16.mxu0 %v220_v23  ;;  %464 = vmatprep.subr.bf16.mxu1 %v220_v23 }
  0x1d   : > { %438 = vmatpush3.bf16.msra.mxu0 %v220_v23  ;;  %472 = vmatpush3.bf16.msra.mxu1 %v220_v23 }
  0x1e   : > { %439 = vmatprep.subr.bf16.mxu0 %v221_v26  ;;  %465 = vmatprep.subr.bf16.mxu1 %v221_v26 }
  0x21   : > { %440 = vmatpush3.bf16.msra.mxu0 %v221_v26  ;;  %473 = vmatpush3.bf16.msra.mxu1 %v221_v26 }
  0x22   : > { %441 = vmatprep.subr.bf16.mxu0 %v222_v29  ;;  %466 = vmatprep.subr.bf16.mxu1 %v222_v29 }
  0x25   : > { %442 = vmatpush3.bf16.msra.mxu0 %v222_v29  ;;  %474 = vmatpush3.bf16.msra.mxu1 %v222_v29 }
  0x28   : > { %444 = vmatmul.mubr.bf16.vlgmr.msra.gmra.mrb[0].mxu0 %v192_v38  ;;  %452 = vmatmul.mubr.bf16.vlgmr.msra.gmra.mrb[0].mxu1 %v196_v39 }
  0x29   : > { %447 = vmatprep.mubr.bf16.mxu0 %v193_v40  ;;  %455 = vmatprep.mubr.bf16.mxu1 %v197_v41 }
  0x30   : > { %448 = vmatmul.mubr.bf16.gmra.mrb[4].mxu0 %v194_v46  ;;  %456 = vmatmul.mubr.bf16.gmra.mrb[4].mxu1 %v198_v47 }
  0xfb   : > { %v445_v49 = vpop.f32.mrb[0].mxu0  ;;  %v453_v50 = vpop.f32.mrb[0].mxu1 }
  0xfc   : > { %v273_v51 = vadd.f32 %v445_v49, %v408_v48  ;;  %v305_v52 = vadd.f32 %v453_v50, %v408_v48  ;;  %v264_v53 = vpop.f32.mrb[1].mxu0  ;;  %v296_v54 = vpop.f32.mrb[1].mxu1 }
  0xfd   : > { %v265_v55 = vadd.f32 %v408_v48, %v264_v53  ;;  %v297_v56 = vadd.f32 %v408_v48, %v296_v54  ;;  %v446_v57 = vpop.f32.mrb[2].mxu0  ;;  %v454_v58 = vpop.f32.mrb[2].mxu1 }
  0xfe   : > { %329 = vst [vmem:[%s601_s4 + $0x10] sm:$0xff] %v273_v51  ;;  %337 = vst [vmem:[%s601_s4 + $0x50] sm:$0xff] %v305_v52  ;;  %v276_v59 = vadd.f32 %v446_v57, %v408_v48  ;;  %v308_v60 = vadd.f32 %v454_v58, %v408_v48  ;;  %v267_v61 = vpop.f32.mrb[3].mxu0  ;;  %v299_v62 = vpop.f32.mrb[3].mxu1 }
  0xff   : > { %327 = vst [vmem:[%s601_s4] sm:$0xff] %v265_v55  ;;  %335 = vst [vmem:[%s601_s4 + $0x40] sm:$0xff] %v297_v56  ;;  %v268_v63 = vadd.f32 %v408_v48, %v267_v61  ;;  %v300_v0 = vadd.f32 %v408_v48, %v299_v62 }
 0x100   : > { %330 = vst [vmem:[%s601_s4 + $0x18] sm:$0xff] %v276_v59  ;;  %338 = vst [vmem:[%s601_s4 + $0x58] sm:$0xff] %v308_v60 }
 0x101   : > { %328 = vst [vmem:[%s601_s4 + $0x8] sm:$0xff] %v268_v63  ;;  %336 = vst [vmem:[%s601_s4 + $0x48] sm:$0xff] %v300_v0 }
 0x103   : > { %v449_v1 = vpop.f32.mrb[4].mxu0  ;;  %v457_v2 = vpop.f32.mrb[4].mxu1 }
 0x104   : > { %v289_v3 = vadd.f32 %v449_v1, %v408_v48  ;;  %v321_v4 = vadd.f32 %v457_v2, %v408_v48  ;;  %v280_v5 = vpop.f32.mrb[5].mxu0  ;;  %v312_v6 = vpop.f32.mrb[5].mxu1 }
 0x105   : > { %v281_v7 = vadd.f32 %v408_v48, %v280_v5  ;;  %v313_v8 = vadd.f32 %v408_v48, %v312_v6  ;;  %v450_v9 = vpop.f32.mrb[6].mxu0  ;;  %v458_v10 = vpop.f32.mrb[6].mxu1 }
 0x106   : > { %333 = vst [vmem:[%s601_s4 + $0x30] sm:$0xff] %v289_v3  ;;  %341 = vst [vmem:[%s601_s4 + $0x70] sm:$0xff] %v321_v4  ;;  %v292_v11 = vadd.f32 %v450_v9, %v408_v48  ;;  %v324_v12 = vadd.f32 %v458_v10, %v408_v48  ;;  %v283_v13 = vpop.f32.mrb[7].mxu0  ;;  %v315_v14 = vpop.f32.mrb[7].mxu1 }
 0x107   : > { %331 = vst [vmem:[%s601_s4 + $0x20] sm:$0xff] %v281_v7  ;;  %339 = vst [vmem:[%s601_s4 + $0x60] sm:$0xff] %v313_v8  ;;  %v284_v15 = vadd.f32 %v408_v48, %v283_v13  ;;  %v316_v16 = vadd.f32 %v408_v48, %v315_v14 }
 0x108   : > { %334 = vst [vmem:[%s601_s4 + $0x38] sm:$0xff] %v292_v11  ;;  %342 = vst [vmem:[%s601_s4 + $0x78] sm:$0xff] %v324_v12 }
 0x109   : > { %332 = vst [vmem:[%s601_s4 + $0x28] sm:$0xff] %v284_v15  ;;  %340 = vst [vmem:[%s601_s4 + $0x68] sm:$0xff] %v316_v16 }
 0x10a PF: > { %s13_s12 = sadd.s32 1, %s489_s12  }
 0x10b   : > { %p10_p4 = scmp.ge.s32.totalorder %s13_s12, 4  }
 0x10d   :  { %12 = sbr.rel (!%p10_p4) target bundleno = 1 (0x1), region = 62 }

// kernel: egnn_forward.11
= control target key start
LH: loop header
LB: loop body
LE: loop exit
PB: predicated region body
PF: predicated region fallthrough
CT: control target
= control target key end

     0   :  { %s1786_s0 = inlined_call_operand.vmem [shape: s32[384], index: 0, kind: input, shape index: {}]   ;;  %s1787_s1 = inlined_call_operand.vmem [shape: f32[256,128], index: 1, kind: input, shape index: {}]   ;;  %s1788_s2 = inlined_call_operand.vmem [shape: f32[384,8], index: 2, kind: input, shape index: {}]   ;;  %s1789_s3 = inlined_call_operand.vmem [shape: f32[8,128], index: 3, kind: input, shape index: {}]   ;;  %s1790_s4 = inlined_call_operand.vmem [shape: f32[1,128], index: 4, kind: input, shape index: {}]   ;;  %s1791_s5 = inlined_call_operand.vmem [shape: s32[384,1], index: 5, kind: input, shape index: {}]   ;;  %s1792_s6 = inlined_call_operand.vmem [shape: f32[384,1], index: 6, kind: input, shape index: {}]   ;;  %s1793_s7 = inlined_call_operand.vmem [shape: bf16[384,128], index: 7, kind: output, shape index: {}]  }
   0x1   :  { %s12_s26 = sshll.u32 %s1786_s0, 4  ;;  %s13_s26 = int_to_ptr.vmem [resolvable:$true] %s12_s26 }
   0x2   :  { %s1366_s27 = scalar_lea.vmem %s13_s26, 48  ;;  %s1370_s28 = scalar_lea.vmem %s13_s26, 64 }
   0x3   :  { %p1367_p0 = scmp.ne.s32.totalorder %s13_s26, %s1366_s27  ;;  %p1371_p1 = scmp.lt.s32.totalorder %s13_s26, %s13_s26 }
   0x4   :  { %p1372_p2 = scmp.lt.s32.totalorder %s1370_s28, %s1366_s27 }
   0x6   :  { %p1373_p3 = por %p1372_p2, %p1371_p1 }
   0x8   :  { %p1374_p4 = pnand %p1373_p3, %p1367_p0 }
   0xa   :  { %1377 = shalt.err (!%p1374_p4)  }
   0xb   :  { %s1388_s29 = smov [#allocation4]  }
   0xc   :  { %15 = dma.vmem_to_smem %s13_s26, 48, %s1388_s29, [#allocation3] }
   0xd   :  { %1382 = dma.done.wait [#allocation3], 48 }
   0xe   :  { %1383 = vsyncadd [#allocation3], 4294967248 }
   0xf   :  { %17 = sfence }
  0x10   :  { %s1434_s30 = smov 0  }
  0x11 LB: > { %s1078_s0 = sadd.s32 4294967295, %s1386_s30   ;;  %p1082_p5 = scmp.ge.s32.totalorder %s1386_s30, 1  ;;  %s1386_s30 = sphi %s1434_s30, %s23_s30  }
  0x12   : > { %p242_p6 = scmp.lt.s32.totalorder %s1386_s30, 4 }
  0x14   : > { %p243_p7 = pnand %p1082_p5, %p242_p6 }
  0x15   : > { %s1083_s8 = sshll.u32 (!%p243_p7), %s1078_s0, 4  ;;  %v331_v0 = vld [vmem:[%s1789_s3] sm:$0xff] (!%p243_p7)  ;;  %vm365_vm0 = vcmask (!%p243_p7), 1043456   ;;  %v662_v2 = vld [vmem:[%s1787_s1 + $0x88] sm:$0xff] (!%p243_p7)  ;;  %v1389_v3 = vmov (!%p243_p7), 0   ;;  %v663_v8 = vld [vmem:[%s1787_s1 + $0x90] sm:$0xff] (!%p243_p7) }
  0x16   : > { %246 = sbr.rel (%p243_p7) target bundleno = 428 (0x1ac), region = 44  ;;  %v661_v1 = vld [vmem:[%s1787_s1 + $0x80] sm:$0xff] (!%p243_p7)  ;;  %1365 = vset.pattern.permute.xlu1 (!%p243_p7), %v1389_v3  ;;  %1364 = vset.pattern.permute.xlu0 (!%p243_p7), %v1389_v3  ;;  %p283_p8 = scmp.lt.s32.totalorder (!%p243_p7), %s1083_s8, 47  ;;  %v332_v4 = vpack.c.bf16 (!%p243_p7), %v331_v0, %v331_v0  ;;  %v646_v7 = vld [vmem:[%s1787_s1 + $0x8] sm:$0xff] (!%p243_p7)  ;;  %v664_v10 = vld [vmem:[%s1787_s1 + $0x98] sm:$0xff] (!%p243_p7)  ;;  %vm340_vm1 = vcmask (!%p243_p7), 64512  }
  0x17   : > { %v685_v5 = vpack.c.bf16 (!%p243_p7), %v662_v2, %v661_v1  ;;  %v645_v6 = vld [vmem:[%s1787_s1] sm:$0xff] (!%p243_p7)  ;;  %v647_v11 = vld [vmem:[%s1787_s1 + $0x10] sm:$0xff] (!%p243_p7)  ;;  %v648_v12 = vld [vmem:[%s1787_s1 + $0x18] sm:$0xff] (!%p243_p7)  ;;  %v1475_v14 = vpack.c.bf16 (!%p243_p7), %v664_v10, %v663_v8 }
  0x18   : > { %v1460_v9 = vpack.c.bf16 (!%p243_p7), %v646_v7, %v645_v6  ;;  %1352 = vmatprep.subr.msk.bf16.mxu0 (!%p243_p7), %vm365_vm0, %v332_v4  ;;  %v367_v13 = vsel (!%p243_p7), %vm365_vm0, %v332_v4, 0  ;;  %v665_v15 = vld [vmem:[%s1787_s1 + $0xa0] sm:$0xff] (!%p243_p7)  ;;  %v666_v16 = vld [vmem:[%s1787_s1 + $0xa8] sm:$0xff] (!%p243_p7)  ;;  %v1488_v17 = vpack.c.bf16 (!%p243_p7), %v648_v12, %v647_v11  ;;  %v667_v21 = vld [vmem:[%s1787_s1 + $0xb0] sm:$0xff] (!%p243_p7) }
  0x19   : > { %1336 = vmatprep.subr.bf16.mxu1 (!%p243_p7), %v685_v5  ;;  %1319 = vmatpush3.bf16.msra.mxu0 (!%p243_p7), %v367_v13  ;;  %v1496_v18 = vpack.c.bf16 (!%p243_p7), %v666_v16, %v665_v15  ;;  %v649_v19 = vld [vmem:[%s1787_s1 + $0x20] sm:$0xff] (!%p243_p7)  ;;  %v650_v20 = vld [vmem:[%s1787_s1 + $0x28] sm:$0xff] (!%p243_p7)  ;;  %v668_v24 = vld [vmem:[%s1787_s1 + $0xb8] sm:$0xff] (!%p243_p7) }
  0x1a   : > { %1344 = vmatpush3.bf16.msra.mxu1 (!%p243_p7), %v1460_v9  ;;  %1254 = vmatprep.subr.bf16.mxu0 (!%p243_p7), %v685_v5  ;;  %v1515_v27 = vpack.c.bf16 (!%p243_p7), %v650_v20, %v649_v19  ;;  %v1518_v28 = vpack.c.bf16 (!%p243_p7), %v668_v24, %v667_v21  ;;  %v651_v29 = vld [vmem:[%s1787_s1 + $0x30] sm:$0xff] (!%p243_p7)  ;;  %v652_v30 = vld [vmem:[%s1787_s1 + $0x38] sm:$0xff] (!%p243_p7)  ;;  %v669_v31 = vld [vmem:[%s1787_s1 + $0xc0] sm:$0xff] (!%p243_p7) }
  0x1b   : > { %1337 = vmatprep.subr.bf16.mxu1 (!%p243_p7), %v1475_v14  ;;  %v670_v32 = vld [vmem:[%s1787_s1 + $0xc8] sm:$0xff] (!%p243_p7)  ;;  %v1535_v35 = vpack.c.bf16 (!%p243_p7), %v652_v30, %v651_v29  ;;  %v653_v37 = vld [vmem:[%s1787_s1 + $0x40] sm:$0xff] (!%p243_p7)  ;;  %v671_v55 = vld [vmem:[%s1787_s1 + $0xd0] sm:$0xff] (!%p243_p7) }
  0x1c   : > { %v1544_v36 = vpack.c.bf16 (!%p243_p7), %v670_v32, %v669_v31  ;;  %v654_v38 = vld [vmem:[%s1787_s1 + $0x48] sm:$0xff] (!%p243_p7)  ;;  %v672_v56 = vld [vmem:[%s1787_s1 + $0xd8] sm:$0xff] (!%p243_p7)  ;;  %v655_v57 = vld [vmem:[%s1787_s1 + $0x50] sm:$0xff] (!%p243_p7) }
  0x1d   : > { %s1797_s8 = smov (!%p283_p8, %s1083_s8), 47  ;;  %v1556_v42 = vpack.c.bf16 %v654_v38, %v653_v37  ;;  %v656_v58 = vld [vmem:[%s1787_s1 + $0x58] sm:$0xff]  ;;  %v1585_v59 = vpack.c.bf16 %v672_v56, %v671_v55  ;;  %v673_v61 = vld [vmem:[%s1787_s1 + $0xe0] sm:$0xff]  ;;  %v674_v62 = vld [vmem:[%s1787_s1 + $0xe8] sm:$0xff] }
  0x1e   : > { %s1485_s9 = sshll.u32 %s1797_s8, 3  ;;  %1345 = vmatpush3.bf16.msra.mxu1 %v1488_v17  ;;  %v1587_v60 = vpack.c.bf16 %v656_v58, %v655_v57  ;;  %v657_v63 = vld [vmem:[%s1787_s1 + $0x60] sm:$0xff]  ;;  %v691_v2 = vpack.c.bf16 %v674_v62, %v673_v61  ;;  %v658_v3 = vld [vmem:[%s1787_s1 + $0x68] sm:$0xff]  ;;  %v675_v8 = vld [vmem:[%s1787_s1 + $0xf0] sm:$0xff] }
  0x1f   : > { %s1494_s12 = scalar_lea.vmem %s1791_s5, %s1485_s9  ;;  %1338 = vmatprep.subr.bf16.mxu1 %v1496_v18  ;;  %s1541_s10 = scalar_lea.vmem %s1788_s2, %s1485_s9  ;;  %v683_v7 = vpack.c.bf16 %v658_v3, %v657_v63  ;;  %v659_v11 = vld [vmem:[%s1787_s1 + $0x70] sm:$0xff]  ;;  %v660_v12 = vld [vmem:[%s1787_s1 + $0x78] sm:$0xff] }
  0x20   : > { %v474_v22 = vld [vmem:[%s1494_s12 + $0x40] sm:$0xff]  ;;  %v472_v23 = vld [vmem:[%s1494_s12 + $0x30] sm:$0xff]  ;;  %v475_v25 = vld [vmem:[%s1494_s12 + $0x48] sm:$0xff]  ;;  %v684_v16 = vpack.c.bf16 %v660_v12, %v659_v11  ;;  %s1638_s23 = scalar_lea.vmem %s1792_s6, %s1485_s9 }
  0x21   : > { %510 = vperm.xlu1 %1365, %v474_v22   ;;  %504 = vperm.xlu0 %1364, %v472_v23   ;;  %v473_v26 = vld [vmem:[%s1494_s12 + $0x38] sm:$0xff]  ;;  %v467_v33 = vld [vmem:[%s1494_s12 + $0x8] sm:$0xff]  ;;  %v466_v34 = vld [vmem:[%s1494_s12] sm:$0xff] }
  0x22   : > { %1346 = vmatpush3.bf16.msra.mxu1 %v1515_v27  ;;  %v477_v39 = vld [vmem:[%s1494_s12 + $0x58] sm:$0xff]  ;;  %v476_v40 = vld [vmem:[%s1494_s12 + $0x50] sm:$0xff]  ;;  %v307_v41 = vld [vmem:[%s1541_s10] sm:$0xff] }
  0x23   : > { %1339 = vmatprep.subr.bf16.mxu1 %v1518_v28  ;;  %v308_v43 = vld [vmem:[%s1541_s10 + $0x8] sm:$0xff]  ;;  %v309_v44 = vld [vmem:[%s1541_s10 + $0x10] sm:$0xff]  ;;  %v310_v45 = vld [vmem:[%s1541_s10 + $0x18] sm:$0xff] }
  0x24   : > { %v323_v46 = vpack.c.bf16 %v308_v43, %v307_v41  ;;  %v324_v47 = vpack.c.bf16 %v310_v45, %v309_v44  ;;  %v311_v48 = vld [vmem:[%s1541_s10 + $0x20] sm:$0xff]  ;;  %v312_v49 = vld [vmem:[%s1541_s10 + $0x28] sm:$0xff]  ;;  %v469_v50 = vld [vmem:[%s1494_s12 + $0x18] sm:$0xff]  ;;  %v482_v44 = vlaneseq }
  0x25   : > { %513 = vperm.xlu1 %1365, %v475_v25   ;;  %507 = vperm.xlu0 %1364, %v473_v26   ;;  %v468_v51 = vld [vmem:[%s1494_s12 + $0x10] sm:$0xff]  ;;  %v325_v52 = vpack.c.bf16 %v312_v49, %v311_v48  ;;  %v314_v54 = vld [vmem:[%s1541_s10 + $0x38] sm:$0xff]  ;;  %v315_v0 = vld [vmem:[%s1541_s10 + $0x40] sm:$0xff] }
  0x26   : > { %1347 = vmatpush3.bf16.msra.mxu1 %v1535_v35  ;;  %1320 = vmatprep.mubr.msk.bf16.mxu0 %vm340_vm1, %v323_v46  ;;  %v313_v53 = vld [vmem:[%s1541_s10 + $0x30] sm:$0xff]  ;;  %v316_v1 = vld [vmem:[%s1541_s10 + $0x48] sm:$0xff]  ;;  %v478_v5 = vld [vmem:[%s1494_s12 + $0x60] sm:$0xff]  ;;  %v1666_v45 = vand.u32 127, %v482_v44 }
  0x27   : > { %1340 = vmatprep.subr.bf16.mxu1 %v1544_v36  ;;  %1321 = vmatmul.mubr.msk.bf16.vlgmr.msra.gmra.mrb[0].mxu0 %vm340_vm1, %v324_v47  ;;  %v479_v4 = vld [vmem:[%s1494_s12 + $0x68] sm:$0xff]  ;;  %v326_v6 = vpack.c.bf16 %v314_v54, %v313_v53  ;;  %v327_v10 = vpack.c.bf16 %v316_v1, %v315_v0  ;;  %v318_v19 = vld [vmem:[%s1541_s10 + $0x58] sm:$0xff]  ;;  %v319_v20 = vld [vmem:[%s1541_s10 + $0x60] sm:$0xff]  ;;  %v1390_v54 = vmov 1.0|1.0  }
  0x28   : > { %1255 = vmatpush3.bf16.msra.mxu0 %v1460_v9  ;;  %1324 = vmatprep.mubr.msk.bf16.mxu0 %vm340_vm1, %v325_v52  ;;  %v676_v9 = vld [vmem:[%s1787_s1 + $0xf8] sm:$0xff]  ;;  %v471_v13 = vld [vmem:[%s1494_s12 + $0x28] sm:$0xff]  ;;  %v480_v23 = vld [vmem:[%s1494_s12 + $0x70] sm:$0xff]  ;;  %v1669_v48 = vadd.s32 128, %v1666_v45 }
  0x29   : > { %489 = vperm.xlu1 %1365, %v467_v33   ;;  %486 = vperm.xlu0 %1364, %v466_v34   ;;  %v692_v15 = vpack.c.bf16 %v676_v9, %v675_v8  ;;  %v320_v21 = vld [vmem:[%s1541_s10 + $0x68] sm:$0xff]  ;;  %v481_v22 = vld [vmem:[%s1494_s12 + $0x78] sm:$0xff]  ;;  %v806_v26 = vld [vmem:[%s1638_s23] sm:$0xff] }
  0x2a   : > { %1348 = vmatpush3.bf16.msra.mxu1 %v1556_v42  ;;  %1256 = vmatprep.subr.bf16.mxu0 %v1475_v14  ;;  %v470_v14 = vld [vmem:[%s1494_s12 + $0x20] sm:$0xff]  ;;  %v329_v24 = vpack.c.bf16 %v320_v21, %v319_v20  ;;  %v807_v25 = vld [vmem:[%s1638_s23 + $0x8] sm:$0xff]  ;;  %v809_v29 = vld [vmem:[%s1638_s23 + $0x18] sm:$0xff] }
  0x2b   : > { %1341 = vmatprep.subr.bf16.mxu1 %v1585_v59  ;;  %v808_v30 = vld [vmem:[%s1638_s23 + $0x10] sm:$0xff]  ;;  %v811_v32 = vld [vmem:[%s1638_s23 + $0x28] sm:$0xff]  ;;  %v810_v33 = vld [vmem:[%s1638_s23 + $0x20] sm:$0xff] }
  0x2c   : > { %1257 = vmatpush3.bf16.msra.mxu0 %v1488_v17  ;;  %v317_v17 = vld [vmem:[%s1541_s10 + $0x50] sm:$0xff]  ;;  %v813_v34 = vld [vmem:[%s1638_s23 + $0x38] sm:$0xff]  ;;  %v814_v37 = vld [vmem:[%s1638_s23 + $0x40] sm:$0xff] }
  0x2d   : > { %519 = vperm.xlu1 %1365, %v477_v39   ;;  %516 = vperm.xlu0 %1364, %v476_v40   ;;  %v817_v38 = vld [vmem:[%s1638_s23 + $0x58] sm:$0xff]  ;;  %v816_v39 = vld [vmem:[%s1638_s23 + $0x50] sm:$0xff]  ;;  %v819_v40 = vld [vmem:[%s1638_s23 + $0x68] sm:$0xff] }
  0x2e   : > { %1349 = vmatpush3.bf16.msra.mxu1 %v1587_v60  ;;  %1258 = vmatprep.subr.bf16.mxu0 %v1496_v18  ;;  %v328_v18 = vpack.c.bf16 %v318_v19, %v317_v17  ;;  %v818_v41 = vld [vmem:[%s1638_s23 + $0x60] sm:$0xff]  ;;  %v820_v43 = vld [vmem:[%s1638_s23 + $0x70] sm:$0xff] }
  0x2f   : > { %1342 = vmatprep.subr.bf16.mxu1 %v691_v2  ;;  %1325 = vmatmul.mubr.msk.bf16.gmra.mrb[4].mxu0 %vm340_vm1, %v326_v6 }
  0x30   : > { %1259 = vmatpush3.bf16.msra.mxu0 %v1515_v27  ;;  %1328 = vmatprep.mubr.msk.bf16.mxu0 %vm340_vm1, %v327_v10  ;;  %v321_v27 = vld [vmem:[%s1541_s10 + $0x70] sm:$0xff] }
  0x31   : > { %495 = vperm.xlu1 %1365, %v469_v50   ;;  %492 = vperm.xlu0 %1364, %v468_v51  }
  0x32   : > { %1350 = vmatpush3.bf16.msra.mxu1 %v683_v7  ;;  %1260 = vmatprep.subr.bf16.mxu0 %v1518_v28  ;;  %v322_v28 = vld [vmem:[%s1541_s10 + $0x78] sm:$0xff]  ;;  %s1090_s10 = sshll.u32 %s1797_s8, 2 }
  0x33   : > { %1343 = vmatprep.subr.bf16.mxu1 %v692_v15  ;;  %v330_v31 = vpack.c.bf16 %v322_v28, %v321_v27  ;;  %s1750_s26 = scalar_lea.vmem %s1793_s7, %s1090_s10 }
  0x34   : > { %1261 = vmatpush3.bf16.msra.mxu0 %v1535_v35  ;;  %v812_v35 = vld [vmem:[%s1638_s23 + $0x30] sm:$0xff] }
  0x35   : > { %525 = vperm.xlu1 %1365, %v479_v4   ;;  %522 = vperm.xlu0 %1364, %v478_v5  }
  0x36   : > { %1351 = vmatpush3.bf16.msra.mxu1 %v684_v16  ;;  %1262 = vmatprep.subr.bf16.mxu0 %v1544_v36  ;;  %v815_v36 = vld [vmem:[%s1638_s23 + $0x48] sm:$0xff] }
  0x37   : > { %1329 = vmatmul.mubr.msk.bf16.gmra.mrb[8].mxu0 %vm340_vm1, %v328_v18  ;;  %v1738_v18 = vld [vmem:[%s1790_s4] ss:$0 sm:$0xff] }
  0x38   : > { %1263 = vmatpush3.bf16.msra.mxu0 %v1556_v42  ;;  %1332 = vmatprep.mubr.msk.bf16.mxu0 %vm340_vm1, %v329_v24  ;;  %v821_v42 = vld [vmem:[%s1638_s23 + $0x78] sm:$0xff] }
  0x39   : > { %501 = vperm.xlu1 %1365, %v471_v13   ;;  %498 = vperm.xlu0 %1364, %v470_v14  }
  0x3a   : > { %1264 = vmatprep.subr.bf16.mxu0 %v1585_v59 }
  0x3c   : > { %1265 = vmatpush3.bf16.msra.mxu0 %v1587_v60 }
  0x3d   : > { %531 = vperm.xlu1 %1365, %v481_v22   ;;  %528 = vperm.xlu0 %1364, %v480_v23  }
  0x3e   : > { %1266 = vmatprep.subr.bf16.mxu0 %v691_v2 }
  0x3f   : > { %1333 = vmatmul.mubr.msk.bf16.gmra.mrb[12].mxu0 %vm340_vm1, %v330_v31 }
  0x40   : > { %1267 = vmatpush3.bf16.msra.mxu0 %v683_v7 }
  0x41   : > { %829 = vperm.xlu1 %1365, %v807_v25   ;;  %824 = vperm.xlu0 %1364, %v806_v26  }
  0x42   : > { %1268 = vmatprep.subr.bf16.mxu0 %v692_v15 }
  0x44   : > { %1269 = vmatpush3.bf16.msra.mxu0 %v684_v16 }
  0x45   : > { %839 = vperm.xlu1 %1365, %v809_v29   ;;  %834 = vperm.xlu0 %1364, %v808_v30  }
  0x49   : > { %849 = vperm.xlu1 %1365, %v811_v32   ;;  %844 = vperm.xlu0 %1364, %v810_v33  }
  0x4d   : > { %859 = vperm.xlu1 %1365, %v813_v34   ;;  %854 = vperm.xlu0 %1364, %v812_v35  }
  0x51   : > { %869 = vperm.xlu1 %1365, %v815_v36   ;;  %864 = vperm.xlu0 %1364, %v814_v37  }
  0x55   : > { %879 = vperm.xlu1 %1365, %v817_v38   ;;  %874 = vperm.xlu0 %1364, %v816_v39  }
  0x59   : > { %889 = vperm.xlu1 %1365, %v819_v40   ;;  %884 = vperm.xlu0 %1364, %v818_v41  }
  0x5d   : > { %899 = vperm.xlu1 %1365, %v821_v42   ;;  %894 = vperm.xlu0 %1364, %v820_v43  }
  0xa0   : > { %v511_v46 = vpop.permute.xlu1 %510  ;;  %v505_v47 = vpop.permute.xlu0 %504 }
  0xa1   : > { %vm550_vm2 = vcmp.eq.s32.totalorder %v511_v46, %v1669_v48  ;;  %vm545_vm6 = vcmp.eq.s32.totalorder %v505_v47, %v1666_v45  ;;  %vm546_vm9 = vcmp.eq.s32.totalorder %v505_v47, %v1669_v48  ;;  %vm549_vm1 = vcmp.eq.s32.totalorder %v511_v46, %v1666_v45 }
  0xa4   : > { %v514_v49 = vpop.permute.xlu1 %513  ;;  %v508_v50 = vpop.permute.xlu0 %507 }
  0xa5   : > { %vm552_vm3 = vcmp.eq.s32.totalorder %v514_v49, %v1669_v48  ;;  %vm547_vm4 = vcmp.eq.s32.totalorder %v508_v50, %v1666_v45  ;;  %vm548_vm5 = vcmp.eq.s32.totalorder %v508_v50, %v1669_v48 }
  0xa6   : > { %vm1676_vm7 = vmpackc.low %vm552_vm3, %vm550_vm2  ;;  %vm551_vm2 = vcmp.eq.s32.totalorder %v514_v49, %v1666_v45 }
  0xa7   : > { %vm1146_vm8 = vmpackc.low %vm547_vm4, %vm545_vm6 }
  0xa8   : > { %v490_v52 = vpop.permute.xlu1 %489  ;;  %v487_v53 = vpop.permute.xlu0 %486  ;;  %vm1144_vm10 = vmpackc.low %vm548_vm5, %vm546_vm9 }
  0xa9   : > { %vm535_vm11 = vcmp.eq.s32.totalorder %v490_v52, %v1666_v45  ;;  %vm536_vm12 = vcmp.eq.s32.totalorder %v490_v52, %v1669_v48  ;;  %vm533_vm13 = vcmp.eq.s32.totalorder %v487_v53, %v1666_v45  ;;  %vm534_vm14 = vcmp.eq.s32.totalorder %v487_v53, %v1669_v48  ;;  %1145 = vmatprep.mubr.msk.bf16.mxu1 %vm1144_vm10, %v1390_v54  ;;  %vm1150_vm5 = vmpackc.low %vm551_vm2, %vm549_vm1 }
  0xaa   : > { %vm1132_vm15 = vmpackc.low %vm536_vm12, %vm534_vm14  ;;  %1147 = vmatmul.mubr.msk.bf16.vlgmr.msra.gmra.mrb[0].mxu1 %vm1146_vm8, %v1390_v54 }
  0xab   : > { %vm1134_vm0 = vmpackc.low %vm535_vm11, %vm533_vm13  ;;  %1133 = vmatprep.mubr.msk.bf16.mxu0 %vm1132_vm15, %v1390_v54  ;;  %1149 = vmatprep.mubr.msk.bf16.mxu1 %vm1676_vm7, %v1390_v54 }
  0xac   : > { %v520_v55 = vpop.permute.xlu1 %519  ;;  %v517_v56 = vpop.permute.xlu0 %516  ;;  %1135 = vmatmul.mubr.msk.bf16.vlgmr.msra.gmra.mrb[16].mxu0 %vm1134_vm0, %v1390_v54 }
  0xad   : > { %vm556_vm3 = vcmp.eq.s32.totalorder %v520_v55, %v1669_v48  ;;  %vm554_vm4 = vcmp.eq.s32.totalorder %v517_v56, %v1669_v48  ;;  %vm555_vm13 = vcmp.eq.s32.totalorder %v520_v55, %v1666_v45  ;;  %vm553_vm14 = vcmp.eq.s32.totalorder %v517_v56, %v1666_v45 }
  0xae   : > { %vm1152_vm6 = vmpackc.low %vm556_vm3, %vm554_vm4 }
  0xaf   : > { %vm1154_vm1 = vmpackc.low %vm555_vm13, %vm553_vm14 }
  0xb0   : > { %v496_v57 = vpop.permute.xlu1 %495  ;;  %v493_v58 = vpop.permute.xlu0 %492 }
  0xb1   : > { %vm539_vm8 = vcmp.eq.s32.totalorder %v496_v57, %v1666_v45  ;;  %vm540_vm9 = vcmp.eq.s32.totalorder %v496_v57, %v1669_v48  ;;  %vm537_vm7 = vcmp.eq.s32.totalorder %v493_v58, %v1666_v45  ;;  %vm538_vm10 = vcmp.eq.s32.totalorder %v493_v58, %v1669_v48 }
  0xb2   : > { %vm1136_vm11 = vmpackc.low %vm540_vm9, %vm538_vm10  ;;  %1151 = vmatmul.mubr.msk.bf16.gmra.mrb[4].mxu1 %vm1150_vm5, %v1390_v54 }
  0xb3   : > { %vm1138_vm12 = vmpackc.low %vm539_vm8, %vm537_vm7  ;;  %1137 = vmatprep.mubr.msk.bf16.mxu0 %vm1136_vm11, %v1390_v54  ;;  %1153 = vmatprep.mubr.msk.bf16.mxu1 %vm1152_vm6, %v1390_v54 }
  0xb4   : > { %v526_v59 = vpop.permute.xlu1 %525  ;;  %v523_v60 = vpop.permute.xlu0 %522  ;;  %1139 = vmatmul.mubr.msk.bf16.gmra.mrb[20].mxu0 %vm1138_vm12, %v1390_v54 }
  0xb5   : > { %vm560_vm15 = vcmp.eq.s32.totalorder %v526_v59, %v1669_v48  ;;  %vm558_vm0 = vcmp.eq.s32.totalorder %v523_v60, %v1669_v48  ;;  %vm559_vm7 = vcmp.eq.s32.totalorder %v526_v59, %v1666_v45  ;;  %vm557_vm10 = vcmp.eq.s32.totalorder %v523_v60, %v1666_v45 }
  0xb6   : > { %vm1156_vm2 = vmpackc.low %vm560_vm15, %vm558_vm0 }
  0xb7   : > { %vm1158_vm13 = vmpackc.low %vm559_vm7, %vm557_vm10 }
  0xb8   : > { %v502_v61 = vpop.permute.xlu1 %501  ;;  %v499_v62 = vpop.permute.xlu0 %498 }
  0xb9   : > { %vm543_vm3 = vcmp.eq.s32.totalorder %v502_v61, %v1666_v45  ;;  %vm544_vm4 = vcmp.eq.s32.totalorder %v502_v61, %v1669_v48  ;;  %vm541_vm5 = vcmp.eq.s32.totalorder %v499_v62, %v1666_v45  ;;  %vm542_vm6 = vcmp.eq.s32.totalorder %v499_v62, %v1669_v48 }
  0xba   : > { %vm1140_vm8 = vmpackc.low %vm544_vm4, %vm542_vm6  ;;  %1155 = vmatmul.mubr.msk.bf16.gmra.mrb[8].mxu1 %vm1154_vm1, %v1390_v54 }
  0xbb   : > { %vm1142_vm9 = vmpackc.low %vm543_vm3, %vm541_vm5  ;;  %1141 = vmatprep.mubr.msk.bf16.mxu0 %vm1140_vm8, %v1390_v54  ;;  %1157 = vmatprep.mubr.msk.bf16.mxu1 %vm1156_vm2, %v1390_v54 }
  0xbc   : > { %1143 = vmatmul.mubr.msk.bf16.gmra.mrb[24].mxu0 %vm1142_vm9, %v1390_v54  ;;  %v532_v63 = vpop.permute.xlu1 %531  ;;  %v529_v0 = vpop.permute.xlu0 %528 }
  0xbd   : > { %vm564_vm11 = vcmp.eq.s32.totalorder %v532_v63, %v1669_v48  ;;  %vm562_vm12 = vcmp.eq.s32.totalorder %v529_v0, %v1669_v48  ;;  %vm563_vm15 = vcmp.eq.s32.totalorder %v532_v63, %v1666_v45  ;;  %vm561_vm0 = vcmp.eq.s32.totalorder %v529_v0, %v1666_v45 }
  0xbe   : > { %vm1160_vm14 = vmpackc.low %vm564_vm11, %vm562_vm12 }
  0xbf   : > { %vm1162_vm1 = vmpackc.low %vm563_vm15, %vm561_vm0 }
  0xc0   : > { %v830_v17 = vpop.permute.xlu1 %829  ;;  %v825_v19 = vpop.permute.xlu0 %824 }
  0xc2   : > { %1159 = vmatmul.mubr.msk.bf16.gmra.mrb[12].mxu1 %vm1158_vm13, %v1390_v54 }
  0xc3   : > { %1161 = vmatprep.mubr.msk.bf16.mxu1 %vm1160_vm14, %v1390_v54 }
  0xc4   : > { %v1727_v20 = vpop.permute.xlu1 %839  ;;  %v1729_v21 = vpop.permute.xlu0 %834 }
  0xc8   : > { %v1731_v22 = vpop.permute.xlu1 %849  ;;  %v1733_v23 = vpop.permute.xlu0 %844 }
  0xca   : > { %1163 = vmatmul.mubr.msk.bf16.gmra.mrb[16].mxu1 %vm1162_vm1, %v1390_v54 }
  0xcc   : > { %v860_v44 = vpop.permute.xlu1 %859  ;;  %v855_v47 = vpop.permute.xlu0 %854 }
  0xfa   : > { %v1322_v1 = vpop.f32.mrb[0].mxu0 }
  0xfb   : > { %v403_v2 = vpop.f32.mrb[1].mxu0  ;;  %v412_v59 = vadd.f32 %v1322_v1, %v1738_v18 }
  0xfc   : > { %v1709_v3 = vpop.f32.mrb[2].mxu0  ;;  %v404_v31 = vadd.f32 %v1738_v18, %v403_v2 }
  0xfd   : > { %v406_v4 = vpop.f32.mrb[3].mxu0  ;;  %v415_v1 = vadd.f32 %v1709_v3, %v1738_v18 }
  0xfe   : > { %v407_v39 = vadd.f32 %v1738_v18, %v406_v4 }
 0x102   : > { %v1326_v5 = vpop.f32.mrb[4].mxu0 }
 0x103   : > { %v1711_v6 = vpop.f32.mrb[5].mxu0  ;;  %v428_v27 = vadd.f32 %v1326_v5, %v1738_v18 }
 0x104   : > { %v1327_v7 = vpop.f32.mrb[6].mxu0 }
 0x105   : > { %v1713_v8 = vpop.f32.mrb[7].mxu0  ;;  %v431_v35 = vadd.f32 %v1327_v7, %v1738_v18 }
 0x10a   : > { %v1715_v9 = vpop.f32.mrb[8].mxu0 }
 0x10b   : > { %v435_v10 = vpop.f32.mrb[9].mxu0 }
 0x10c   : > { %v1717_v11 = vpop.f32.mrb[10].mxu0  ;;  %v436_v53 = vadd.f32 %v1738_v18, %v435_v10 }
 0x10d   : > { %v438_v12 = vpop.f32.mrb[11].mxu0 }
 0x10e   : > { %v439_v2 = vadd.f32 %v1738_v18, %v438_v12 }
 0x112   : > { %v1719_v13 = vpop.f32.mrb[12].mxu0 }
 0x113   : > { %v1721_v14 = vpop.f32.mrb[13].mxu0 }
 0x114   : > { %v1723_v15 = vpop.f32.mrb[14].mxu0 }
 0x115   : > { %v1725_v16 = vpop.f32.mrb[15].mxu0 }
 0x17d   : > { %v1288_v24 = vpop.f32.mrb[0].mxu1 }
 0x17e   : > { %v1289_v25 = vpop.f32.mrb[1].mxu1 }
 0x17f   : > { %v1270_v26 = vpop.f32.mrb[16].mxu0  ;;  %v1290_v28 = vadd.f32 %v1289_v25, %v1288_v24  ;;  %v1291_v29 = vpop.f32.mrb[2].mxu1 }
 0x180   : > { %v1271_v30 = vpop.f32.mrb[17].mxu0  ;;  %v1292_v32 = vpop.f32.mrb[3].mxu1 }
 0x181   : > { %v1272_v33 = vadd.f32 %v1271_v30, %v1270_v26  ;;  %v1273_v34 = vpop.f32.mrb[18].mxu0  ;;  %v752_v36 = vadd.f32 %v1290_v28, %v428_v27  ;;  %v1293_v37 = vadd.f32 %v1292_v32, %v1291_v29  ;;  %v865_v30 = vpop.permute.xlu0 %864 }
 0x182   : > { %v1274_v38 = vpop.f32.mrb[19].mxu0 }
 0x183   : > { %v728_v40 = vadd.f32 %v1272_v33, %v404_v31  ;;  %v1275_v41 = vadd.f32 %v1274_v38, %v1273_v34  ;;  %v796_v42 = vmax.f32 %v752_v36, 0.0  ;;  %v755_v43 = vadd.f32 %v1293_v37, %v431_v35 }
 0x184   : > { %v444_v35 = vadd.f32 %v1715_v9, %v1738_v18  ;;  %v447_v9 = vadd.f32 %v1717_v11, %v1738_v18 }
 0x185   : > { %v790_v45 = vmax.f32 %v728_v40, 0.0  ;;  %v731_v46 = vadd.f32 %v1275_v41, %v407_v39  ;;  %v797_v48 = vmax.f32 %v755_v43, 0.0  ;;  %v1294_v49 = vpop.f32.mrb[4].mxu1  ;;  %v908_v54 = vmul.f32 %v855_v47, %v796_v42  ;;  %v875_v11 = vpop.permute.xlu0 %874 }
 0x186   : > { %v1295_v51 = vpop.f32.mrb[5].mxu1  ;;  %v420_v40 = vadd.f32 %v1738_v18, %v1711_v6 }
 0x187   : > { %v791_v50 = vmax.f32 %v731_v46, 0.0  ;;  %v1276_v52 = vpop.f32.mrb[20].mxu0  ;;  %v909_v55 = vmul.f32 %v860_v44, %v797_v48  ;;  %v1296_v56 = vadd.f32 %v1295_v51, %v1294_v49  ;;  %v1297_v57 = vpop.f32.mrb[6].mxu1  ;;  %v902_v60 = vmul.f32 %v825_v19, %v790_v45 }
 0x188   : > { %v1277_v58 = vpop.f32.mrb[21].mxu0  ;;  %v1298_v62 = vpop.f32.mrb[7].mxu1 }
 0x189   : > { %v903_v61 = vmul.f32 %v830_v17, %v791_v50  ;;  %v1278_v63 = vadd.f32 %v1277_v58, %v1276_v52  ;;  %v1279_v0 = vpop.f32.mrb[22].mxu0  ;;  %v1216_v4 = vpack.c.bf16 %v909_v55, %v908_v54  ;;  %v760_v5 = vadd.f32 %v1296_v56, %v436_v53  ;;  %v870_v17 = vpop.permute.xlu1 %869 }
 0x18a   : > { %v1299_v7 = vadd.f32 %v1298_v62, %v1297_v57  ;;  %v1280_v10 = vpop.f32.mrb[23].mxu0  ;;  %v423_v50 = vadd.f32 %v1738_v18, %v1713_v8 }
 0x18b   : > { %v1201_v24 = vpack.c.bf16 %v903_v61, %v902_v60  ;;  %v736_v25 = vadd.f32 %v1278_v63, %v412_v59  ;;  %v1281_v26 = vadd.f32 %v1280_v10, %v1279_v0  ;;  %1240 = vst [vmem:[%s1750_s26 + $0x18] sm:$0xff] %v1216_v4   ;;  %v798_v27 = vmax.f32 %v760_v5, 0.0 }
 0x18c   : > { %v763_v19 = vadd.f32 %v1299_v7, %v439_v2  ;;  %v452_v60 = vadd.f32 %v1738_v18, %v1721_v14  ;;  %v455_v5 = vadd.f32 %v1738_v18, %v1725_v16 }
 0x18d   : > { %1202 = vst [vmem:[%s1750_s26] sm:$0xff] %v1201_v24   ;;  %v792_v28 = vmax.f32 %v736_v25, 0.0  ;;  %v739_v29 = vadd.f32 %v1281_v26, %v415_v1  ;;  %v1300_v12 = vpop.f32.mrb[8].mxu1  ;;  %v910_v3 = vmul.f32 %v865_v30, %v798_v27  ;;  %v880_v55 = vpop.permute.xlu1 %879 }
 0x18e   : > { %v799_v31 = vmax.f32 %v763_v19, 0.0  ;;  %v1301_v33 = vpop.f32.mrb[9].mxu1 }
 0x18f   : > { %v793_v32 = vmax.f32 %v739_v29, 0.0  ;;  %v1282_v34 = vpop.f32.mrb[24].mxu0  ;;  %v1302_v37 = vadd.f32 %v1301_v33, %v1300_v12  ;;  %v1303_v38 = vpop.f32.mrb[10].mxu1  ;;  %v904_v41 = vmul.f32 %v1729_v21, %v792_v28  ;;  %v463_v12 = vadd.f32 %v1723_v15, %v1738_v18 }
 0x190   : > { %v911_v36 = vmul.f32 %v870_v17, %v799_v31  ;;  %v1283_v39 = vpop.f32.mrb[25].mxu0  ;;  %v1304_v43 = vpop.f32.mrb[11].mxu1 }
 0x191   : > { %v905_v42 = vmul.f32 %v1727_v20, %v793_v32  ;;  %v1284_v44 = vadd.f32 %v1283_v39, %v1282_v34  ;;  %v1285_v45 = vpop.f32.mrb[26].mxu0  ;;  %v768_v47 = vadd.f32 %v1302_v37, %v444_v35  ;;  %v1305_v48 = vadd.f32 %v1304_v43, %v1303_v38  ;;  %v890_v26 = vpop.permute.xlu1 %889 }
 0x192   : > { %v1221_v46 = vpack.c.bf16 %v911_v36, %v910_v3  ;;  %v1286_v49 = vpop.f32.mrb[27].mxu0  ;;  %v885_v17 = vpop.permute.xlu0 %884 }
 0x193   : > { %v1206_v51 = vpack.c.bf16 %v905_v42, %v904_v41  ;;  %v744_v6 = vadd.f32 %v1284_v44, %v420_v40  ;;  %v1287_v52 = vadd.f32 %v1286_v49, %v1285_v45  ;;  %v800_v21 = vmax.f32 %v768_v47, 0.0 }
 0x194   : > { %1241 = vst [vmem:[%s1750_s26 + $0x20] sm:$0xff] %v1221_v46   ;;  %v771_v20 = vadd.f32 %v1305_v48, %v447_v9 }
 0x195   : > { %1238 = vst [vmem:[%s1750_s26 + $0x8] sm:$0xff] %v1206_v51   ;;  %v794_v53 = vmax.f32 %v744_v6, 0.0  ;;  %v747_v54 = vadd.f32 %v1287_v52, %v423_v50  ;;  %v1306_v57 = vpop.f32.mrb[12].mxu1  ;;  %v912_v8 = vmul.f32 %v875_v11, %v800_v21  ;;  %v900_v37 = vpop.permute.xlu1 %899 }
 0x196   : > { %v801_v56 = vmax.f32 %v771_v20, 0.0  ;;  %v1307_v59 = vpop.f32.mrb[13].mxu1  ;;  %v895_v38 = vpop.permute.xlu0 %894 }
 0x197   : > { %v795_v58 = vmax.f32 %v747_v54, 0.0  ;;  %v1308_v62 = vadd.f32 %v1307_v59, %v1306_v57  ;;  %v1309_v63 = vpop.f32.mrb[14].mxu1  ;;  %v906_v0 = vmul.f32 %v1733_v23, %v794_v53 }
 0x198   : > { %v913_v61 = vmul.f32 %v880_v55, %v801_v56  ;;  %v1310_v4 = vpop.f32.mrb[15].mxu1 }
 0x199   : > { %v907_v2 = vmul.f32 %v1731_v22, %v795_v58  ;;  %v776_v10 = vadd.f32 %v1308_v62, %v452_v60  ;;  %v1311_v1 = vadd.f32 %v1310_v4, %v1309_v63  ;;  %v460_v22 = vadd.f32 %v1719_v13, %v1738_v18 }
 0x19a   : > { %v1226_v7 = vpack.c.bf16 %v913_v61, %v912_v8 }
 0x19b   : > { %v1211_v24 = vpack.c.bf16 %v907_v2, %v906_v0  ;;  %v802_v25 = vmax.f32 %v776_v10, 0.0  ;;  %v779_v14 = vadd.f32 %v1311_v1, %v455_v5 }
 0x19c   : > { %1242 = vst [vmem:[%s1750_s26 + $0x28] sm:$0xff] %v1226_v7  }
 0x19d   : > { %1239 = vst [vmem:[%s1750_s26 + $0x10] sm:$0xff] %v1211_v24   ;;  %v803_v27 = vmax.f32 %v779_v14, 0.0  ;;  %v1312_v19 = vpop.f32.mrb[16].mxu1  ;;  %v914_v28 = vmul.f32 %v885_v17, %v802_v25 }
 0x19e   : > { %v1313_v23 = vpop.f32.mrb[17].mxu1 }
 0x19f   : > { %v915_v29 = vmul.f32 %v890_v26, %v803_v27  ;;  %v1314_v16 = vadd.f32 %v1313_v23, %v1312_v19  ;;  %v1315_v30 = vpop.f32.mrb[18].mxu1 }
 0x1a0   : > { %v1316_v31 = vpop.f32.mrb[19].mxu1 }
 0x1a1   : > { %v1231_v32 = vpack.c.bf16 %v915_v29, %v914_v28  ;;  %v784_v33 = vadd.f32 %v1314_v16, %v460_v22  ;;  %v1317_v34 = vadd.f32 %v1316_v31, %v1315_v30 }
 0x1a3   : > { %1243 = vst [vmem:[%s1750_s26 + $0x30] sm:$0xff] %v1231_v32   ;;  %v804_v35 = vmax.f32 %v784_v33, 0.0  ;;  %v787_v3 = vadd.f32 %v1317_v34, %v463_v12 }
 0x1a5   : > { %v805_v36 = vmax.f32 %v787_v3, 0.0  ;;  %v916_v39 = vmul.f32 %v895_v38, %v804_v35 }
 0x1a7   : > { %v917_v13 = vmul.f32 %v900_v37, %v805_v36 }
 0x1a9   : > { %v1236_v40 = vpack.c.bf16 %v917_v13, %v916_v39 }
 0x1ab   : > { %1244 = vst [vmem:[%s1750_s26 + $0x38] sm:$0xff] %v1236_v40  }
 0x1ac PF: > { %s23_s30 = sadd.s32 1, %s1386_s30  }
 0x1ad   : > { %p20_p9 = scmp.ge.s32.totalorder %s23_s30, 5  }
 0x1af   :  { %22 = sbr.rel (!%p20_p9) target bundleno = 17 (0x11), region = 80 }

// kernel: egnn_forward.12
= control target key start
LH: loop header
LB: loop body
LE: loop exit
PB: predicated region body
PF: predicated region fallthrough
CT: control target
= control target key end

     0   :  { %s1322_s24 = smov 0   ;;  %s1324_s25 = smov 0   ;;  %s1590_s0 = inlined_call_operand.vmem [shape: s32[1,384], index: 0, kind: input, shape index: {}]   ;;  %s1591_s1 = inlined_call_operand.vmem [shape: bf16[384,128], index: 1, kind: input, shape index: {}]   ;;  %s1592_s2 = inlined_call_operand.vmem [shape: f32[256,128], index: 2, kind: input, shape index: {}]   ;;  %s1593_s3 = inlined_call_operand.vmem [shape: f32[1,128], index: 3, kind: input, shape index: {}]   ;;  %s1594_s4 = inlined_call_operand.vmem [shape: f32[256,1], index: 4, kind: input, shape index: {}]   ;;  %s1595_s5 = inlined_call_operand.vmem [shape: f32[1,128], index: 5, kind: input, shape index: {}]   ;;  %s1596_s6 = inlined_call_operand.vmem [shape: f32[1,128], index: 6, kind: input, shape index: {}]   ;;  %s1597_s7 = inlined_call_operand.vmem [shape: f32[256,128], index: 7, kind: output, shape index: {}]  }
   0x1   :  { %s1326_s26 = smov 0   ;;  %s1328_s27 = smov 0  }
   0x2   :  { %s1330_s28 = smov 0  }
   0x3 LB: > { %s26_s29 = sadd.s32 1, %s1269_s26  ;;  %s29_s30 = sadd.s32 1, %s1273_s27  ;;  %s1277_s28 = sphi %s1330_s28, %s17_s28   ;;  %s1273_s27 = sphi %s1328_s27, %s1603_s27   ;;  %s1269_s26 = sphi %s1326_s26, %s1602_s26   ;;  %s1265_s25 = sphi %s1324_s25, %s1601_s25   ;;  %s1261_s24 = sphi %s1322_s24, %s1600_s24  }
   0x4   : > { %p27_p0 = scmp.ge.s32.totalorder %s26_s29, 3  ;;  %p1064_p1 = scmp.ge.s32.totalorder %s1277_s28, 1 }
   0x5   : > { %p280_p2 = scmp.lt.s32.totalorder %s1277_s28, 7 }
   0x6   : > { %s1605_s29 = smov (%p27_p0, %s26_s29), 0  ;;  %s1607_s30 = smov (!%p27_p0, %s29_s30), %s1273_s27 }
   0x7   : > { %p281_p3 = pnand %p1064_p1, %p280_p2  ;;  %p31_p4 = scmp.ge.s32.totalorder %s1607_s30, 2 }
   0x8   : > { %p325_p5 = scmp.lt.s32.totalorder (!%p281_p3), %s1261_s24, 2  ;;  %s1065_s8 = sshll.u32 (!%p281_p3), %s1261_s24, 4 }
   0x9   : > { %s1609_s30 = smov (%p31_p4, %s1607_s30), 0  ;;  %284 = sbr.rel (%p281_p3) target bundleno = 413 (0x19d), region = 48 }
   0xa   : > { %1598 = sst [smem:[#allocation3_spill]] %s1609_s30  ;;  %p329_p6 = scmp.lt.s32.totalorder (!%p281_p3), %s1065_s8, 47 }
   0xb   : > { %s1067_s9 = sshll.u32 (!%p281_p3), %s1265_s25, 4  ;;  %p1073_p8 = scmp.ne.s32.totalorder (!%p281_p3), %s1261_s24, 0 }
   0xc   : > { %p335_p7 = scmp.lt.s32.totalorder (!%p281_p3), %s1067_s9, 31 }
  0x10   : > { %s1360_s10 = scalar_select %p325_p5, %s1261_s24, 2 }
  0x11   : > { %s1611_s8 = smov (!%p329_p6, %s1065_s8), 47  ;;  %s1613_s9 = smov (!%p335_p7, %s1067_s9), 31 }
  0x12   : > { %s327_s13 = scalar_lea.vmem %s1590_s0, %s1360_s10  ;;  %s1066_s14 = sshll.u32 %s1611_s8, 2  ;;  %v1279_v0 = vmov (!%p1073_p8), 0.0  }
  0x13   : > { %s1369_s17 = scalar_lea.vmem %s1591_s1, %s1066_s14  ;;  %s1068_s18 = sshll.u32 %s1613_s9, 3  ;;  %357 = vst [vmem:[#allocation2] sm:$0xff] (!%p1073_p8), %v1279_v0  ;;  %358 = vst [vmem:[#allocation2 + $0x8] sm:$0xff] (!%p1073_p8), %v1279_v0 }
  0x14   : > { %s1374_s21 = scalar_lea.vmem %s1592_s2, %s1068_s18  ;;  %s1379_s30 = scalar_lea.vmem %s1594_s4, %s1068_s18  ;;  %359 = vst [vmem:[#allocation2 + $0x10] sm:$0xff] (!%p1073_p8), %v1279_v0  ;;  %360 = vst [vmem:[#allocation2 + $0x18] sm:$0xff] (!%p1073_p8), %v1279_v0 }
  0x15   : > { %s1384_s8 = scalar_lea.vmem %s1597_s7, %s1068_s18  ;;  %356 = sbr.rel (%p1073_p8) target bundleno = 28 (0x1c), region = 52  ;;  %361 = vst [vmem:[#allocation2 + $0x20] sm:$0xff] (!%p1073_p8), %v1279_v0  ;;  %362 = vst [vmem:[#allocation2 + $0x28] sm:$0xff] (!%p1073_p8), %v1279_v0 }
  0x16   : > { %363 = vst [vmem:[#allocation2 + $0x30] sm:$0xff] (!%p1073_p8), %v1279_v0  ;;  %364 = vst [vmem:[#allocation2 + $0x38] sm:$0xff] (!%p1073_p8), %v1279_v0 }
  0x17   : > { %365 = vst [vmem:[#allocation2 + $0x40] sm:$0xff] (!%p1073_p8), %v1279_v0  ;;  %366 = vst [vmem:[#allocation2 + $0x48] sm:$0xff] (!%p1073_p8), %v1279_v0 }
  0x18   : > { %367 = vst [vmem:[#allocation2 + $0x50] sm:$0xff] (!%p1073_p8), %v1279_v0  ;;  %368 = vst [vmem:[#allocation2 + $0x58] sm:$0xff] (!%p1073_p8), %v1279_v0 }
  0x19   : > { %369 = vst [vmem:[#allocation2 + $0x60] sm:$0xff] (!%p1073_p8), %v1279_v0  ;;  %370 = vst [vmem:[#allocation2 + $0x68] sm:$0xff] (!%p1073_p8), %v1279_v0 }
  0x1a   : > { %371 = vst [vmem:[#allocation2 + $0x70] sm:$0xff] (!%p1073_p8), %v1279_v0  ;;  %372 = vst [vmem:[#allocation2 + $0x78] sm:$0xff] (!%p1073_p8), %v1279_v0 }
  0x1c PF: > { %v1229_v1 = vld [vmem:[%s1369_s17] sm:$0xff]   ;;  %s1074_s9 = sshll.u32 %s1265_s25, 7  ;;  %v374_v2 = vlaneseq  ;;  %v1230_v3 = vld [vmem:[%s1369_s17 + $0x8] sm:$0xff]   ;;  %v1231_v6 = vld [vmem:[%s1369_s17 + $0x10] sm:$0xff]   ;;  %v1280_v17 = vmov 1.0|1.0  }
  0x1d   : > { %1138 = vmatprep.subr.bf16.mxu0 %v1229_v1  ;;  %1170 = vmatprep.subr.bf16.mxu1 %v1229_v1  ;;  %v1392_v5 = vstv %s1074_s9  ;;  %v1232_v13 = vld [vmem:[%s1369_s17 + $0x18] sm:$0xff]   ;;  %v1408_v14 = vld [vmem:[%s327_s13] ss:$0 sm:$0xff]  ;;  %v1234_v18 = vld [vmem:[%s1369_s17 + $0x28] sm:$0xff]   ;;  %p1116_p9 = scmp.ne.s32.totalorder %s1261_s24, 2 }
  0x1e   : > { %v1390_v4 = vshrl.u32 %v374_v2, 7  ;;  %1139 = vmatpush3.bf16.msra.mxu0 %v1229_v1  ;;  %1178 = vmatpush3.bf16.msra.mxu1 %v1229_v1  ;;  %v1233_v16 = vld [vmem:[%s1369_s17 + $0x20] sm:$0xff]   ;;  %v1235_v23 = vld [vmem:[%s1369_s17 + $0x30] sm:$0xff]   ;;  %v1236_v32 = vld [vmem:[%s1369_s17 + $0x38] sm:$0xff]  }
  0x1f   : > { %1140 = vmatprep.subr.bf16.mxu0 %v1230_v3  ;;  %1171 = vmatprep.subr.bf16.mxu1 %v1230_v3  ;;  %v471_v45 = vld [vmem:[#allocation2 + $0x10] sm:$0xff]  ;;  %v469_v47 = vld [vmem:[#allocation2] sm:$0xff]  ;;  %v472_v51 = vld [vmem:[#allocation2 + $0x18] sm:$0xff] }
  0x20   : > { %v376_v7 = vadd.s32 8, %v1390_v4  ;;  %v392_v8 = vadd.s32 %v1392_v5, %v1390_v4  ;;  %v383_v9 = vadd.s32 64, %v1390_v4  ;;  %v384_v11 = vadd.s32 72, %v1390_v4  ;;  %v479_v46 = vld [vmem:[#allocation2 + $0x50] sm:$0xff]  ;;  %v477_v48 = vld [vmem:[#allocation2 + $0x40] sm:$0xff]  ;;  %v480_v52 = vld [vmem:[#allocation2 + $0x58] sm:$0xff] }
  0x21   : > { %v377_v19 = vadd.s32 16, %v1390_v4  ;;  %v378_v20 = vadd.s32 24, %v1390_v4  ;;  %v385_v21 = vadd.s32 80, %v1390_v4  ;;  %v386_v22 = vadd.s32 88, %v1390_v4  ;;  %v470_v57 = vld [vmem:[#allocation2 + $0x8] sm:$0xff] }
  0x22   : > { %v393_v10 = vadd.s32 %v1392_v5, %v376_v7  ;;  %1141 = vmatpush3.bf16.msra.mxu0 %v1230_v3  ;;  %1179 = vmatpush3.bf16.msra.mxu1 %v1230_v3  ;;  %v400_v12 = vadd.s32 %v1392_v5, %v383_v9  ;;  %v401_v15 = vadd.s32 %v1392_v5, %v384_v11  ;;  %v379_v24 = vadd.s32 32, %v1390_v4  ;;  %v478_v58 = vld [vmem:[#allocation2 + $0x48] sm:$0xff]  ;;  %v473_v7 = vld [vmem:[#allocation2 + $0x20] sm:$0xff]  ;;  %v476_v11 = vld [vmem:[#allocation2 + $0x38] sm:$0xff] }
  0x23   : > { %1142 = vmatprep.subr.bf16.mxu0 %v1231_v6  ;;  %1172 = vmatprep.subr.bf16.mxu1 %v1231_v6  ;;  %vm413_vm0 = vcmp.eq.s32.totalorder %v1408_v14, %v392_v8  ;;  %v380_v25 = vadd.s32 40, %v1390_v4  ;;  %v387_v26 = vadd.s32 96, %v1390_v4  ;;  %v388_v27 = vadd.s32 104, %v1390_v4  ;;  %v481_v8 = vld [vmem:[#allocation2 + $0x60] sm:$0xff] }
  0x24   : > { %vm414_vm1 = vcmp.eq.s32.totalorder %v1408_v14, %v393_v10  ;;  %vm421_vm2 = vcmp.eq.s32.totalorder %v1408_v14, %v400_v12  ;;  %vm422_vm4 = vcmp.eq.s32.totalorder %v1408_v14, %v401_v15  ;;  %v394_v28 = vadd.s32 %v1392_v5, %v377_v19  ;;  %v484_v12 = vld [vmem:[#allocation2 + $0x78] sm:$0xff] }
  0x25   : > { %vm1100_vm3 = vmpackc.low %vm414_vm1, %vm413_vm0  ;;  %v395_v29 = vadd.s32 %v1392_v5, %v378_v20  ;;  %v402_v30 = vadd.s32 %v1392_v5, %v385_v21  ;;  %v403_v31 = vadd.s32 %v1392_v5, %v386_v22  ;;  %v396_v33 = vadd.s32 %v1392_v5, %v379_v24 }
  0x26   : > { %1143 = vmatpush3.bf16.msra.mxu0 %v1231_v6  ;;  %1180 = vmatpush3.bf16.msra.mxu1 %v1231_v6  ;;  %vm1108_vm5 = vmpackc.low %vm422_vm4, %vm421_vm2  ;;  %v397_v34 = vadd.s32 %v1392_v5, %v380_v25  ;;  %v404_v35 = vadd.s32 %v1392_v5, %v387_v26  ;;  %v405_v36 = vadd.s32 %v1392_v5, %v388_v27  ;;  %v381_v37 = vadd.s32 48, %v1390_v4  ;;  %v483_v6 = vld [vmem:[#allocation2 + $0x70] sm:$0xff] }
  0x27   : > { %1144 = vmatprep.subr.bf16.mxu0 %v1232_v13  ;;  %1173 = vmatprep.subr.bf16.mxu1 %v1232_v13  ;;  %vm415_vm6 = vcmp.eq.s32.totalorder %v1408_v14, %v394_v28  ;;  %vm416_vm7 = vcmp.eq.s32.totalorder %v1408_v14, %v395_v29  ;;  %vm423_vm8 = vcmp.eq.s32.totalorder %v1408_v14, %v402_v30  ;;  %v382_v38 = vadd.s32 56, %v1390_v4  ;;  %v755_v29 = vld [vmem:[%s1379_s30 + $0x10] sm:$0xff] (!%p1116_p9)  ;;  %v753_v30 = vld [vmem:[%s1379_s30] sm:$0xff] (!%p1116_p9) }
  0x28   : > { %1154 = vmatprep.mubr.msk.bf16.mxu0 %vm1100_vm3, %v1280_v17  ;;  %1162 = vmatprep.mubr.msk.bf16.mxu1 %vm1108_vm5, %v1280_v17  ;;  %vm424_vm9 = vcmp.eq.s32.totalorder %v1408_v14, %v403_v31  ;;  %vm417_vm10 = vcmp.eq.s32.totalorder %v1408_v14, %v396_v33  ;;  %vm418_vm11 = vcmp.eq.s32.totalorder %v1408_v14, %v397_v34  ;;  %v389_v39 = vadd.s32 112, %v1390_v4  ;;  %vm1102_vm12 = vmpackc.low %vm416_vm7, %vm415_vm6  ;;  %v754_v33 = vld [vmem:[%s1379_s30 + $0x8] sm:$0xff] (!%p1116_p9) }
  0x29   : > { %v390_v40 = vadd.s32 120, %v1390_v4  ;;  %vm425_vm13 = vcmp.eq.s32.totalorder %v1408_v14, %v404_v35  ;;  %vm426_vm14 = vcmp.eq.s32.totalorder %v1408_v14, %v405_v36  ;;  %vm1110_vm15 = vmpackc.low %vm424_vm9, %vm423_vm8  ;;  %v398_v41 = vadd.s32 %v1392_v5, %v381_v37  ;;  %v758_v34 = vld [vmem:[%s1379_s30 + $0x28] sm:$0xff] (!%p1116_p9)  ;;  %v757_v35 = vld [vmem:[%s1379_s30 + $0x20] sm:$0xff] (!%p1116_p9) }
  0x2a   : > { %1145 = vmatpush3.bf16.msra.mxu0 %v1232_v13  ;;  %1181 = vmatpush3.bf16.msra.mxu1 %v1232_v13  ;;  %vm1104_vm0 = vmpackc.low %vm418_vm11, %vm417_vm10  ;;  %v399_v42 = vadd.s32 %v1392_v5, %v382_v38  ;;  %v406_v43 = vadd.s32 %v1392_v5, %v389_v39  ;;  %v1281_v31 = vmov (!%p1116_p9), 0   ;;  %v760_v36 = vld [vmem:[%s1379_s30 + $0x38] sm:$0xff] (!%p1116_p9)  ;;  %v759_v37 = vld [vmem:[%s1379_s30 + $0x30] sm:$0xff] (!%p1116_p9) }
  0x2b   : > { %1146 = vmatprep.subr.bf16.mxu0 %v1233_v16  ;;  %1174 = vmatprep.subr.bf16.mxu1 %v1233_v16  ;;  %vm1112_vm1 = vmpackc.low %vm426_vm14, %vm425_vm13  ;;  %v407_v44 = vadd.s32 %v1392_v5, %v390_v40  ;;  %vm419_vm2 = vcmp.eq.s32.totalorder %v1408_v14, %v398_v41  ;;  %v475_v5 = vld [vmem:[#allocation2 + $0x30] sm:$0xff]  ;;  %v762_v38 = vld [vmem:[%s1379_s30 + $0x48] sm:$0xff] (!%p1116_p9) }
  0x2c   : > { %vm420_vm3 = vcmp.eq.s32.totalorder %v1408_v14, %v399_v42  ;;  %vm427_vm4 = vcmp.eq.s32.totalorder %v1408_v14, %v406_v43  ;;  %1238 = vset.pattern.permute.xlu1 (!%p1116_p9), %v1281_v31  ;;  %1237 = vset.pattern.permute.xlu0 (!%p1116_p9), %v1281_v31  ;;  %v761_v39 = vld [vmem:[%s1379_s30 + $0x40] sm:$0xff] (!%p1116_p9)  ;;  %v764_v40 = vld [vmem:[%s1379_s30 + $0x58] sm:$0xff] (!%p1116_p9)  ;;  %v763_v41 = vld [vmem:[%s1379_s30 + $0x50] sm:$0xff] (!%p1116_p9) }
  0x2d   : > { %vm428_vm5 = vcmp.eq.s32.totalorder %v1408_v14, %v407_v44  ;;  %vm1106_vm6 = vmpackc.low %vm420_vm3, %vm419_vm2  ;;  %781 = vperm.xlu1 (!%p1116_p9), %1238, %v755_v29   ;;  %771 = vperm.xlu0 (!%p1116_p9), %1237, %v753_v30   ;;  %v766_v42 = vld [vmem:[%s1379_s30 + $0x68] sm:$0xff] (!%p1116_p9)  ;;  %v765_v43 = vld [vmem:[%s1379_s30 + $0x60] sm:$0xff] (!%p1116_p9) }
  0x2e   : > { %1147 = vmatpush3.bf16.msra.mxu0 %v1233_v16  ;;  %1182 = vmatpush3.bf16.msra.mxu1 %v1233_v16  ;;  %vm1114_vm7 = vmpackc.low %vm428_vm5, %vm427_vm4  ;;  %v768_v44 = vld [vmem:[%s1379_s30 + $0x78] sm:$0xff] (!%p1116_p9) }
  0x2f   : > { %1148 = vmatprep.subr.bf16.mxu0 %v1234_v18  ;;  %1175 = vmatprep.subr.bf16.mxu1 %v1234_v18 }
  0x31   : > { %776 = vperm.xlu0 (!%p1116_p9), %1237, %v754_v33  }
  0x32   : > { %1149 = vmatpush3.bf16.msra.mxu0 %v1234_v18  ;;  %1183 = vmatpush3.bf16.msra.mxu1 %v1234_v18  ;;  %v482_v18 = vld [vmem:[#allocation2 + $0x68] sm:$0xff] }
  0x33   : > { %1150 = vmatprep.subr.bf16.mxu0 %v1235_v23  ;;  %1176 = vmatprep.subr.bf16.mxu1 %v1235_v23 }
  0x35   : > { %791 = vperm.xlu0 (!%p1116_p9), %1237, %v757_v35  }
  0x36   : > { %1151 = vmatpush3.bf16.msra.mxu0 %v1235_v23  ;;  %1184 = vmatpush3.bf16.msra.mxu1 %v1235_v23 }
  0x37   : > { %1152 = vmatprep.subr.bf16.mxu0 %v1236_v32  ;;  %1177 = vmatprep.subr.bf16.mxu1 %v1236_v32 }
  0x39   : > { %801 = vperm.xlu0 (!%p1116_p9), %1237, %v759_v37  }
  0x3a   : > { %1153 = vmatpush3.bf16.msra.mxu0 %v1236_v32  ;;  %1185 = vmatpush3.bf16.msra.mxu1 %v1236_v32  ;;  %v756_v32 = vld [vmem:[%s1379_s30 + $0x18] sm:$0xff] (!%p1116_p9) }
  0x3b   : > { %786 = vperm.xlu1 (!%p1116_p9), %1238, %v756_v32  }
  0x3d   : > { %1155 = vmatmul.mubr.msk.bf16.vlgmr.msra.gmra.mrb[0].mxu0 %vm1102_vm12, %v1280_v17  ;;  %1163 = vmatmul.mubr.msk.bf16.vlgmr.msra.gmra.mrb[0].mxu1 %vm1110_vm15, %v1280_v17 }
  0x3e   : > { %1158 = vmatprep.mubr.msk.bf16.mxu0 %vm1104_vm0, %v1280_v17  ;;  %1166 = vmatprep.mubr.msk.bf16.mxu1 %vm1112_vm1, %v1280_v17 }
  0x3f   : > { %796 = vperm.xlu1 (!%p1116_p9), %1238, %v758_v34   ;;  %811 = vperm.xlu0 (!%p1116_p9), %1237, %v761_v39  }
  0x43   : > { %806 = vperm.xlu1 (!%p1116_p9), %1238, %v760_v36   ;;  %821 = vperm.xlu0 (!%p1116_p9), %1237, %v763_v41  }
  0x45   : > { %1159 = vmatmul.mubr.msk.bf16.gmra.mrb[4].mxu0 %vm1106_vm6, %v1280_v17  ;;  %1167 = vmatmul.mubr.msk.bf16.gmra.mrb[4].mxu1 %vm1114_vm7, %v1280_v17  ;;  %v474_v17 = vld [vmem:[#allocation2 + $0x28] sm:$0xff] }
  0x47   : > { %816 = vperm.xlu1 (!%p1116_p9), %1238, %v762_v38   ;;  %831 = vperm.xlu0 (!%p1116_p9), %1237, %v765_v43  }
  0x4b   : > { %826 = vperm.xlu1 (!%p1116_p9), %1238, %v764_v40  }
  0x4f   : > { %836 = vperm.xlu1 (!%p1116_p9), %1238, %v766_v42  }
  0x53   : > { %846 = vperm.xlu1 (!%p1116_p9), %1238, %v768_v44  }
 0x110   : > { %v1156_v49 = vpop.f32.mrb[0].mxu0  ;;  %v1164_v50 = vpop.f32.mrb[0].mxu1 }
 0x111   : > { %v648_v53 = vadd.f32 %v1156_v49, %v471_v45  ;;  %v656_v54 = vadd.f32 %v1164_v50, %v479_v46  ;;  %v583_v55 = vpop.f32.mrb[1].mxu0  ;;  %v615_v56 = vpop.f32.mrb[1].mxu1  ;;  %v767_v45 = vld [vmem:[%s1379_s30 + $0x70] sm:$0xff] (!%p1116_p9) }
 0x112   : > { %v646_v59 = vadd.f32 %v583_v55, %v469_v47  ;;  %v654_v60 = vadd.f32 %v615_v56, %v477_v48  ;;  %v1157_v61 = vpop.f32.mrb[2].mxu0  ;;  %v1165_v62 = vpop.f32.mrb[2].mxu1  ;;  %841 = vperm.xlu0 (!%p1116_p9), %1237, %v767_v45   ;;  %v700_v46 = vld [vmem:[%s1374_s21 + $0x10] sm:$0xff] (!%p1116_p9)  ;;  %v1484_v47 = vld [vmem:[%s1593_s3] ss:$0 sm:$0xff] (!%p1116_p9)  ;;  %v709_v45 = vld [vmem:[%s1374_s21 + $0x58] sm:$0xff] (!%p1116_p9) }
 0x113   : > { %664 = vst [vmem:[#allocation2 + $0x10] sm:$0xff] %v648_v53  ;;  %672 = vst [vmem:[#allocation2 + $0x50] sm:$0xff] %v656_v54  ;;  %v649_v63 = vadd.f32 %v1157_v61, %v472_v51  ;;  %v657_v0 = vadd.f32 %v1165_v62, %v480_v52  ;;  %v586_v1 = vpop.f32.mrb[3].mxu0  ;;  %v618_v2 = vpop.f32.mrb[3].mxu1  ;;  %v698_v48 = vld [vmem:[%s1374_s21] sm:$0xff] (!%p1116_p9)  ;;  %v723_v49 = vadd.f32 (!%p1116_p9), %v1484_v47, %v700_v46  ;;  %v701_v51 = vld [vmem:[%s1374_s21 + $0x18] sm:$0xff] (!%p1116_p9) }
 0x114   : > { %662 = vst [vmem:[#allocation2] sm:$0xff] %v646_v59  ;;  %670 = vst [vmem:[#allocation2 + $0x40] sm:$0xff] %v654_v60  ;;  %v647_v3 = vadd.f32 %v586_v1, %v470_v57  ;;  %v655_v4 = vadd.f32 %v618_v2, %v478_v58  ;;  %v721_v50 = vadd.f32 (!%p1116_p9), %v1484_v47, %v698_v48  ;;  %v699_v52 = vld [vmem:[%s1374_s21 + $0x8] sm:$0xff] (!%p1116_p9)  ;;  %v702_v58 = vld [vmem:[%s1374_s21 + $0x20] sm:$0xff] (!%p1116_p9)  ;;  %v782_v59 = vpop.permute.xlu1 (!%p1116_p9), %781  ;;  %v772_v61 = vpop.permute.xlu0 (!%p1116_p9), %771 }
 0x115   : > { %665 = vst [vmem:[#allocation2 + $0x18] sm:$0xff] %v649_v63  ;;  %673 = vst [vmem:[#allocation2 + $0x58] sm:$0xff] %v657_v0  ;;  %v739_v53 = vmax.f32 (!%p1116_p9), %v723_v49, 0.0  ;;  %v724_v55 = vadd.f32 (!%p1116_p9), %v1484_v47, %v701_v51  ;;  %v722_v56 = vadd.f32 (!%p1116_p9), %v1484_v47, %v699_v52  ;;  %v703_v57 = vld [vmem:[%s1374_s21 + $0x28] sm:$0xff] (!%p1116_p9)  ;;  %v708_v46 = vld [vmem:[%s1374_s21 + $0x50] sm:$0xff] (!%p1116_p9) }
 0x116   : > { %663 = vst [vmem:[#allocation2 + $0x8] sm:$0xff] %v647_v3  ;;  %671 = vst [vmem:[#allocation2 + $0x48] sm:$0xff] %v655_v4  ;;  %v737_v54 = vmax.f32 (!%p1116_p9), %v721_v50, 0.0  ;;  %v705_v3 = vld [vmem:[%s1374_s21 + $0x38] sm:$0xff] (!%p1116_p9)  ;;  %v704_v4 = vld [vmem:[%s1374_s21 + $0x30] sm:$0xff] (!%p1116_p9) }
 0x117   : > { %v851_v63 = vmul.f32 (!%p1116_p9), %v782_v59, %v739_v53  ;;  %v740_v1 = vmax.f32 (!%p1116_p9), %v724_v55, 0.0  ;;  %v738_v2 = vmax.f32 (!%p1116_p9), %v722_v56, 0.0 }
 0x118   : > { %v1160_v9 = vpop.f32.mrb[4].mxu0  ;;  %v1168_v10 = vpop.f32.mrb[4].mxu1  ;;  %681 = sbr.rel (%p1116_p9) target bundleno = 413 (0x19d), region = 56  ;;  %v849_v0 = vmul.f32 (!%p1116_p9), %v772_v61, %v737_v54  ;;  %v710_v61 = vld [vmem:[%s1374_s21 + $0x60] sm:$0xff] (!%p1116_p9) }
 0x119   : > { %v652_v13 = vadd.f32 %v1160_v9, %v475_v5  ;;  %v660_v14 = vadd.f32 %v1168_v10, %v483_v6  ;;  %v599_v15 = vpop.f32.mrb[5].mxu0  ;;  %v631_v16 = vpop.f32.mrb[5].mxu1  ;;  %v1500_v5 = vld [vmem:[%s1595_s5] ss:$0 sm:$0xff] (!%p1116_p9)  ;;  %v726_v6 = vadd.f32 (!%p1116_p9), %v1484_v47, %v703_v57 }
 0x11a   : > { %v650_v19 = vadd.f32 %v599_v15, %v473_v7  ;;  %v658_v20 = vadd.f32 %v631_v16, %v481_v8  ;;  %v1161_v21 = vpop.f32.mrb[6].mxu0  ;;  %v1169_v22 = vpop.f32.mrb[6].mxu1  ;;  %v684_v60 = vld [vmem:[#allocation2 + $0x10] sm:$0xff] (!%p1116_p9)  ;;  %v725_v7 = vadd.f32 (!%p1116_p9), %v1484_v47, %v702_v58  ;;  %v1507_v10 = vld [vmem:[%s1596_s6] ss:$0 sm:$0xff] (!%p1116_p9)  ;;  %v728_v15 = vadd.f32 (!%p1116_p9), %v1484_v47, %v705_v3 }
 0x11b   : > { %668 = vst [vmem:[#allocation2 + $0x30] sm:$0xff] %v652_v13  ;;  %676 = vst [vmem:[#allocation2 + $0x70] sm:$0xff] %v660_v14  ;;  %v653_v23 = vadd.f32 %v1161_v21, %v476_v11  ;;  %v661_v24 = vadd.f32 %v1169_v22, %v484_v12  ;;  %v602_v25 = vpop.f32.mrb[7].mxu0  ;;  %v634_v26 = vpop.f32.mrb[7].mxu1  ;;  %v682_v62 = vld [vmem:[#allocation2] sm:$0xff] (!%p1116_p9)  ;;  %v867_v8 = vadd.f32 (!%p1116_p9), %v851_v63, %v684_v60  ;;  %v707_v21 = vld [vmem:[%s1374_s21 + $0x48] sm:$0xff] (!%p1116_p9) }
 0x11c   : > { %666 = vst [vmem:[#allocation2 + $0x20] sm:$0xff] %v650_v19  ;;  %674 = vst [vmem:[#allocation2 + $0x60] sm:$0xff] %v658_v20  ;;  %v651_v27 = vadd.f32 %v602_v25, %v474_v17  ;;  %v659_v28 = vadd.f32 %v634_v26, %v482_v18  ;;  %v865_v9 = vadd.f32 (!%p1116_p9), %v849_v0, %v682_v62  ;;  %v787_v11 = vpop.permute.xlu1 (!%p1116_p9), %786  ;;  %v685_v12 = vld [vmem:[#allocation2 + $0x18] sm:$0xff] (!%p1116_p9)  ;;  %v777_v13 = vpop.permute.xlu0 (!%p1116_p9), %776  ;;  %v706_v22 = vld [vmem:[%s1374_s21 + $0x40] sm:$0xff] (!%p1116_p9)  ;;  %v744_v31 = vmax.f32 (!%p1116_p9), %v728_v15, 0.0 }
 0x11d   : > { %669 = vst [vmem:[#allocation2 + $0x38] sm:$0xff] %v653_v23  ;;  %677 = vst [vmem:[#allocation2 + $0x78] sm:$0xff] %v661_v24  ;;  %v683_v14 = vld [vmem:[#allocation2 + $0x8] sm:$0xff] (!%p1116_p9)  ;;  %v727_v16 = vadd.f32 (!%p1116_p9), %v1484_v47, %v704_v4  ;;  %v890_v17 = vmul.f32 (!%p1116_p9), %v1500_v5, %v867_v8  ;;  %v852_v19 = vmul.f32 (!%p1116_p9), %v787_v11, %v740_v1  ;;  %v742_v23 = vmax.f32 (!%p1116_p9), %v726_v6, 0.0  ;;  %v690_v11 = vld [vmem:[#allocation2 + $0x40] sm:$0xff] (!%p1116_p9) }
 0x11e   : > { %667 = vst [vmem:[#allocation2 + $0x28] sm:$0xff] %v651_v27  ;;  %675 = vst [vmem:[#allocation2 + $0x68] sm:$0xff] %v659_v28  ;;  %v888_v18 = vmul.f32 (!%p1116_p9), %v1500_v5, %v865_v9  ;;  %v850_v20 = vmul.f32 (!%p1116_p9), %v777_v13, %v738_v2  ;;  %v741_v24 = vmax.f32 (!%p1116_p9), %v725_v7, 0.0  ;;  %v730_v33 = vadd.f32 (!%p1116_p9), %v1484_v47, %v707_v21  ;;  %v711_v60 = vld [vmem:[%s1374_s21 + $0x68] sm:$0xff] (!%p1116_p9) }
 0x11f   : > { %v913_v25 = vadd.f32 %v1507_v10, %v890_v17  ;;  %v868_v27 = vadd.f32 %v852_v19, %v685_v12  ;;  %v743_v32 = vmax.f32 %v727_v16, 0.0  ;;  %v729_v34 = vadd.f32 %v1484_v47, %v706_v22  ;;  %v691_v8 = vld [vmem:[#allocation2 + $0x48] sm:$0xff]  ;;  %v712_v19 = vld [vmem:[%s1374_s21 + $0x70] sm:$0xff] }
 0x120   : > { %v911_v26 = vadd.f32 %v1507_v10, %v888_v18  ;;  %v866_v28 = vadd.f32 %v850_v20, %v683_v14  ;;  %v797_v29 = vpop.permute.xlu1 %796  ;;  %v792_v30 = vpop.permute.xlu0 %791  ;;  %v746_v54 = vmax.f32 %v730_v33, 0.0  ;;  %v732_v0 = vadd.f32 %v1484_v47, %v709_v45  ;;  %v713_v18 = vld [vmem:[%s1374_s21 + $0x78] sm:$0xff] }
 0x121   : > { %v929_v35 = vmax.f32 %v913_v25, 0.0  ;;  %v891_v37 = vmul.f32 %v1500_v5, %v868_v27  ;;  %v854_v41 = vmul.f32 %v797_v29, %v742_v23  ;;  %v853_v42 = vmul.f32 %v792_v30, %v741_v24 }
 0x122   : > { %v927_v36 = vmax.f32 %v911_v26, 0.0  ;;  %v889_v38 = vmul.f32 %v1500_v5, %v866_v28  ;;  %v688_v53 = vld [vmem:[#allocation2 + $0x30] sm:$0xff]  ;;  %v745_v55 = vmax.f32 %v729_v34, 0.0  ;;  %v731_v1 = vadd.f32 %v1484_v47, %v708_v46 }
 0x123   : > { %v686_v40 = vld [vmem:[#allocation2 + $0x20] sm:$0xff]  ;;  %945 = vst [vmem:[%s1384_s8 + $0x10] sm:$0xff] %v929_v35  ;;  %v914_v43 = vadd.f32 %v1507_v10, %v891_v37  ;;  %v734_v12 = vadd.f32 %v1484_v47, %v711_v60  ;;  %v733_v13 = vadd.f32 %v1484_v47, %v710_v61  ;;  %v748_v22 = vmax.f32 %v732_v0, 0.0 }
 0x124   : > { %943 = vst [vmem:[%s1384_s8] sm:$0xff] %v927_v36  ;;  %v912_v44 = vadd.f32 %v1507_v10, %v889_v38  ;;  %v869_v49 = vadd.f32 %v853_v42, %v686_v40  ;;  %v807_v50 = vpop.permute.xlu1 %806  ;;  %v689_v51 = vld [vmem:[#allocation2 + $0x38] sm:$0xff]  ;;  %v802_v52 = vpop.permute.xlu0 %801  ;;  %v747_v23 = vmax.f32 %v731_v1, 0.0  ;;  %v735_v33 = vadd.f32 %v1484_v47, %v712_v19  ;;  %v696_v1 = vld [vmem:[#allocation2 + $0x70] sm:$0xff] }
 0x125   : > { %v687_v39 = vld [vmem:[#allocation2 + $0x28] sm:$0xff]  ;;  %v930_v56 = vmax.f32 %v914_v43, 0.0  ;;  %v856_v58 = vmul.f32 %v807_v50, %v744_v31  ;;  %v855_v59 = vmul.f32 %v802_v52, %v743_v32  ;;  %v750_v30 = vmax.f32 %v734_v12, 0.0  ;;  %v693_v38 = vld [vmem:[#allocation2 + $0x58] sm:$0xff] }
 0x126   : > { %v870_v48 = vadd.f32 %v854_v41, %v687_v39  ;;  %v928_v57 = vmax.f32 %v912_v44, 0.0  ;;  %v892_v63 = vmul.f32 %v1500_v5, %v869_v49  ;;  %v749_v31 = vmax.f32 %v733_v13, 0.0  ;;  %v692_v39 = vld [vmem:[#allocation2 + $0x50] sm:$0xff]  ;;  %v695_v46 = vld [vmem:[#allocation2 + $0x68] sm:$0xff]  ;;  %v694_v49 = vld [vmem:[#allocation2 + $0x60] sm:$0xff] }
 0x127   : > { %946 = vst [vmem:[%s1384_s8 + $0x18] sm:$0xff] %v930_v56  ;;  %v872_v2 = vadd.f32 %v856_v58, %v689_v51  ;;  %v871_v3 = vadd.f32 %v855_v59, %v688_v53  ;;  %v736_v32 = vadd.f32 %v1484_v47, %v713_v18  ;;  %v751_v51 = vmax.f32 %v735_v33, 0.0 }
 0x128   : > { %v893_v62 = vmul.f32 %v1500_v5, %v870_v48  ;;  %944 = vst [vmem:[%s1384_s8 + $0x8] sm:$0xff] %v928_v57  ;;  %v915_v6 = vadd.f32 %v1507_v10, %v892_v63  ;;  %v817_v7 = vpop.permute.xlu1 %816  ;;  %v812_v9 = vpop.permute.xlu0 %811  ;;  %v697_v63 = vld [vmem:[#allocation2 + $0x78] sm:$0xff] }
 0x129   : > { %v895_v14 = vmul.f32 %v1500_v5, %v872_v2  ;;  %v894_v15 = vmul.f32 %v1500_v5, %v871_v3  ;;  %v858_v16 = vmul.f32 %v817_v7, %v746_v54  ;;  %v857_v17 = vmul.f32 %v812_v9, %v745_v55 }
 0x12a   : > { %v916_v4 = vadd.f32 %v1507_v10, %v893_v62  ;;  %v931_v21 = vmax.f32 %v915_v6, 0.0  ;;  %v752_v50 = vmax.f32 %v736_v32, 0.0 }
 0x12b   : > { %v918_v24 = vadd.f32 %v1507_v10, %v895_v14  ;;  %v917_v25 = vadd.f32 %v1507_v10, %v894_v15  ;;  %v874_v26 = vadd.f32 %v858_v16, %v691_v8  ;;  %v873_v27 = vadd.f32 %v857_v17, %v690_v11 }
 0x12c   : > { %v932_v20 = vmax.f32 %v916_v4, 0.0  ;;  %947 = vst [vmem:[%s1384_s8 + $0x20] sm:$0xff] %v931_v21  ;;  %v827_v28 = vpop.permute.xlu1 %826  ;;  %v822_v29 = vpop.permute.xlu0 %821 }
 0x12d   : > { %v934_v34 = vmax.f32 %v918_v24, 0.0  ;;  %v933_v35 = vmax.f32 %v917_v25, 0.0  ;;  %v897_v36 = vmul.f32 %v1500_v5, %v874_v26  ;;  %v896_v37 = vmul.f32 %v1500_v5, %v873_v27 }
 0x12e   : > { %948 = vst [vmem:[%s1384_s8 + $0x28] sm:$0xff] %v932_v20  ;;  %v860_v40 = vmul.f32 %v827_v28, %v748_v22  ;;  %v859_v41 = vmul.f32 %v822_v29, %v747_v23 }
 0x12f   : > { %950 = vst [vmem:[%s1384_s8 + $0x38] sm:$0xff] %v934_v34  ;;  %949 = vst [vmem:[%s1384_s8 + $0x30] sm:$0xff] %v933_v35  ;;  %v920_v42 = vadd.f32 %v1507_v10, %v897_v36  ;;  %v919_v43 = vadd.f32 %v1507_v10, %v896_v37 }
 0x130   : > { %v876_v44 = vadd.f32 %v860_v40, %v693_v38  ;;  %v875_v47 = vadd.f32 %v859_v41, %v692_v39  ;;  %v837_v45 = vpop.permute.xlu1 %836  ;;  %v832_v48 = vpop.permute.xlu0 %831 }
 0x131   : > { %v936_v52 = vmax.f32 %v920_v42, 0.0  ;;  %v935_v53 = vmax.f32 %v919_v43, 0.0  ;;  %v862_v54 = vmul.f32 %v837_v45, %v750_v30  ;;  %v861_v55 = vmul.f32 %v832_v48, %v749_v31 }
 0x132   : > { %v899_v56 = vmul.f32 %v1500_v5, %v876_v44  ;;  %v898_v57 = vmul.f32 %v1500_v5, %v875_v47 }
 0x133   : > { %952 = vst [vmem:[%s1384_s8 + $0x48] sm:$0xff] %v936_v52  ;;  %951 = vst [vmem:[%s1384_s8 + $0x40] sm:$0xff] %v935_v53  ;;  %v878_v58 = vadd.f32 %v862_v54, %v695_v46  ;;  %v877_v59 = vadd.f32 %v861_v55, %v694_v49 }
 0x134   : > { %v922_v60 = vadd.f32 %v1507_v10, %v899_v56  ;;  %v921_v61 = vadd.f32 %v1507_v10, %v898_v57  ;;  %v847_v62 = vpop.permute.xlu1 %846 }
 0x135   : > { %v901_v2 = vmul.f32 %v1500_v5, %v878_v58  ;;  %v900_v3 = vmul.f32 %v1500_v5, %v877_v59  ;;  %v864_v4 = vmul.f32 %v847_v62, %v752_v50 }
 0x136   : > { %v938_v7 = vmax.f32 %v922_v60, 0.0  ;;  %v937_v8 = vmax.f32 %v921_v61, 0.0 }
 0x137   : > { %v924_v9 = vadd.f32 %v1507_v10, %v901_v2  ;;  %v923_v11 = vadd.f32 %v1507_v10, %v900_v3  ;;  %v880_v12 = vadd.f32 %v864_v4, %v697_v63 }
 0x138   : > { %954 = vst [vmem:[%s1384_s8 + $0x58] sm:$0xff] %v938_v7  ;;  %953 = vst [vmem:[%s1384_s8 + $0x50] sm:$0xff] %v937_v8 }
 0x139   : > { %v940_v14 = vmax.f32 %v924_v9, 0.0  ;;  %v939_v15 = vmax.f32 %v923_v11, 0.0  ;;  %v903_v16 = vmul.f32 %v1500_v5, %v880_v12 }
 0x13b   : > { %956 = vst [vmem:[%s1384_s8 + $0x68] sm:$0xff] %v940_v14  ;;  %955 = vst [vmem:[%s1384_s8 + $0x60] sm:$0xff] %v939_v15  ;;  %v926_v18 = vadd.f32 %v1507_v10, %v903_v16 }
 0x13d   : > { %v942_v20 = vmax.f32 %v926_v18, 0.0 }
 0x13f   : > { %958 = vst [vmem:[%s1384_s8 + $0x78] sm:$0xff] %v942_v20 }
 0x191   : > { %v842_v0 = vpop.permute.xlu0 %841 }
 0x192   : > { %v863_v6 = vmul.f32 %v842_v0, %v751_v51 }
 0x194   : > { %v879_v13 = vadd.f32 %v863_v6, %v696_v1 }
 0x196   : > { %v902_v17 = vmul.f32 %v1500_v5, %v879_v13 }
 0x198   : > { %v925_v19 = vadd.f32 %v1507_v10, %v902_v17 }
 0x19a   : > { %v941_v21 = vmax.f32 %v925_v19, 0.0 }
 0x19c   : > { %957 = vst [vmem:[%s1384_s8 + $0x70] sm:$0xff] %v941_v21 }
 0x19d PF: > { %s17_s28 = sadd.s32 1, %s1277_s28   ;;  %s1599_s17 = sld [smem:[#allocation3_spill]] }
 0x19e   : > { %p14_p10 = scmp.ge.s32.totalorder %s17_s28, 8   ;;  %s1600_s24 = smov %s1269_s26 }
 0x19f   : > { %s1601_s25 = smov %s1273_s27  ;;  %s1602_s26 = smov %s1605_s29 }
 0x1a0   :  { %16 = sbr.rel (!%p14_p10) target bundleno = 3 (0x3), region = 95 }
 0x1a3   : > { %s1603_s27 = smov %s1599_s17 }

// kernel: egnn_forward.19
= control target key start
LH: loop header
LB: loop body
LE: loop exit
PB: predicated region body
PF: predicated region fallthrough
CT: control target
= control target key end

     0   :  { %v366_v3 = vmov 0.0|0.0   ;;  %vm367_vm0 = vmmov 0   ;;  %s558_s0 = inlined_call_operand.vmem [shape: f32[256,128], index: 0, kind: input, shape index: {}]   ;;  %s559_s1 = inlined_call_operand.vmem [shape: f32[8,256], index: 1, kind: input, shape index: {}]   ;;  %s560_s2 = inlined_call_operand.vmem [shape: f32[128,128], index: 2, kind: input, shape index: {}]   ;;  %s561_s3 = inlined_call_operand.vmem [shape: f32[1,128], index: 3, kind: input, shape index: {}]   ;;  %s562_s4 = inlined_call_operand.vmem [shape: f32[8,128], index: 4, kind: output, shape index: {}]  }
   0x1   :  { %v35_v0 = vld [vmem:[%s558_s0 + $0x80] sm:$0xff]  ;;  %v36_v1 = vld [vmem:[%s558_s0 + $0x88] sm:$0xff]  ;;  %339 = vmatprep.subr.bf16.mxu1 %v366_v3  ;;  %v37_v6 = vld [vmem:[%s558_s0 + $0x90] sm:$0xff] }
   0x2   :  { %v19_v2 = vld [vmem:[%s558_s0] sm:$0xff]  ;;  %v307_v4 = vpack.c.bf16 %v36_v1, %v35_v0  ;;  %v20_v5 = vld [vmem:[%s558_s0 + $0x8] sm:$0xff]  ;;  %v38_v7 = vld [vmem:[%s558_s0 + $0x98] sm:$0xff] }
   0x3   :  { %v309_v8 = vpack.c.bf16 %v20_v5, %v19_v2  ;;  %v311_v9 = vpack.c.bf16 %v38_v7, %v37_v6  ;;  %v21_v10 = vld [vmem:[%s558_s0 + $0x10] sm:$0xff]  ;;  %v22_v11 = vld [vmem:[%s558_s0 + $0x18] sm:$0xff]  ;;  %v39_v12 = vld [vmem:[%s558_s0 + $0xa0] sm:$0xff] }
   0x4   :  { %308 = vmatprep.subr.bf16.mxu0 %v307_v4  ;;  %v40_v13 = vld [vmem:[%s558_s0 + $0xa8] sm:$0xff]  ;;  %v313_v14 = vpack.c.bf16 %v22_v11, %v21_v10  ;;  %v23_v16 = vld [vmem:[%s558_s0 + $0x20] sm:$0xff]  ;;  %v41_v18 = vld [vmem:[%s558_s0 + $0xb0] sm:$0xff] }
   0x5   :  { %310 = vmatpush3.bf16.msra.mxu0 %v309_v8  ;;  %v315_v15 = vpack.c.bf16 %v40_v13, %v39_v12  ;;  %v24_v17 = vld [vmem:[%s558_s0 + $0x28] sm:$0xff]  ;;  %v42_v19 = vld [vmem:[%s558_s0 + $0xb8] sm:$0xff]  ;;  %v25_v22 = vld [vmem:[%s558_s0 + $0x30] sm:$0xff]  ;;  %v368_v12 = vmov 0.0  }
   0x6   :  { %312 = vmatprep.subr.bf16.mxu0 %v311_v9  ;;  %v317_v20 = vpack.c.bf16 %v24_v17, %v23_v16  ;;  %v319_v21 = vpack.c.bf16 %v42_v19, %v41_v18  ;;  %v26_v23 = vld [vmem:[%s558_s0 + $0x38] sm:$0xff]  ;;  %v43_v24 = vld [vmem:[%s558_s0 + $0xc0] sm:$0xff]  ;;  %v44_v25 = vld [vmem:[%s558_s0 + $0xc8] sm:$0xff]  ;;  %304 = vmatprep.mubr.msk.f32.mxu1 %vm367_vm0, %v368_v12 }
   0x7   :  { %v18_v26 = vld [vmem:[%s559_s1 + $0x8] sm:$0xff]  ;;  %v121_v27 = vld [vmem:[%s560_s2] sm:$0xff]  ;;  %v321_v29 = vpack.c.bf16 %v26_v23, %v25_v22  ;;  %v123_v31 = vld [vmem:[%s560_s2 + $0x10] sm:$0xff]  ;;  %v323_v33 = vpack.c.bf16 %v44_v25, %v43_v24 }
   0x8   :  { %115 = vmatprep.mubr.f32.mxu0 %v18_v26  ;;  %v122_v28 = vld [vmem:[%s560_s2 + $0x8] sm:$0xff]  ;;  %v124_v32 = vld [vmem:[%s560_s2 + $0x18] sm:$0xff]  ;;  %v27_v34 = vld [vmem:[%s558_s0 + $0x40] sm:$0xff] }
   0x9   :  { %314 = vmatpush3.bf16.msra.mxu0 %v313_v14  ;;  %v340_v30 = vpack.c.bf16 %v122_v28, %v121_v27  ;;  %v28_v35 = vld [vmem:[%s558_s0 + $0x48] sm:$0xff]  ;;  %v45_v36 = vld [vmem:[%s558_s0 + $0xd0] sm:$0xff]  ;;  %v46_v37 = vld [vmem:[%s558_s0 + $0xd8] sm:$0xff]  ;;  %v343_v38 = vpack.c.bf16 %v124_v32, %v123_v31 }
   0xa   :  { %316 = vmatprep.subr.bf16.mxu0 %v315_v15  ;;  %v125_v39 = vld [vmem:[%s560_s2 + $0x20] sm:$0xff]  ;;  %v126_v40 = vld [vmem:[%s560_s2 + $0x28] sm:$0xff]  ;;  %v325_v41 = vpack.c.bf16 %v28_v35, %v27_v34  ;;  %v327_v42 = vpack.c.bf16 %v46_v37, %v45_v36  ;;  %v29_v43 = vld [vmem:[%s558_s0 + $0x50] sm:$0xff] }
   0xb   :  { %341 = vmatpush3.bf16.msra.mxu1 %v340_v30  ;;  %v30_v44 = vld [vmem:[%s558_s0 + $0x58] sm:$0xff]  ;;  %v47_v45 = vld [vmem:[%s558_s0 + $0xe0] sm:$0xff]  ;;  %v48_v46 = vld [vmem:[%s558_s0 + $0xe8] sm:$0xff]  ;;  %v346_v47 = vpack.c.bf16 %v126_v40, %v125_v39 }
   0xc   :  { %342 = vmatprep.subr.bf16.mxu1 %v366_v3  ;;  %v127_v48 = vld [vmem:[%s560_s2 + $0x30] sm:$0xff]  ;;  %v128_v49 = vld [vmem:[%s560_s2 + $0x38] sm:$0xff]  ;;  %v329_v50 = vpack.c.bf16 %v30_v44, %v29_v43  ;;  %v331_v51 = vpack.c.bf16 %v48_v46, %v47_v45  ;;  %v31_v52 = vld [vmem:[%s558_s0 + $0x60] sm:$0xff] }
   0xd   :  { %318 = vmatpush3.bf16.msra.mxu0 %v317_v20  ;;  %v32_v53 = vld [vmem:[%s558_s0 + $0x68] sm:$0xff]  ;;  %v49_v54 = vld [vmem:[%s558_s0 + $0xf0] sm:$0xff]  ;;  %v50_v55 = vld [vmem:[%s558_s0 + $0xf8] sm:$0xff]  ;;  %v349_v56 = vpack.c.bf16 %v128_v49, %v127_v48 }
   0xe   :  { %320 = vmatprep.subr.bf16.mxu0 %v319_v21  ;;  %v129_v57 = vld [vmem:[%s560_s2 + $0x40] sm:$0xff]  ;;  %v130_v58 = vld [vmem:[%s560_s2 + $0x48] sm:$0xff]  ;;  %v333_v59 = vpack.c.bf16 %v32_v53, %v31_v52  ;;  %v335_v60 = vpack.c.bf16 %v50_v55, %v49_v54  ;;  %v33_v61 = vld [vmem:[%s558_s0 + $0x70] sm:$0xff] }
   0xf   :  { %344 = vmatpush3.bf16.msra.mxu1 %v343_v38  ;;  %v34_v62 = vld [vmem:[%s558_s0 + $0x78] sm:$0xff]  ;;  %v352_v63 = vpack.c.bf16 %v130_v58, %v129_v57  ;;  %v131_v0 = vld [vmem:[%s560_s2 + $0x50] sm:$0xff]  ;;  %v133_v5 = vld [vmem:[%s560_s2 + $0x60] sm:$0xff] }
  0x10   :  { %345 = vmatprep.subr.bf16.mxu1 %v366_v3  ;;  %v132_v1 = vld [vmem:[%s560_s2 + $0x58] sm:$0xff]  ;;  %v337_v2 = vpack.c.bf16 %v34_v62, %v33_v61  ;;  %v134_v6 = vld [vmem:[%s560_s2 + $0x68] sm:$0xff]  ;;  %v17_v7 = vld [vmem:[%s559_s1] sm:$0xff] }
  0x11   :  { %322 = vmatpush3.bf16.msra.mxu0 %v321_v29  ;;  %v355_v4 = vpack.c.bf16 %v132_v1, %v131_v0  ;;  %v358_v8 = vpack.c.bf16 %v134_v6, %v133_v5  ;;  %v135_v9 = vld [vmem:[%s560_s2 + $0x70] sm:$0xff]  ;;  %v136_v10 = vld [vmem:[%s560_s2 + $0x78] sm:$0xff] }
  0x12   :  { %324 = vmatprep.subr.bf16.mxu0 %v323_v33  ;;  %v361_v11 = vpack.c.bf16 %v136_v10, %v135_v9 }
  0x13   :  { %347 = vmatpush3.bf16.msra.mxu1 %v346_v47 }
  0x14   :  { %348 = vmatprep.subr.bf16.mxu1 %v366_v3 }
  0x15   :  { %326 = vmatpush3.bf16.msra.mxu0 %v325_v41 }
  0x16   :  { %328 = vmatprep.subr.bf16.mxu0 %v327_v42 }
  0x17   :  { %350 = vmatpush3.bf16.msra.mxu1 %v349_v56 }
  0x18   :  { %351 = vmatprep.subr.bf16.mxu1 %v366_v3 }
  0x19   :  { %330 = vmatpush3.bf16.msra.mxu0 %v329_v50 }
  0x1a   :  { %332 = vmatprep.subr.bf16.mxu0 %v331_v51 }
  0x1b   :  { %353 = vmatpush3.bf16.msra.mxu1 %v352_v63 }
  0x1c   :  { %354 = vmatprep.subr.bf16.mxu1 %v366_v3 }
  0x1d   :  { %334 = vmatpush3.bf16.msra.mxu0 %v333_v59 }
  0x1e   :  { %336 = vmatprep.subr.bf16.mxu0 %v335_v60 }
  0x1f   :  { %356 = vmatpush3.bf16.msra.mxu1 %v355_v4 }
  0x20   :  { %357 = vmatprep.subr.bf16.mxu1 %v366_v3 }
  0x21   :  { %338 = vmatpush3.bf16.msra.mxu0 %v337_v2 }
  0x23   :  { %359 = vmatpush3.bf16.msra.mxu1 %v358_v8 }
  0x24   :  { %116 = vmatmul.mubr.f32.vlgmr.msra.gmra.mrb[0].mxu0 %v17_v7  ;;  %360 = vmatprep.subr.bf16.mxu1 %v366_v3  ;;  %v219_v3 = vld [vmem:[%s561_s3] ss:$0 sm:$0xff] }
  0x27   :  { %362 = vmatpush3.bf16.msra.mxu1 %v361_v11 }
  0xf7   :  { %v252_v13 = vpop.f32.mrb[0].mxu0 }
  0xf8   :  { %v253_v14 = vpop.f32.mrb[1].mxu0 }
  0xf9   :  { %v254_v15 = vadd.f32 %v253_v14, %v252_v13 }
  0xfb   :  { %305 = vmatmul.mubr.f32.vlgmr.msra.gmra.mrb[0].mxu1 %v254_v15 }
 0x1ce   :  { %v210_v16 = vpop.f32.mrb[0].mxu1 }
 0x1cf   :  { %v211_v17 = vadd.f32 %v219_v3, %v210_v16  ;;  %v306_v18 = vpop.f32.mrb[1].mxu1 }
 0x1d1   :  { %214 = vst [vmem:[%s562_s4] sm:$0xff] %v211_v17 }

// kernel: egnn_forward.18
= control target key start
LH: loop header
LB: loop body
LE: loop exit
PB: predicated region body
PF: predicated region fallthrough
CT: control target
= control target key end

     0   :  { %s1306_s24 = smov 0   ;;  %s1308_s25 = smov 0   ;;  %s1574_s0 = inlined_call_operand.vmem [shape: s32[1,384], index: 0, kind: input, shape index: {}]   ;;  %s1575_s1 = inlined_call_operand.vmem [shape: bf16[384,128], index: 1, kind: input, shape index: {}]   ;;  %s1576_s2 = inlined_call_operand.vmem [shape: f32[256,128], index: 2, kind: input, shape index: {}]   ;;  %s1577_s3 = inlined_call_operand.vmem [shape: f32[1,128], index: 3, kind: input, shape index: {}]   ;;  %s1578_s4 = inlined_call_operand.vmem [shape: f32[256,1], index: 4, kind: input, shape index: {}]   ;;  %s1579_s5 = inlined_call_operand.vmem [shape: f32[1,128], index: 5, kind: input, shape index: {}]   ;;  %s1580_s6 = inlined_call_operand.vmem [shape: f32[1,128], index: 6, kind: input, shape index: {}]   ;;  %s1581_s7 = inlined_call_operand.vmem [shape: f32[256,128], index: 7, kind: output, shape index: {}]  }
   0x1   :  { %s1310_s26 = smov 0   ;;  %s1312_s27 = smov 0  }
   0x2   :  { %s1314_s28 = smov 0  }
   0x3 LB: > { %s26_s29 = sadd.s32 1, %s1253_s26  ;;  %s29_s30 = sadd.s32 1, %s1257_s27  ;;  %s1261_s28 = sphi %s1314_s28, %s17_s28   ;;  %s1257_s27 = sphi %s1312_s27, %s1587_s27   ;;  %s1253_s26 = sphi %s1310_s26, %s1586_s26   ;;  %s1249_s25 = sphi %s1308_s25, %s1585_s25   ;;  %s1245_s24 = sphi %s1306_s24, %s1584_s24  }
   0x4   : > { %p27_p0 = scmp.ge.s32.totalorder %s26_s29, 3  ;;  %p1048_p1 = scmp.ge.s32.totalorder %s1261_s28, 1 }
   0x5   : > { %p280_p2 = scmp.lt.s32.totalorder %s1261_s28, 7 }
   0x6   : > { %s1589_s29 = smov (%p27_p0, %s26_s29), 0  ;;  %s1591_s30 = smov (!%p27_p0, %s29_s30), %s1257_s27 }
   0x7   : > { %p281_p3 = pnand %p1048_p1, %p280_p2  ;;  %p31_p4 = scmp.ge.s32.totalorder %s1591_s30, 2 }
   0x8   : > { %p325_p5 = scmp.lt.s32.totalorder (!%p281_p3), %s1245_s24, 2  ;;  %s1049_s8 = sshll.u32 (!%p281_p3), %s1245_s24, 4 }
   0x9   : > { %s1593_s30 = smov (%p31_p4, %s1591_s30), 0  ;;  %284 = sbr.rel (%p281_p3) target bundleno = 411 (0x19b), region = 48 }
   0xa   : > { %1582 = sst [smem:[#allocation3_spill]] %s1593_s30  ;;  %p329_p6 = scmp.lt.s32.totalorder (!%p281_p3), %s1049_s8, 47 }
   0xb   : > { %s1051_s9 = sshll.u32 (!%p281_p3), %s1249_s25, 4  ;;  %p1057_p8 = scmp.ne.s32.totalorder (!%p281_p3), %s1245_s24, 0 }
   0xc   : > { %p335_p7 = scmp.lt.s32.totalorder (!%p281_p3), %s1051_s9, 31 }
  0x10   : > { %s1344_s10 = scalar_select %p325_p5, %s1245_s24, 2 }
  0x11   : > { %s1595_s8 = smov (!%p329_p6, %s1049_s8), 47  ;;  %s1597_s9 = smov (!%p335_p7, %s1051_s9), 31 }
  0x12   : > { %s327_s13 = scalar_lea.vmem %s1574_s0, %s1344_s10  ;;  %s1050_s14 = sshll.u32 %s1595_s8, 2  ;;  %v1263_v0 = vmov (!%p1057_p8), 0.0  }
  0x13   : > { %s1353_s17 = scalar_lea.vmem %s1575_s1, %s1050_s14  ;;  %s1052_s18 = sshll.u32 %s1597_s9, 3  ;;  %357 = vst [vmem:[#allocation2] sm:$0xff] (!%p1057_p8), %v1263_v0  ;;  %358 = vst [vmem:[#allocation2 + $0x8] sm:$0xff] (!%p1057_p8), %v1263_v0 }
  0x14   : > { %s1358_s21 = scalar_lea.vmem %s1576_s2, %s1052_s18  ;;  %s1363_s30 = scalar_lea.vmem %s1578_s4, %s1052_s18  ;;  %359 = vst [vmem:[#allocation2 + $0x10] sm:$0xff] (!%p1057_p8), %v1263_v0  ;;  %360 = vst [vmem:[#allocation2 + $0x18] sm:$0xff] (!%p1057_p8), %v1263_v0 }
  0x15   : > { %s1368_s8 = scalar_lea.vmem %s1581_s7, %s1052_s18  ;;  %356 = sbr.rel (%p1057_p8) target bundleno = 28 (0x1c), region = 52  ;;  %361 = vst [vmem:[#allocation2 + $0x20] sm:$0xff] (!%p1057_p8), %v1263_v0  ;;  %362 = vst [vmem:[#allocation2 + $0x28] sm:$0xff] (!%p1057_p8), %v1263_v0 }
  0x16   : > { %363 = vst [vmem:[#allocation2 + $0x30] sm:$0xff] (!%p1057_p8), %v1263_v0  ;;  %364 = vst [vmem:[#allocation2 + $0x38] sm:$0xff] (!%p1057_p8), %v1263_v0 }
  0x17   : > { %365 = vst [vmem:[#allocation2 + $0x40] sm:$0xff] (!%p1057_p8), %v1263_v0  ;;  %366 = vst [vmem:[#allocation2 + $0x48] sm:$0xff] (!%p1057_p8), %v1263_v0 }
  0x18   : > { %367 = vst [vmem:[#allocation2 + $0x50] sm:$0xff] (!%p1057_p8), %v1263_v0  ;;  %368 = vst [vmem:[#allocation2 + $0x58] sm:$0xff] (!%p1057_p8), %v1263_v0 }
  0x19   : > { %369 = vst [vmem:[#allocation2 + $0x60] sm:$0xff] (!%p1057_p8), %v1263_v0  ;;  %370 = vst [vmem:[#allocation2 + $0x68] sm:$0xff] (!%p1057_p8), %v1263_v0 }
  0x1a   : > { %371 = vst [vmem:[#allocation2 + $0x70] sm:$0xff] (!%p1057_p8), %v1263_v0  ;;  %372 = vst [vmem:[#allocation2 + $0x78] sm:$0xff] (!%p1057_p8), %v1263_v0 }
  0x1c PF: > { %v1213_v1 = vld [vmem:[%s1353_s17] sm:$0xff]   ;;  %s1058_s9 = sshll.u32 %s1249_s25, 7  ;;  %v374_v2 = vlaneseq  ;;  %v1214_v3 = vld [vmem:[%s1353_s17 + $0x8] sm:$0xff]   ;;  %v1215_v6 = vld [vmem:[%s1353_s17 + $0x10] sm:$0xff]   ;;  %v1264_v17 = vmov 1.0|1.0  }
  0x1d   : > { %1122 = vmatprep.subr.bf16.mxu0 %v1213_v1  ;;  %1154 = vmatprep.subr.bf16.mxu1 %v1213_v1  ;;  %v1376_v5 = vstv %s1058_s9  ;;  %v1216_v13 = vld [vmem:[%s1353_s17 + $0x18] sm:$0xff]   ;;  %v1392_v14 = vld [vmem:[%s327_s13] ss:$0 sm:$0xff]  ;;  %v1218_v18 = vld [vmem:[%s1353_s17 + $0x28] sm:$0xff]   ;;  %p1100_p9 = scmp.ne.s32.totalorder %s1245_s24, 2 }
  0x1e   : > { %v1374_v4 = vshrl.u32 %v374_v2, 7  ;;  %1123 = vmatpush3.bf16.msra.mxu0 %v1213_v1  ;;  %1162 = vmatpush3.bf16.msra.mxu1 %v1213_v1  ;;  %v1217_v16 = vld [vmem:[%s1353_s17 + $0x20] sm:$0xff]   ;;  %v1219_v23 = vld [vmem:[%s1353_s17 + $0x30] sm:$0xff]   ;;  %v1220_v32 = vld [vmem:[%s1353_s17 + $0x38] sm:$0xff]  }
  0x1f   : > { %1124 = vmatprep.subr.bf16.mxu0 %v1214_v3  ;;  %1155 = vmatprep.subr.bf16.mxu1 %v1214_v3  ;;  %v471_v45 = vld [vmem:[#allocation2 + $0x10] sm:$0xff]  ;;  %v469_v47 = vld [vmem:[#allocation2] sm:$0xff]  ;;  %v472_v51 = vld [vmem:[#allocation2 + $0x18] sm:$0xff] }
  0x20   : > { %v376_v7 = vadd.s32 8, %v1374_v4  ;;  %v392_v8 = vadd.s32 %v1376_v5, %v1374_v4  ;;  %v383_v9 = vadd.s32 64, %v1374_v4  ;;  %v384_v11 = vadd.s32 72, %v1374_v4  ;;  %v479_v46 = vld [vmem:[#allocation2 + $0x50] sm:$0xff]  ;;  %v477_v48 = vld [vmem:[#allocation2 + $0x40] sm:$0xff]  ;;  %v480_v52 = vld [vmem:[#allocation2 + $0x58] sm:$0xff] }
  0x21   : > { %v377_v19 = vadd.s32 16, %v1374_v4  ;;  %v378_v20 = vadd.s32 24, %v1374_v4  ;;  %v385_v21 = vadd.s32 80, %v1374_v4  ;;  %v386_v22 = vadd.s32 88, %v1374_v4  ;;  %v470_v57 = vld [vmem:[#allocation2 + $0x8] sm:$0xff] }
  0x22   : > { %v393_v10 = vadd.s32 %v1376_v5, %v376_v7  ;;  %1125 = vmatpush3.bf16.msra.mxu0 %v1214_v3  ;;  %1163 = vmatpush3.bf16.msra.mxu1 %v1214_v3  ;;  %v400_v12 = vadd.s32 %v1376_v5, %v383_v9  ;;  %v401_v15 = vadd.s32 %v1376_v5, %v384_v11  ;;  %v379_v24 = vadd.s32 32, %v1374_v4  ;;  %v478_v58 = vld [vmem:[#allocation2 + $0x48] sm:$0xff]  ;;  %v473_v7 = vld [vmem:[#allocation2 + $0x20] sm:$0xff]  ;;  %v476_v11 = vld [vmem:[#allocation2 + $0x38] sm:$0xff] }
  0x23   : > { %1126 = vmatprep.subr.bf16.mxu0 %v1215_v6  ;;  %1156 = vmatprep.subr.bf16.mxu1 %v1215_v6  ;;  %vm413_vm0 = vcmp.eq.s32.totalorder %v1392_v14, %v392_v8  ;;  %v380_v25 = vadd.s32 40, %v1374_v4  ;;  %v387_v26 = vadd.s32 96, %v1374_v4  ;;  %v388_v27 = vadd.s32 104, %v1374_v4  ;;  %v481_v8 = vld [vmem:[#allocation2 + $0x60] sm:$0xff] }
  0x24   : > { %vm414_vm1 = vcmp.eq.s32.totalorder %v1392_v14, %v393_v10  ;;  %vm421_vm2 = vcmp.eq.s32.totalorder %v1392_v14, %v400_v12  ;;  %vm422_vm4 = vcmp.eq.s32.totalorder %v1392_v14, %v401_v15  ;;  %v394_v28 = vadd.s32 %v1376_v5, %v377_v19  ;;  %v484_v12 = vld [vmem:[#allocation2 + $0x78] sm:$0xff] }
  0x25   : > { %vm1084_vm3 = vmpackc.low %vm414_vm1, %vm413_vm0  ;;  %v395_v29 = vadd.s32 %v1376_v5, %v378_v20  ;;  %v402_v30 = vadd.s32 %v1376_v5, %v385_v21  ;;  %v403_v31 = vadd.s32 %v1376_v5, %v386_v22  ;;  %v396_v33 = vadd.s32 %v1376_v5, %v379_v24 }
  0x26   : > { %1127 = vmatpush3.bf16.msra.mxu0 %v1215_v6  ;;  %1164 = vmatpush3.bf16.msra.mxu1 %v1215_v6  ;;  %vm1092_vm5 = vmpackc.low %vm422_vm4, %vm421_vm2  ;;  %v397_v34 = vadd.s32 %v1376_v5, %v380_v25  ;;  %v404_v35 = vadd.s32 %v1376_v5, %v387_v26  ;;  %v405_v36 = vadd.s32 %v1376_v5, %v388_v27  ;;  %v381_v37 = vadd.s32 48, %v1374_v4  ;;  %v483_v6 = vld [vmem:[#allocation2 + $0x70] sm:$0xff] }
  0x27   : > { %1128 = vmatprep.subr.bf16.mxu0 %v1216_v13  ;;  %1157 = vmatprep.subr.bf16.mxu1 %v1216_v13  ;;  %vm415_vm6 = vcmp.eq.s32.totalorder %v1392_v14, %v394_v28  ;;  %vm416_vm7 = vcmp.eq.s32.totalorder %v1392_v14, %v395_v29  ;;  %vm423_vm8 = vcmp.eq.s32.totalorder %v1392_v14, %v402_v30  ;;  %v382_v38 = vadd.s32 56, %v1374_v4  ;;  %v755_v29 = vld [vmem:[%s1363_s30 + $0x10] sm:$0xff] (!%p1100_p9)  ;;  %v753_v30 = vld [vmem:[%s1363_s30] sm:$0xff] (!%p1100_p9) }
  0x28   : > { %1138 = vmatprep.mubr.msk.bf16.mxu0 %vm1084_vm3, %v1264_v17  ;;  %1146 = vmatprep.mubr.msk.bf16.mxu1 %vm1092_vm5, %v1264_v17  ;;  %vm424_vm9 = vcmp.eq.s32.totalorder %v1392_v14, %v403_v31  ;;  %vm417_vm10 = vcmp.eq.s32.totalorder %v1392_v14, %v396_v33  ;;  %vm418_vm11 = vcmp.eq.s32.totalorder %v1392_v14, %v397_v34  ;;  %v389_v39 = vadd.s32 112, %v1374_v4  ;;  %vm1086_vm12 = vmpackc.low %vm416_vm7, %vm415_vm6  ;;  %v754_v33 = vld [vmem:[%s1363_s30 + $0x8] sm:$0xff] (!%p1100_p9) }
  0x29   : > { %v390_v40 = vadd.s32 120, %v1374_v4  ;;  %vm425_vm13 = vcmp.eq.s32.totalorder %v1392_v14, %v404_v35  ;;  %vm426_vm14 = vcmp.eq.s32.totalorder %v1392_v14, %v405_v36  ;;  %vm1094_vm15 = vmpackc.low %vm424_vm9, %vm423_vm8  ;;  %v398_v41 = vadd.s32 %v1376_v5, %v381_v37  ;;  %v758_v34 = vld [vmem:[%s1363_s30 + $0x28] sm:$0xff] (!%p1100_p9)  ;;  %v757_v35 = vld [vmem:[%s1363_s30 + $0x20] sm:$0xff] (!%p1100_p9) }
  0x2a   : > { %1129 = vmatpush3.bf16.msra.mxu0 %v1216_v13  ;;  %1165 = vmatpush3.bf16.msra.mxu1 %v1216_v13  ;;  %vm1088_vm0 = vmpackc.low %vm418_vm11, %vm417_vm10  ;;  %v399_v42 = vadd.s32 %v1376_v5, %v382_v38  ;;  %v406_v43 = vadd.s32 %v1376_v5, %v389_v39  ;;  %v1265_v31 = vmov (!%p1100_p9), 0   ;;  %v760_v36 = vld [vmem:[%s1363_s30 + $0x38] sm:$0xff] (!%p1100_p9)  ;;  %v759_v37 = vld [vmem:[%s1363_s30 + $0x30] sm:$0xff] (!%p1100_p9) }
  0x2b   : > { %1130 = vmatprep.subr.bf16.mxu0 %v1217_v16  ;;  %1158 = vmatprep.subr.bf16.mxu1 %v1217_v16  ;;  %vm1096_vm1 = vmpackc.low %vm426_vm14, %vm425_vm13  ;;  %v407_v44 = vadd.s32 %v1376_v5, %v390_v40  ;;  %vm419_vm2 = vcmp.eq.s32.totalorder %v1392_v14, %v398_v41  ;;  %v475_v5 = vld [vmem:[#allocation2 + $0x30] sm:$0xff]  ;;  %v762_v38 = vld [vmem:[%s1363_s30 + $0x48] sm:$0xff] (!%p1100_p9) }
  0x2c   : > { %vm420_vm3 = vcmp.eq.s32.totalorder %v1392_v14, %v399_v42  ;;  %vm427_vm4 = vcmp.eq.s32.totalorder %v1392_v14, %v406_v43  ;;  %1222 = vset.pattern.permute.xlu1 (!%p1100_p9), %v1265_v31  ;;  %1221 = vset.pattern.permute.xlu0 (!%p1100_p9), %v1265_v31  ;;  %v761_v39 = vld [vmem:[%s1363_s30 + $0x40] sm:$0xff] (!%p1100_p9)  ;;  %v764_v40 = vld [vmem:[%s1363_s30 + $0x58] sm:$0xff] (!%p1100_p9)  ;;  %v763_v41 = vld [vmem:[%s1363_s30 + $0x50] sm:$0xff] (!%p1100_p9) }
  0x2d   : > { %vm428_vm5 = vcmp.eq.s32.totalorder %v1392_v14, %v407_v44  ;;  %vm1090_vm6 = vmpackc.low %vm420_vm3, %vm419_vm2  ;;  %781 = vperm.xlu1 (!%p1100_p9), %1222, %v755_v29   ;;  %771 = vperm.xlu0 (!%p1100_p9), %1221, %v753_v30   ;;  %v766_v42 = vld [vmem:[%s1363_s30 + $0x68] sm:$0xff] (!%p1100_p9)  ;;  %v765_v43 = vld [vmem:[%s1363_s30 + $0x60] sm:$0xff] (!%p1100_p9) }
  0x2e   : > { %1131 = vmatpush3.bf16.msra.mxu0 %v1217_v16  ;;  %1166 = vmatpush3.bf16.msra.mxu1 %v1217_v16  ;;  %vm1098_vm7 = vmpackc.low %vm428_vm5, %vm427_vm4  ;;  %v768_v44 = vld [vmem:[%s1363_s30 + $0x78] sm:$0xff] (!%p1100_p9) }
  0x2f   : > { %1132 = vmatprep.subr.bf16.mxu0 %v1218_v18  ;;  %1159 = vmatprep.subr.bf16.mxu1 %v1218_v18 }
  0x31   : > { %776 = vperm.xlu0 (!%p1100_p9), %1221, %v754_v33  }
  0x32   : > { %1133 = vmatpush3.bf16.msra.mxu0 %v1218_v18  ;;  %1167 = vmatpush3.bf16.msra.mxu1 %v1218_v18  ;;  %v482_v18 = vld [vmem:[#allocation2 + $0x68] sm:$0xff] }
  0x33   : > { %1134 = vmatprep.subr.bf16.mxu0 %v1219_v23  ;;  %1160 = vmatprep.subr.bf16.mxu1 %v1219_v23 }
  0x35   : > { %791 = vperm.xlu0 (!%p1100_p9), %1221, %v757_v35  }
  0x36   : > { %1135 = vmatpush3.bf16.msra.mxu0 %v1219_v23  ;;  %1168 = vmatpush3.bf16.msra.mxu1 %v1219_v23 }
  0x37   : > { %1136 = vmatprep.subr.bf16.mxu0 %v1220_v32  ;;  %1161 = vmatprep.subr.bf16.mxu1 %v1220_v32 }
  0x39   : > { %801 = vperm.xlu0 (!%p1100_p9), %1221, %v759_v37  }
  0x3a   : > { %1137 = vmatpush3.bf16.msra.mxu0 %v1220_v32  ;;  %1169 = vmatpush3.bf16.msra.mxu1 %v1220_v32  ;;  %v756_v32 = vld [vmem:[%s1363_s30 + $0x18] sm:$0xff] (!%p1100_p9) }
  0x3b   : > { %786 = vperm.xlu1 (!%p1100_p9), %1222, %v756_v32  }
  0x3d   : > { %1139 = vmatmul.mubr.msk.bf16.vlgmr.msra.gmra.mrb[0].mxu0 %vm1086_vm12, %v1264_v17  ;;  %1147 = vmatmul.mubr.msk.bf16.vlgmr.msra.gmra.mrb[0].mxu1 %vm1094_vm15, %v1264_v17 }
  0x3e   : > { %1142 = vmatprep.mubr.msk.bf16.mxu0 %vm1088_vm0, %v1264_v17  ;;  %1150 = vmatprep.mubr.msk.bf16.mxu1 %vm1096_vm1, %v1264_v17 }
  0x3f   : > { %796 = vperm.xlu1 (!%p1100_p9), %1222, %v758_v34   ;;  %811 = vperm.xlu0 (!%p1100_p9), %1221, %v761_v39  }
  0x43   : > { %806 = vperm.xlu1 (!%p1100_p9), %1222, %v760_v36   ;;  %821 = vperm.xlu0 (!%p1100_p9), %1221, %v763_v41   ;;  %v709_v41 = vld [vmem:[%s1358_s21 + $0x58] sm:$0xff] (!%p1100_p9) }
  0x45   : > { %1143 = vmatmul.mubr.msk.bf16.gmra.mrb[4].mxu0 %vm1090_vm6, %v1264_v17  ;;  %1151 = vmatmul.mubr.msk.bf16.gmra.mrb[4].mxu1 %vm1098_vm7, %v1264_v17  ;;  %v474_v17 = vld [vmem:[#allocation2 + $0x28] sm:$0xff] }
  0x47   : > { %816 = vperm.xlu1 (!%p1100_p9), %1222, %v762_v38   ;;  %831 = vperm.xlu0 (!%p1100_p9), %1221, %v765_v43  }
  0x4b   : > { %826 = vperm.xlu1 (!%p1100_p9), %1222, %v764_v40  }
  0x4f   : > { %836 = vperm.xlu1 (!%p1100_p9), %1222, %v766_v42   ;;  %v708_v42 = vld [vmem:[%s1358_s21 + $0x50] sm:$0xff] (!%p1100_p9) }
  0x53   : > { %846 = vperm.xlu1 (!%p1100_p9), %1222, %v768_v44  }
 0x110   : > { %v1140_v49 = vpop.f32.mrb[0].mxu0  ;;  %v1148_v50 = vpop.f32.mrb[0].mxu1 }
 0x111   : > { %v648_v53 = vadd.f32 %v1140_v49, %v471_v45  ;;  %v656_v54 = vadd.f32 %v1148_v50, %v479_v46  ;;  %v583_v55 = vpop.f32.mrb[1].mxu0  ;;  %v615_v56 = vpop.f32.mrb[1].mxu1  ;;  %v767_v45 = vld [vmem:[%s1363_s30 + $0x70] sm:$0xff] (!%p1100_p9) }
 0x112   : > { %v646_v59 = vadd.f32 %v583_v55, %v469_v47  ;;  %v654_v60 = vadd.f32 %v615_v56, %v477_v48  ;;  %v1141_v61 = vpop.f32.mrb[2].mxu0  ;;  %v1149_v62 = vpop.f32.mrb[2].mxu1  ;;  %841 = vperm.xlu0 (!%p1100_p9), %1221, %v767_v45   ;;  %v700_v46 = vld [vmem:[%s1358_s21 + $0x10] sm:$0xff] (!%p1100_p9)  ;;  %v1468_v47 = vld [vmem:[%s1577_s3] ss:$0 sm:$0xff] (!%p1100_p9) }
 0x113   : > { %664 = vst [vmem:[#allocation2 + $0x10] sm:$0xff] %v648_v53  ;;  %672 = vst [vmem:[#allocation2 + $0x50] sm:$0xff] %v656_v54  ;;  %v649_v63 = vadd.f32 %v1141_v61, %v472_v51  ;;  %v657_v0 = vadd.f32 %v1149_v62, %v480_v52  ;;  %v586_v1 = vpop.f32.mrb[3].mxu0  ;;  %v618_v2 = vpop.f32.mrb[3].mxu1  ;;  %v698_v48 = vld [vmem:[%s1358_s21] sm:$0xff] (!%p1100_p9)  ;;  %v723_v49 = vadd.f32 (!%p1100_p9), %v1468_v47, %v700_v46  ;;  %v701_v51 = vld [vmem:[%s1358_s21 + $0x18] sm:$0xff] (!%p1100_p9) }
 0x114   : > { %662 = vst [vmem:[#allocation2] sm:$0xff] %v646_v59  ;;  %670 = vst [vmem:[#allocation2 + $0x40] sm:$0xff] %v654_v60  ;;  %v647_v3 = vadd.f32 %v586_v1, %v470_v57  ;;  %v655_v4 = vadd.f32 %v618_v2, %v478_v58  ;;  %v721_v50 = vadd.f32 (!%p1100_p9), %v1468_v47, %v698_v48  ;;  %v699_v52 = vld [vmem:[%s1358_s21 + $0x8] sm:$0xff] (!%p1100_p9)  ;;  %v702_v58 = vld [vmem:[%s1358_s21 + $0x20] sm:$0xff] (!%p1100_p9)  ;;  %v782_v59 = vpop.permute.xlu1 (!%p1100_p9), %781  ;;  %v772_v61 = vpop.permute.xlu0 (!%p1100_p9), %771 }
 0x115   : > { %665 = vst [vmem:[#allocation2 + $0x18] sm:$0xff] %v649_v63  ;;  %673 = vst [vmem:[#allocation2 + $0x58] sm:$0xff] %v657_v0  ;;  %v739_v53 = vmax.f32 (!%p1100_p9), %v723_v49, 0.0  ;;  %v724_v55 = vadd.f32 (!%p1100_p9), %v1468_v47, %v701_v51  ;;  %v722_v56 = vadd.f32 (!%p1100_p9), %v1468_v47, %v699_v52  ;;  %v703_v57 = vld [vmem:[%s1358_s21 + $0x28] sm:$0xff] (!%p1100_p9)  ;;  %v725_v0 = vadd.f32 (!%p1100_p9), %v1468_v47, %v702_v58 }
 0x116   : > { %663 = vst [vmem:[#allocation2 + $0x8] sm:$0xff] %v647_v3  ;;  %671 = vst [vmem:[#allocation2 + $0x48] sm:$0xff] %v655_v4  ;;  %v737_v54 = vmax.f32 (!%p1100_p9), %v721_v50, 0.0  ;;  %v726_v63 = vadd.f32 (!%p1100_p9), %v1468_v47, %v703_v57 }
 0x117   : > { %v851_v1 = vmul.f32 (!%p1100_p9), %v782_v59, %v739_v53  ;;  %v740_v3 = vmax.f32 (!%p1100_p9), %v724_v55, 0.0  ;;  %v738_v4 = vmax.f32 (!%p1100_p9), %v722_v56, 0.0  ;;  %v731_v55 = vadd.f32 (!%p1100_p9), %v1468_v47, %v708_v42 }
 0x118   : > { %v1144_v9 = vpop.f32.mrb[4].mxu0  ;;  %v1152_v10 = vpop.f32.mrb[4].mxu1  ;;  %681 = sbr.rel (%p1100_p9) target bundleno = 411 (0x19b), region = 56  ;;  %v849_v2 = vmul.f32 (!%p1100_p9), %v772_v61, %v737_v54  ;;  %v732_v54 = vadd.f32 (!%p1100_p9), %v1468_v47, %v709_v41  ;;  %v710_v61 = vld [vmem:[%s1358_s21 + $0x60] sm:$0xff] (!%p1100_p9) }
 0x119   : > { %v652_v13 = vadd.f32 %v1144_v9, %v475_v5  ;;  %v660_v14 = vadd.f32 %v1152_v10, %v483_v6  ;;  %v599_v15 = vpop.f32.mrb[5].mxu0  ;;  %v631_v16 = vpop.f32.mrb[5].mxu1  ;;  %v705_v5 = vld [vmem:[%s1358_s21 + $0x38] sm:$0xff] (!%p1100_p9)  ;;  %v704_v6 = vld [vmem:[%s1358_s21 + $0x30] sm:$0xff] (!%p1100_p9)  ;;  %v1491_v10 = vld [vmem:[%s1580_s6] ss:$0 sm:$0xff] (!%p1100_p9) }
 0x11a   : > { %v650_v19 = vadd.f32 %v599_v15, %v473_v7  ;;  %v658_v20 = vadd.f32 %v631_v16, %v481_v8  ;;  %v1145_v21 = vpop.f32.mrb[6].mxu0  ;;  %v1153_v22 = vpop.f32.mrb[6].mxu1  ;;  %v684_v60 = vld [vmem:[#allocation2 + $0x10] sm:$0xff] (!%p1100_p9)  ;;  %v1486_v7 = vld [vmem:[%s1579_s5] ss:$0 sm:$0xff] (!%p1100_p9)  ;;  %v742_v15 = vmax.f32 (!%p1100_p9), %v726_v63, 0.0 }
 0x11b   : > { %668 = vst [vmem:[#allocation2 + $0x30] sm:$0xff] %v652_v13  ;;  %676 = vst [vmem:[#allocation2 + $0x70] sm:$0xff] %v660_v14  ;;  %v653_v23 = vadd.f32 %v1145_v21, %v476_v11  ;;  %v661_v24 = vadd.f32 %v1153_v22, %v484_v12  ;;  %v602_v25 = vpop.f32.mrb[7].mxu0  ;;  %v634_v26 = vpop.f32.mrb[7].mxu1  ;;  %v682_v62 = vld [vmem:[#allocation2] sm:$0xff] (!%p1100_p9)  ;;  %v867_v8 = vadd.f32 (!%p1100_p9), %v851_v1, %v684_v60  ;;  %v741_v16 = vmax.f32 (!%p1100_p9), %v725_v0, 0.0 }
 0x11c   : > { %666 = vst [vmem:[#allocation2 + $0x20] sm:$0xff] %v650_v19  ;;  %674 = vst [vmem:[#allocation2 + $0x60] sm:$0xff] %v658_v20  ;;  %v651_v27 = vadd.f32 %v602_v25, %v474_v17  ;;  %v659_v28 = vadd.f32 %v634_v26, %v482_v18  ;;  %v865_v9 = vadd.f32 (!%p1100_p9), %v849_v2, %v682_v62  ;;  %v787_v11 = vpop.permute.xlu1 (!%p1100_p9), %786  ;;  %v685_v12 = vld [vmem:[#allocation2 + $0x18] sm:$0xff] (!%p1100_p9)  ;;  %v777_v13 = vpop.permute.xlu0 (!%p1100_p9), %776  ;;  %v711_v60 = vld [vmem:[%s1358_s21 + $0x68] sm:$0xff] (!%p1100_p9) }
 0x11d   : > { %669 = vst [vmem:[#allocation2 + $0x38] sm:$0xff] %v653_v23  ;;  %677 = vst [vmem:[#allocation2 + $0x78] sm:$0xff] %v661_v24  ;;  %v683_v14 = vld [vmem:[#allocation2 + $0x8] sm:$0xff] (!%p1100_p9)  ;;  %v728_v17 = vadd.f32 (!%p1100_p9), %v1468_v47, %v705_v5  ;;  %v727_v18 = vadd.f32 (!%p1100_p9), %v1468_v47, %v704_v6  ;;  %v890_v19 = vmul.f32 (!%p1100_p9), %v1486_v7, %v867_v8  ;;  %v706_v24 = vld [vmem:[%s1358_s21 + $0x40] sm:$0xff] (!%p1100_p9)  ;;  %v748_v6 = vmax.f32 (!%p1100_p9), %v732_v54, 0.0 }
 0x11e   : > { %667 = vst [vmem:[#allocation2 + $0x28] sm:$0xff] %v651_v27  ;;  %675 = vst [vmem:[#allocation2 + $0x68] sm:$0xff] %v659_v28  ;;  %v888_v20 = vmul.f32 (!%p1100_p9), %v1486_v7, %v865_v9  ;;  %v852_v21 = vmul.f32 (!%p1100_p9), %v787_v11, %v740_v3  ;;  %v850_v22 = vmul.f32 (!%p1100_p9), %v777_v13, %v738_v4  ;;  %v707_v23 = vld [vmem:[%s1358_s21 + $0x48] sm:$0xff] (!%p1100_p9)  ;;  %v690_v5 = vld [vmem:[#allocation2 + $0x40] sm:$0xff] (!%p1100_p9)  ;;  %v747_v8 = vmax.f32 (!%p1100_p9), %v731_v55, 0.0 }
 0x11f   : > { %v913_v25 = vadd.f32 %v1491_v10, %v890_v19  ;;  %v744_v33 = vmax.f32 %v728_v17, 0.0  ;;  %v743_v34 = vmax.f32 %v727_v18, 0.0  ;;  %v730_v35 = vadd.f32 %v1468_v47, %v707_v23  ;;  %v691_v3 = vld [vmem:[#allocation2 + $0x48] sm:$0xff]  ;;  %v712_v17 = vld [vmem:[%s1358_s21 + $0x70] sm:$0xff]  ;;  %v693_v23 = vld [vmem:[#allocation2 + $0x58] sm:$0xff] }
 0x120   : > { %v911_v26 = vadd.f32 %v1491_v10, %v888_v20  ;;  %v868_v27 = vadd.f32 %v852_v21, %v685_v12  ;;  %v866_v28 = vadd.f32 %v850_v22, %v683_v14  ;;  %v797_v29 = vpop.permute.xlu1 %796  ;;  %v792_v31 = vpop.permute.xlu0 %791  ;;  %v729_v36 = vadd.f32 %v1468_v47, %v706_v24 }
 0x121   : > { %929 = vst [vmem:[%s1368_s8 + $0x10] sm:$0xff] %v913_v25  ;;  %v854_v39 = vmul.f32 %v797_v29, %v742_v15  ;;  %v853_v40 = vmul.f32 %v792_v31, %v741_v16  ;;  %v746_v52 = vmax.f32 %v730_v35, 0.0  ;;  %v734_v9 = vadd.f32 %v1468_v47, %v711_v60  ;;  %v713_v16 = vld [vmem:[%s1358_s21 + $0x78] sm:$0xff]  ;;  %v692_v25 = vld [vmem:[#allocation2 + $0x50] sm:$0xff] }
 0x122   : > { %927 = vst [vmem:[%s1368_s8] sm:$0xff] %v911_v26  ;;  %v891_v37 = vmul.f32 %v1486_v7, %v868_v27  ;;  %v889_v38 = vmul.f32 %v1486_v7, %v866_v28  ;;  %v688_v51 = vld [vmem:[#allocation2 + $0x30] sm:$0xff]  ;;  %v745_v53 = vmax.f32 %v729_v36, 0.0  ;;  %v733_v11 = vadd.f32 %v1468_v47, %v710_v61 }
 0x123   : > { %v686_v32 = vld [vmem:[#allocation2 + $0x20] sm:$0xff]  ;;  %v750_v26 = vmax.f32 %v734_v9, 0.0  ;;  %v736_v28 = vadd.f32 %v1468_v47, %v713_v16  ;;  %v735_v29 = vadd.f32 %v1468_v47, %v712_v17  ;;  %v696_v55 = vld [vmem:[#allocation2 + $0x70] sm:$0xff] }
 0x124   : > { %v914_v43 = vadd.f32 %v1491_v10, %v891_v37  ;;  %v912_v44 = vadd.f32 %v1491_v10, %v889_v38  ;;  %v869_v46 = vadd.f32 %v853_v40, %v686_v32  ;;  %v807_v48 = vpop.permute.xlu1 %806  ;;  %v689_v49 = vld [vmem:[#allocation2 + $0x38] sm:$0xff]  ;;  %v802_v50 = vpop.permute.xlu0 %801  ;;  %v749_v27 = vmax.f32 %v733_v11, 0.0  ;;  %v694_v47 = vld [vmem:[#allocation2 + $0x60] sm:$0xff] }
 0x125   : > { %v687_v30 = vld [vmem:[#allocation2 + $0x28] sm:$0xff]  ;;  %v856_v58 = vmul.f32 %v807_v48, %v744_v33  ;;  %v855_v59 = vmul.f32 %v802_v50, %v743_v34  ;;  %v752_v41 = vmax.f32 %v736_v28, 0.0  ;;  %v751_v42 = vmax.f32 %v735_v29, 0.0 }
 0x126   : > { %v870_v45 = vadd.f32 %v854_v39, %v687_v30  ;;  %930 = vst [vmem:[%s1368_s8 + $0x18] sm:$0xff] %v914_v43  ;;  %928 = vst [vmem:[%s1368_s8 + $0x8] sm:$0xff] %v912_v44  ;;  %v892_v57 = vmul.f32 %v1486_v7, %v869_v46  ;;  %v695_v39 = vld [vmem:[#allocation2 + $0x68] sm:$0xff] }
 0x127   : > { %v872_v0 = vadd.f32 %v856_v58, %v689_v49  ;;  %v871_v1 = vadd.f32 %v855_v59, %v688_v51 }
 0x128   : > { %v893_v56 = vmul.f32 %v1486_v7, %v870_v45  ;;  %v915_v63 = vadd.f32 %v1491_v10, %v892_v57  ;;  %v817_v2 = vpop.permute.xlu1 %816  ;;  %v812_v4 = vpop.permute.xlu0 %811 }
 0x129   : > { %v895_v12 = vmul.f32 %v1486_v7, %v872_v0  ;;  %v894_v13 = vmul.f32 %v1486_v7, %v871_v1  ;;  %v858_v14 = vmul.f32 %v817_v2, %v746_v52  ;;  %v857_v15 = vmul.f32 %v812_v4, %v745_v53  ;;  %v697_v53 = vld [vmem:[#allocation2 + $0x78] sm:$0xff] }
 0x12a   : > { %v916_v62 = vadd.f32 %v1491_v10, %v893_v56  ;;  %931 = vst [vmem:[%s1368_s8 + $0x20] sm:$0xff] %v915_v63 }
 0x12b   : > { %v918_v18 = vadd.f32 %v1491_v10, %v895_v12  ;;  %v917_v19 = vadd.f32 %v1491_v10, %v894_v13  ;;  %v874_v20 = vadd.f32 %v858_v14, %v691_v3  ;;  %v873_v21 = vadd.f32 %v857_v15, %v690_v5 }
 0x12c   : > { %932 = vst [vmem:[%s1368_s8 + $0x28] sm:$0xff] %v916_v62  ;;  %v827_v22 = vpop.permute.xlu1 %826  ;;  %v822_v24 = vpop.permute.xlu0 %821 }
 0x12d   : > { %934 = vst [vmem:[%s1368_s8 + $0x38] sm:$0xff] %v918_v18  ;;  %933 = vst [vmem:[%s1368_s8 + $0x30] sm:$0xff] %v917_v19  ;;  %v897_v30 = vmul.f32 %v1486_v7, %v874_v20  ;;  %v896_v31 = vmul.f32 %v1486_v7, %v873_v21  ;;  %v860_v32 = vmul.f32 %v827_v22, %v748_v6 }
 0x12e   : > { %v859_v33 = vmul.f32 %v822_v24, %v747_v8 }
 0x12f   : > { %v920_v34 = vadd.f32 %v1491_v10, %v897_v30  ;;  %v919_v35 = vadd.f32 %v1491_v10, %v896_v31  ;;  %v876_v36 = vadd.f32 %v860_v32, %v693_v23 }
 0x130   : > { %v875_v37 = vadd.f32 %v859_v33, %v692_v25  ;;  %v837_v38 = vpop.permute.xlu1 %836  ;;  %v832_v40 = vpop.permute.xlu0 %831 }
 0x131   : > { %936 = vst [vmem:[%s1368_s8 + $0x48] sm:$0xff] %v920_v34  ;;  %935 = vst [vmem:[%s1368_s8 + $0x40] sm:$0xff] %v919_v35  ;;  %v899_v43 = vmul.f32 %v1486_v7, %v876_v36  ;;  %v862_v45 = vmul.f32 %v837_v38, %v750_v26  ;;  %v861_v46 = vmul.f32 %v832_v40, %v749_v27 }
 0x132   : > { %v898_v44 = vmul.f32 %v1486_v7, %v875_v37 }
 0x133   : > { %v922_v48 = vadd.f32 %v1491_v10, %v899_v43  ;;  %v878_v50 = vadd.f32 %v862_v45, %v695_v39  ;;  %v877_v51 = vadd.f32 %v861_v46, %v694_v47 }
 0x134   : > { %v921_v49 = vadd.f32 %v1491_v10, %v898_v44  ;;  %v847_v52 = vpop.permute.xlu1 %846 }
 0x135   : > { %938 = vst [vmem:[%s1368_s8 + $0x58] sm:$0xff] %v922_v48  ;;  %v901_v56 = vmul.f32 %v1486_v7, %v878_v50  ;;  %v900_v57 = vmul.f32 %v1486_v7, %v877_v51  ;;  %v864_v58 = vmul.f32 %v847_v52, %v752_v41 }
 0x136   : > { %937 = vst [vmem:[%s1368_s8 + $0x50] sm:$0xff] %v921_v49 }
 0x137   : > { %v924_v60 = vadd.f32 %v1491_v10, %v901_v56  ;;  %v923_v61 = vadd.f32 %v1491_v10, %v900_v57  ;;  %v880_v62 = vadd.f32 %v864_v58, %v697_v53 }
 0x139   : > { %940 = vst [vmem:[%s1368_s8 + $0x68] sm:$0xff] %v924_v60  ;;  %939 = vst [vmem:[%s1368_s8 + $0x60] sm:$0xff] %v923_v61  ;;  %v903_v0 = vmul.f32 %v1486_v7, %v880_v62 }
 0x13b   : > { %v926_v2 = vadd.f32 %v1491_v10, %v903_v0 }
 0x13d   : > { %942 = vst [vmem:[%s1368_s8 + $0x78] sm:$0xff] %v926_v2 }
 0x191   : > { %v842_v54 = vpop.permute.xlu0 %841 }
 0x192   : > { %v863_v59 = vmul.f32 %v842_v54, %v751_v42 }
 0x194   : > { %v879_v63 = vadd.f32 %v863_v59, %v696_v55 }
 0x196   : > { %v902_v1 = vmul.f32 %v1486_v7, %v879_v63 }
 0x198   : > { %v925_v3 = vadd.f32 %v1491_v10, %v902_v1 }
 0x19a   : > { %941 = vst [vmem:[%s1368_s8 + $0x70] sm:$0xff] %v925_v3 }
 0x19b PF: > { %s17_s28 = sadd.s32 1, %s1261_s28   ;;  %s1583_s17 = sld [smem:[#allocation3_spill]] }
 0x19c   : > { %p14_p10 = scmp.ge.s32.totalorder %s17_s28, 8   ;;  %s1584_s24 = smov %s1253_s26 }
 0x19d   : > { %s1585_s25 = smov %s1257_s27  ;;  %s1586_s26 = smov %s1589_s29 }
 0x19e   :  { %16 = sbr.rel (!%p14_p10) target bundleno = 3 (0x3), region = 95 }
 0x1a1   : > { %s1587_s27 = smov %s1583_s17 }

</bundles_post_ra>
